<compile_context>
chip_gen: v5e
topology: v5e:2x2
jax: 0.10.0
libtpu: 0.0.40
codegen_flags: <defaults>
</compile_context>

<pallas_src>
import functools

import jax
import jax.numpy as jnp
from jax import lax
from jax.experimental import pallas as pl
from jax.experimental.pallas import tpu as pltpu


# ----------------------------------------------------------------------------
# Pallas kernel: full forward pass for Gb graphs per grid step.
# ----------------------------------------------------------------------------
def _encoding_kernel(
    x_ref, adj_ref, lpf_ref,
    w1_ref, b1_ref, w2_ref, b2_ref,
    wl_ref, wh_ref, blh_ref, wf_ref, bf_ref,
    out_ref,
    *, high_pass_layers, high_pass_alpha, fusion_gamma,
):
    f32 = jnp.float32
    bf16 = jnp.bfloat16
    gb, n_p, din_p = x_ref.shape
    hid_p = w2_ref.shape[1]

    # --- first_layer: Linear -> ReLU -> Linear ('mlp') ----------------------
    # Node-wise matmuls run on the (gb*n_p, .) slab so MXU rows are full.
    x2 = x_ref[...].reshape(gb * n_p, din_p)                          # bf16
    h = jnp.maximum(
        jnp.dot(x2, w1_ref[...], preferred_element_type=f32) + b1_ref[...], 0.0)
    h0 = (jnp.dot(h.astype(bf16), w2_ref[...], preferred_element_type=f32)
          + b2_ref[...])                                              # f32

    # --- construct_high_pass_adj: relu(cos_sim(H0) * (adj != 0)) ------------
    # F.normalize(p=2, dim=1): x * rsqrt(max(||x||^2, 1e-24))  (f32 math)
    inv_norm = lax.rsqrt(
        jnp.maximum(jnp.sum(h0 * h0, axis=1, keepdims=True), 1e-24))
    h0n = (h0 * inv_norm).reshape(gb, n_p, hid_p).astype(bf16)
    # batched K-contraction on both operands (no explicit transpose / XLU pass)
    cos = lax.dot_general(h0n, h0n, (((2,), (2,)), ((0,), (0,))),
                          preferred_element_type=f32)                 # (gb,n,n)
    # relu folded into the mask.
    a_hp = jnp.where((adj_ref[...] != 0) & (cos > 0.0), cos, 0.0)

    # --- normalize_adj_torch: symmetric D^{-1/2} A D^{-1/2} -----------------
    # a_hp is symmetric (symmetric adj mask, symmetric cos), so the column
    # factor is a plain sublane reduction instead of a transposed vector.
    deg_r = jnp.sum(a_hp, axis=2, keepdims=True)                      # (gb,n,1)
    deg_c = jnp.sum(a_hp, axis=1, keepdims=True)                      # (gb,1,n)
    dinv_r = jnp.where(deg_r > 0.0, lax.rsqrt(deg_r), 0.0)
    dinv_c = jnp.where(deg_c > 0.0, lax.rsqrt(deg_c), 0.0)
    a_norm = (a_hp * dinv_r * dinv_c).astype(bf16)

    # --- construct_filter applied by propagation (never materialize base^l) -
    # TODO(synk): construct_filter() source is not in model.py; assuming the
    # standard polynomial filter (alpha*I + (1-alpha)*A_norm)^l applied to H0.
    h0_3 = h0.reshape(gb, n_p, hid_p)
    hp = h0_3
    for _ in range(high_pass_layers):                                 # static
        prop = lax.dot_general(a_norm, hp.astype(bf16),
                               (((2,), (1,)), ((0,), (0,))),
                               preferred_element_type=f32)
        hp = high_pass_alpha * hp + (1.0 - high_pass_alpha) * prop

    lp = lax.dot_general(lpf_ref[...], h0_3.astype(bf16),
                         (((2,), (1,)), ((0,), (0,))),
                         preferred_element_type=f32)

    # --- low/high FC + 'add' fusion (beta folded into weights, no concat) ---
    lp2 = lp.reshape(gb * n_p, hid_p).astype(bf16)
    hp2 = hp.reshape(gb * n_p, hid_p).astype(bf16)
    h_fused = (jnp.dot(lp2, wl_ref[...], preferred_element_type=f32)
               + jnp.dot(hp2, wh_ref[...], preferred_element_type=f32)
               + blh_ref[...])

    # --- residual fusion_fc --------------------------------------------------
    out = h_fused + fusion_gamma * (
        jnp.dot(h_fused.astype(bf16), wf_ref[...], preferred_element_type=f32)
        + bf_ref[...])
    out_ref[...] = out.reshape(gb, n_p, hid_p).astype(out_ref.dtype)


# ----------------------------------------------------------------------------
# Wrapper
# ----------------------------------------------------------------------------
def _round_up(v, m):
    return ((v + m - 1) // m) * m


def encoding_forward(x, adj, low_pass_filter, params, *,
                     high_pass_layers=2, high_pass_alpha=0.5,
                     fusion_beta=0.5, fusion_gamma=0.1):
    """x: (N, Din) or (G, N, Din); adj / low_pass_filter matching (.., N, N)."""
    squeeze = x.ndim == 2
    if squeeze:
        x = x[None]
        adj = adj[None]
        low_pass_filter = low_pass_filter[None]

    g, n, din = x.shape
    hid = params["w2"].shape[1]

    f32, bf16 = jnp.float32, jnp.bfloat16

    # Lane-dense padding: feature dims AND node dim to multiples of 128.
    din_p = _round_up(din, 128)
    hid_p = _round_up(hid, 128)
    n_p = _round_up(n, 128)

    # Graphs per grid step: fill the 256-row MXU (v6e/v7x) for small graphs.
    gb = min(g, max(1, 256 // n_p))
    num_blocks = -(-g // gb)
    if num_blocks > 1 and num_blocks % 2 == 1:
        num_blocks += 1                      # keep both v7x TensorCores busy
    g_pad = num_blocks * gb

    def pad_w(w, rows, cols, scale=1.0):
        w = jnp.asarray(w, f32) * scale
        w = jnp.pad(w, ((0, rows - w.shape[0]), (0, cols - w.shape[1])))
        return w.astype(bf16)

    def pad_b(b, cols):
        b = jnp.asarray(b, f32).reshape(1, -1)
        return jnp.pad(b, ((0, 0), (0, cols - b.shape[1])))

    w1 = pad_w(params["w1"], din_p, hid_p)
    b1 = pad_b(params["b1"], hid_p)
    w2 = pad_w(params["w2"], hid_p, hid_p)
    b2 = pad_b(params["b2"], hid_p)
    # Fold the 'add' fusion (beta-weighting) into the low/high FC weights.
    wls = pad_w(params["wl"], hid_p, hid_p, scale=fusion_beta)
    whs = pad_w(params["wh"], hid_p, hid_p, scale=1.0 - fusion_beta)
    blh = (fusion_beta * pad_b(params["bl"], hid_p)
           + (1.0 - fusion_beta) * pad_b(params["bh"], hid_p))
    wf = pad_w(params["wf"], hid_p, hid_p)
    bf = pad_b(params["bf"], hid_p)

    x_p = jnp.pad(jnp.asarray(x, bf16),
                  ((0, g_pad - g), (0, n_p - n), (0, din_p - din)))
    adj_i8 = jnp.pad((jnp.asarray(adj) != 0).astype(jnp.int8),
                     ((0, g_pad - g), (0, n_p - n), (0, n_p - n)))
    lpf_bf = jnp.pad(jnp.asarray(low_pass_filter, bf16),
                     ((0, g_pad - g), (0, n_p - n), (0, n_p - n)))

    kernel = functools.partial(
        _encoding_kernel,
        high_pass_layers=int(high_pass_layers),
        high_pass_alpha=float(high_pass_alpha),
        fusion_gamma=float(fusion_gamma))

    def data_spec(c):
        return pl.BlockSpec((gb, n_p, c), lambda i: (i, 0, 0))

    def w_spec(r, c):
        return pl.BlockSpec((r, c), lambda i: (0, 0))

    in_specs = [
        data_spec(din_p),                 # x (bf16)
        data_spec(n_p),                   # adj mask (int8)
        data_spec(n_p),                   # low-pass filter (bf16)
        w_spec(din_p, hid_p), w_spec(1, hid_p),     # w1, b1
        w_spec(hid_p, hid_p), w_spec(1, hid_p),     # w2, b2
        w_spec(hid_p, hid_p), w_spec(hid_p, hid_p), w_spec(1, hid_p),  # wls, whs, blh
        w_spec(hid_p, hid_p), w_spec(1, hid_p),     # wf, bf
    ]
    out_spec = pl.BlockSpec((gb, n_p, hid_p), lambda i: (i, 0, 0))

    # --- VMEM budget: derive from the working set, clamp to physical VMEM ----
    w_bytes = sum(int(a.size) * a.dtype.itemsize
                  for a in (w1, b1, w2, b2, wls, whs, blh, wf, bf))
    blk_in = gb * n_p * (din_p * 2 + n_p * 1 + n_p * 2)   # x bf16, adj i8, lpf bf16
    blk_out = gb * n_p * hid_p * 4                         # f32 output block
    tmp_bytes = gb * n_p * n_p * (4 + 4 + 4 + 2) + 10 * gb * n_p * hid_p * 4
    vmem_est = 2 * (blk_in + blk_out) + 2 * w_bytes + tmp_bytes
    try:
        vmem_cap = int(pltpu.get_tpu_info().vmem_capacity_bytes)
    except Exception:   # fall back to the smallest generation (v7x: 64 MiB/TC)
        vmem_cap = 64 * 1024 * 1024
    vmem_limit = int(min(max(int(vmem_est * 1.25) + (4 << 20), 32 << 20),
                         (vmem_cap * 7) // 8))

    # --- Advisory cost estimate (no N^3 term; bf16/int8 byte counts) ---------
    def mm(m, k, p):
        return 2 * m * k * p

    rows = gb * n_p
    flops_blk = (mm(rows, din_p, hid_p) + mm(rows, hid_p, hid_p)      # first MLP
                 + gb * mm(n_p, hid_p, n_p)                           # cos sim
                 + (high_pass_layers + 1) * gb * mm(n_p, n_p, hid_p)  # prop + lpf@h0
                 + 3 * mm(rows, hid_p, hid_p))                        # low/high/fusion FC
    cost = pl.CostEstimate(
        flops=int(num_blocks * flops_blk),
        transcendentals=int(num_blocks * 3 * rows),
        bytes_accessed=int(num_blocks * (blk_in + blk_out) + w_bytes))

    out_p = pl.pallas_call(
        kernel,
        out_shape=jax.ShapeDtypeStruct((g_pad, n_p, hid_p), f32),
        grid=(num_blocks,),
        in_specs=in_specs,
        out_specs=out_spec,
        compiler_params=pltpu.CompilerParams(
            dimension_semantics=("parallel",),
            vmem_limit_bytes=vmem_limit),
        cost_estimate=cost,
    )(x_p, adj_i8, lpf_bf, w1, b1, w2, b2, wls, whs, blh, wf, bf)

    out = out_p[:g, :n, :hid]
    return out[0] if squeeze else out


# ----------------------------------------------------------------------------
# Pure-JAX reference (same math as the PyTorch module) for correctness checks.
# ----------------------------------------------------------------------------
def encoding_reference(x, adj, lpf, p, *, high_pass_layers, high_pass_alpha,
                       fusion_beta, fusion_gamma):
    h0 = jnp.maximum(x @ p["w1"] + p["b1"], 0.0) @ p["w2"] + p["b2"]
    h0n = h0 / jnp.maximum(jnp.linalg.norm(h0, axis=1, keepdims=True), 1e-12)
    a_hp = jnp.maximum(jnp.where(adj != 0.0, h0n @ h0n.T, 0.0), 0.0)
    deg = a_hp.sum(1, keepdims=True)
    dinv = jnp.where(deg > 0, 1.0 / jnp.sqrt(deg), 0.0)
    a_norm = a_hp * dinv * dinv.T
    eye = jnp.eye(a_norm.shape[0], dtype=jnp.float32)
    base = high_pass_alpha * eye + (1.0 - high_pass_alpha) * a_norm
    hp = eye
    for _ in range(high_pass_layers):
        hp = hp @ base
    h_low = (lpf @ h0) @ p["wl"] + p["bl"]
    h_high = (hp @ h0) @ p["wh"] + p["bh"]
    h = fusion_beta * h_low + (1.0 - fusion_beta) * h_high
    return h + fusion_gamma * (h @ p["wf"] + p["bf"])


if __name__ == "__main__":
    G, N, DIN, HID = 4, 16, 16, 32
    key = jax.random.PRNGKey(0)
    ks = jax.random.split(key, 12)

    xs = jax.random.normal(ks[0], (G, N, DIN), jnp.float32)

    # symmetric binary adjacency with self loops, per graph
    a = (jax.random.uniform(ks[1], (G, N, N)) < 0.3).astype(jnp.float32)
    eye = jnp.eye(N, dtype=jnp.float32)
    adjs = jnp.clip(a + jnp.swapaxes(a, -1, -2) + eye[None], 0.0, 1.0)

    # precomputed low-pass filter (module receives it already built):
    # symmetric normalized adjacency D^{-1/2} A D^{-1/2}
    deg = adjs.sum(-1)
    dinv = jnp.where(deg > 0, 1.0 / jnp.sqrt(deg), 0.0)
    lpfs = adjs * dinv[..., :, None] * dinv[..., None, :]

    def init_w(k, i, o):
        return (0.1 * jax.random.normal(k, (i, o))).astype(jnp.float32)

    params = {
        "w1": init_w(ks[2], DIN, HID), "b1": init_w(ks[3], 1, HID),
        "w2": init_w(ks[4], HID, HID), "b2": init_w(ks[5], 1, HID),
        "wl": init_w(ks[6], HID, HID), "bl": init_w(ks[7], 1, HID),
        "wh": init_w(ks[8], HID, HID), "bh": init_w(ks[9], 1, HID),
        "wf": init_w(ks[10], HID, HID), "bf": init_w(ks[11], 1, HID),
    }

    cfg = dict(high_pass_layers=2, high_pass_alpha=0.5,
               fusion_beta=0.5, fusion_gamma=0.1)

    out = jax.block_until_ready(encoding_forward(xs, adjs, lpfs, params, **cfg))
    assert out.shape == (G, N, HID)

    for gi in range(G):
        ref = encoding_reference(xs[gi], adjs[gi], lpfs[gi], params, **cfg)
        max_diff = float(jnp.max(jnp.abs(out[gi] - ref)))
        assert jnp.allclose(out[gi], ref, atol=5e-2, rtol=5e-2), \
            f"mismatch vs reference on graph {gi}: max abs diff {max_diff}"

    print("KERNEL_OK")
</pallas_src>

<mosaic_0001>
module attributes {stable_mosaic.version = 11 : i64} {
  func.func @_encoding_kernel(%arg0: i32, %arg1: memref<2x128x128xbf16, #tpu.memory_space<vmem>>, %arg2: memref<2x128x128xi8, #tpu.memory_space<vmem>>, %arg3: memref<2x128x128xbf16, #tpu.memory_space<vmem>>, %arg4: memref<128x128xbf16, #tpu.memory_space<vmem>>, %arg5: memref<1x128xf32, #tpu.memory_space<vmem>>, %arg6: memref<128x128xbf16, #tpu.memory_space<vmem>>, %arg7: memref<1x128xf32, #tpu.memory_space<vmem>>, %arg8: memref<128x128xbf16, #tpu.memory_space<vmem>>, %arg9: memref<128x128xbf16, #tpu.memory_space<vmem>>, %arg10: memref<1x128xf32, #tpu.memory_space<vmem>>, %arg11: memref<128x128xbf16, #tpu.memory_space<vmem>>, %arg12: memref<1x128xf32, #tpu.memory_space<vmem>>, %arg13: memref<2x128x128xf32, #tpu.memory_space<vmem>>) attributes {dimension_semantics = [#tpu.dimension_semantics<parallel>], iteration_bounds = array<i64: 2>, scalar_prefetch = 0 : i64, scratch_operands = 0 : i64, tpu.core_type = #tpu.core_type<tc>, window_params = [{transform_indices = @transform_0, window_bounds = array<i64: 2, 128, 128>}, {transform_indices = @transform_1, window_bounds = array<i64: 2, 128, 128>}, {transform_indices = @transform_2, window_bounds = array<i64: 2, 128, 128>}, {pipeline_mode = #tpu.pipeline_mode<synchronous>, transform_indices = @transform_3, window_bounds = array<i64: 128, 128>}, {pipeline_mode = #tpu.pipeline_mode<synchronous>, transform_indices = @transform_4, window_bounds = array<i64: 1, 128>}, {pipeline_mode = #tpu.pipeline_mode<synchronous>, transform_indices = @transform_5, window_bounds = array<i64: 128, 128>}, {pipeline_mode = #tpu.pipeline_mode<synchronous>, transform_indices = @transform_6, window_bounds = array<i64: 1, 128>}, {pipeline_mode = #tpu.pipeline_mode<synchronous>, transform_indices = @transform_7, window_bounds = array<i64: 128, 128>}, {pipeline_mode = #tpu.pipeline_mode<synchronous>, transform_indices = @transform_8, window_bounds = array<i64: 128, 128>}, {pipeline_mode = #tpu.pipeline_mode<synchronous>, transform_indices = @transform_9, window_bounds = array<i64: 1, 128>}, {pipeline_mode = #tpu.pipeline_mode<synchronous>, transform_indices = @transform_10, window_bounds = array<i64: 128, 128>}, {pipeline_mode = #tpu.pipeline_mode<synchronous>, transform_indices = @transform_11, window_bounds = array<i64: 1, 128>}, {transform_indices = @transform_12, window_bounds = array<i64: 2, 128, 128>}]} {
    %c0 = arith.constant 0 : index
    %c0_0 = arith.constant 0 : index
    %c0_1 = arith.constant 0 : index
    %0 = vector.load %arg1[%c0, %c0_0, %c0_1] : memref<2x128x128xbf16, #tpu.memory_space<vmem>>, vector<2x128x128xbf16>
    %1 = vector.shape_cast %0 : vector<2x128x128xbf16> to vector<256x128xbf16>
    %c0_2 = arith.constant 0 : index
    %c0_3 = arith.constant 0 : index
    %2 = vector.load %arg4[%c0_2, %c0_3] : memref<128x128xbf16, #tpu.memory_space<vmem>>, vector<128x128xbf16>
    %cst = arith.constant dense<0.000000e+00> : vector<256x128xf32>
    %3 = tpu.matmul %1, %2, %cst {dimension_numbers = #tpu.dot_dimension_numbers<[1], [0], [0], [1], [0, 0, 1, 1], [], []>} : vector<256x128xbf16>, vector<128x128xbf16>, vector<256x128xf32> -> vector<256x128xf32>
    %c0_4 = arith.constant 0 : index
    %c0_5 = arith.constant 0 : index
    %4 = vector.load %arg5[%c0_4, %c0_5] : memref<1x128xf32, #tpu.memory_space<vmem>>, vector<1x128xf32>
    %5 = vector.broadcast %4 : vector<1x128xf32> to vector<256x128xf32>
    %6 = arith.addf %3, %5 : vector<256x128xf32>
    %cst_6 = arith.constant 0.000000e+00 : f32
    %7 = vector.broadcast %cst_6 : f32 to vector<256x128xf32>
    %8 = arith.maximumf %6, %7 : vector<256x128xf32>
    %9 = arith.truncf %8 : vector<256x128xf32> to vector<256x128xbf16>
    %c0_7 = arith.constant 0 : index
    %c0_8 = arith.constant 0 : index
    %10 = vector.load %arg6[%c0_7, %c0_8] : memref<128x128xbf16, #tpu.memory_space<vmem>>, vector<128x128xbf16>
    %cst_9 = arith.constant dense<0.000000e+00> : vector<256x128xf32>
    %11 = tpu.matmul %9, %10, %cst_9 {dimension_numbers = #tpu.dot_dimension_numbers<[1], [0], [0], [1], [0, 0, 1, 1], [], []>} : vector<256x128xbf16>, vector<128x128xbf16>, vector<256x128xf32> -> vector<256x128xf32>
    %c0_10 = arith.constant 0 : index
    %c0_11 = arith.constant 0 : index
    %12 = vector.load %arg7[%c0_10, %c0_11] : memref<1x128xf32, #tpu.memory_space<vmem>>, vector<1x128xf32>
    %13 = vector.broadcast %12 : vector<1x128xf32> to vector<256x128xf32>
    %14 = arith.addf %11, %13 : vector<256x128xf32>
    %15 = arith.mulf %14, %14 : vector<256x128xf32>
    %cst_12 = arith.constant dense<0.000000e+00> : vector<256xf32>
    %16 = vector.multi_reduction <add>, %15, %cst_12 [1] : vector<256x128xf32> to vector<256xf32>
    %17 = vector.shape_cast %16 : vector<256xf32> to vector<256x1xf32>
    %cst_13 = arith.constant 1.000000e-24 : f32
    %18 = vector.broadcast %cst_13 : f32 to vector<256x1xf32>
    %19 = arith.maximumf %17, %18 : vector<256x1xf32>
    %20 = math.rsqrt %19 : vector<256x1xf32>
    %21 = vector.broadcast %20 : vector<256x1xf32> to vector<256x128xf32>
    %22 = arith.mulf %14, %21 : vector<256x128xf32>
    %23 = vector.shape_cast %22 : vector<256x128xf32> to vector<2x128x128xf32>
    %24 = arith.truncf %23 : vector<2x128x128xf32> to vector<2x128x128xbf16>
    %cst_14 = arith.constant dense<0.000000e+00> : vector<2x128x128xf32>
    %25 = tpu.matmul %24, %24, %cst_14 {dimension_numbers = #tpu.dot_dimension_numbers<[2], [2], [1], [1], [0, 0, 0, 1, 1, 1], [0], [0]>} : vector<2x128x128xbf16>, vector<2x128x128xbf16>, vector<2x128x128xf32> -> vector<2x128x128xf32>
    %c0_15 = arith.constant 0 : index
    %c0_16 = arith.constant 0 : index
    %c0_17 = arith.constant 0 : index
    %26 = vector.load %arg2[%c0_15, %c0_16, %c0_17] : memref<2x128x128xi8, #tpu.memory_space<vmem>>, vector<2x128x128xi8>
    %c0_i8 = arith.constant 0 : i8
    %27 = vector.broadcast %c0_i8 : i8 to vector<2x128x128xi8>
    %28 = arith.cmpi ne, %26, %27 : vector<2x128x128xi8>
    %cst_18 = arith.constant 0.000000e+00 : f32
    %29 = vector.broadcast %cst_18 : f32 to vector<2x128x128xf32>
    %30 = arith.cmpf ogt, %25, %29 : vector<2x128x128xf32>
    %31 = arith.andi %28, %30 : vector<2x128x128xi1>
    %cst_19 = arith.constant 0.000000e+00 : f32
    %32 = vector.broadcast %cst_19 : f32 to vector<2x128x128xf32>
    %33 = arith.select %31, %25, %32 : vector<2x128x128xi1>, vector<2x128x128xf32>
    %cst_20 = arith.constant dense<0.000000e+00> : vector<2x128xf32>
    %34 = vector.multi_reduction <add>, %33, %cst_20 [2] : vector<2x128x128xf32> to vector<2x128xf32>
    %35 = vector.shape_cast %34 : vector<2x128xf32> to vector<2x128x1xf32>
    %cst_21 = arith.constant dense<0.000000e+00> : vector<2x128xf32>
    %36 = vector.multi_reduction <add>, %33, %cst_21 [1] : vector<2x128x128xf32> to vector<2x128xf32>
    %37 = vector.shape_cast %36 : vector<2x128xf32> to vector<2x1x128xf32>
    %cst_22 = arith.constant 0.000000e+00 : f32
    %38 = vector.broadcast %cst_22 : f32 to vector<2x128x1xf32>
    %39 = arith.cmpf ogt, %35, %38 : vector<2x128x1xf32>
    %40 = math.rsqrt %35 : vector<2x128x1xf32>
    %cst_23 = arith.constant 0.000000e+00 : f32
    %41 = vector.broadcast %cst_23 : f32 to vector<2x128x1xf32>
    %42 = arith.select %39, %40, %41 : vector<2x128x1xi1>, vector<2x128x1xf32>
    %cst_24 = arith.constant 0.000000e+00 : f32
    %43 = vector.broadcast %cst_24 : f32 to vector<2x1x128xf32>
    %44 = arith.cmpf ogt, %37, %43 : vector<2x1x128xf32>
    %45 = math.rsqrt %37 : vector<2x1x128xf32>
    %cst_25 = arith.constant 0.000000e+00 : f32
    %46 = vector.broadcast %cst_25 : f32 to vector<2x1x128xf32>
    %47 = arith.select %44, %45, %46 : vector<2x1x128xi1>, vector<2x1x128xf32>
    %48 = vector.broadcast %42 : vector<2x128x1xf32> to vector<2x128x128xf32>
    %49 = arith.mulf %33, %48 : vector<2x128x128xf32>
    %50 = vector.broadcast %47 : vector<2x1x128xf32> to vector<2x128x128xf32>
    %51 = arith.mulf %49, %50 : vector<2x128x128xf32>
    %52 = arith.truncf %51 : vector<2x128x128xf32> to vector<2x128x128xbf16>
    %53 = vector.shape_cast %14 : vector<256x128xf32> to vector<2x128x128xf32>
    %54 = arith.truncf %53 : vector<2x128x128xf32> to vector<2x128x128xbf16>
    %cst_26 = arith.constant dense<0.000000e+00> : vector<2x128x128xf32>
    %55 = tpu.matmul %52, %54, %cst_26 {dimension_numbers = #tpu.dot_dimension_numbers<[2], [1], [1], [2], [0, 0, 0, 1, 1, 2], [0], [0]>} : vector<2x128x128xbf16>, vector<2x128x128xbf16>, vector<2x128x128xf32> -> vector<2x128x128xf32>
    %cst_27 = arith.constant 5.000000e-01 : f32
    %56 = vector.broadcast %cst_27 : f32 to vector<2x128x128xf32>
    %57 = arith.mulf %56, %53 : vector<2x128x128xf32>
    %cst_28 = arith.constant 5.000000e-01 : f32
    %58 = vector.broadcast %cst_28 : f32 to vector<2x128x128xf32>
    %59 = arith.mulf %58, %55 : vector<2x128x128xf32>
    %60 = arith.addf %57, %59 : vector<2x128x128xf32>
    %61 = arith.truncf %60 : vector<2x128x128xf32> to vector<2x128x128xbf16>
    %cst_29 = arith.constant dense<0.000000e+00> : vector<2x128x128xf32>
    %62 = tpu.matmul %52, %61, %cst_29 {dimension_numbers = #tpu.dot_dimension_numbers<[2], [1], [1], [2], [0, 0, 0, 1, 1, 2], [0], [0]>} : vector<2x128x128xbf16>, vector<2x128x128xbf16>, vector<2x128x128xf32> -> vector<2x128x128xf32>
    %cst_30 = arith.constant 5.000000e-01 : f32
    %63 = vector.broadcast %cst_30 : f32 to vector<2x128x128xf32>
    %64 = arith.mulf %63, %60 : vector<2x128x128xf32>
    %cst_31 = arith.constant 5.000000e-01 : f32
    %65 = vector.broadcast %cst_31 : f32 to vector<2x128x128xf32>
    %66 = arith.mulf %65, %62 : vector<2x128x128xf32>
    %67 = arith.addf %64, %66 : vector<2x128x128xf32>
    %c0_32 = arith.constant 0 : index
    %c0_33 = arith.constant 0 : index
    %c0_34 = arith.constant 0 : index
    %68 = vector.load %arg3[%c0_32, %c0_33, %c0_34] : memref<2x128x128xbf16, #tpu.memory_space<vmem>>, vector<2x128x128xbf16>
    %69 = arith.truncf %53 : vector<2x128x128xf32> to vector<2x128x128xbf16>
    %cst_35 = arith.constant dense<0.000000e+00> : vector<2x128x128xf32>
    %70 = tpu.matmul %68, %69, %cst_35 {dimension_numbers = #tpu.dot_dimension_numbers<[2], [1], [1], [2], [0, 0, 0, 1, 1, 2], [0], [0]>} : vector<2x128x128xbf16>, vector<2x128x128xbf16>, vector<2x128x128xf32> -> vector<2x128x128xf32>
    %71 = vector.shape_cast %70 : vector<2x128x128xf32> to vector<256x128xf32>
    %72 = arith.truncf %71 : vector<256x128xf32> to vector<256x128xbf16>
    %73 = vector.shape_cast %67 : vector<2x128x128xf32> to vector<256x128xf32>
    %74 = arith.truncf %73 : vector<256x128xf32> to vector<256x128xbf16>
    %c0_36 = arith.constant 0 : index
    %c0_37 = arith.constant 0 : index
    %75 = vector.load %arg8[%c0_36, %c0_37] : memref<128x128xbf16, #tpu.memory_space<vmem>>, vector<128x128xbf16>
    %cst_38 = arith.constant dense<0.000000e+00> : vector<256x128xf32>
    %76 = tpu.matmul %72, %75, %cst_38 {dimension_numbers = #tpu.dot_dimension_numbers<[1], [0], [0], [1], [0, 0, 1, 1], [], []>} : vector<256x128xbf16>, vector<128x128xbf16>, vector<256x128xf32> -> vector<256x128xf32>
    %c0_39 = arith.constant 0 : index
    %c0_40 = arith.constant 0 : index
    %77 = vector.load %arg9[%c0_39, %c0_40] : memref<128x128xbf16, #tpu.memory_space<vmem>>, vector<128x128xbf16>
    %cst_41 = arith.constant dense<0.000000e+00> : vector<256x128xf32>
    %78 = tpu.matmul %74, %77, %cst_41 {dimension_numbers = #tpu.dot_dimension_numbers<[1], [0], [0], [1], [0, 0, 1, 1], [], []>} : vector<256x128xbf16>, vector<128x128xbf16>, vector<256x128xf32> -> vector<256x128xf32>
    %79 = arith.addf %76, %78 : vector<256x128xf32>
    %c0_42 = arith.constant 0 : index
    %c0_43 = arith.constant 0 : index
    %80 = vector.load %arg10[%c0_42, %c0_43] : memref<1x128xf32, #tpu.memory_space<vmem>>, vector<1x128xf32>
    %81 = vector.broadcast %80 : vector<1x128xf32> to vector<256x128xf32>
    %82 = arith.addf %79, %81 : vector<256x128xf32>
    %83 = arith.truncf %82 : vector<256x128xf32> to vector<256x128xbf16>
    %c0_44 = arith.constant 0 : index
    %c0_45 = arith.constant 0 : index
    %84 = vector.load %arg11[%c0_44, %c0_45] : memref<128x128xbf16, #tpu.memory_space<vmem>>, vector<128x128xbf16>
    %cst_46 = arith.constant dense<0.000000e+00> : vector<256x128xf32>
    %85 = tpu.matmul %83, %84, %cst_46 {dimension_numbers = #tpu.dot_dimension_numbers<[1], [0], [0], [1], [0, 0, 1, 1], [], []>} : vector<256x128xbf16>, vector<128x128xbf16>, vector<256x128xf32> -> vector<256x128xf32>
    %c0_47 = arith.constant 0 : index
    %c0_48 = arith.constant 0 : index
    %86 = vector.load %arg12[%c0_47, %c0_48] : memref<1x128xf32, #tpu.memory_space<vmem>>, vector<1x128xf32>
    %87 = vector.broadcast %86 : vector<1x128xf32> to vector<256x128xf32>
    %88 = arith.addf %85, %87 : vector<256x128xf32>
    %cst_49 = arith.constant 1.000000e-01 : f32
    %89 = vector.broadcast %cst_49 : f32 to vector<256x128xf32>
    %90 = arith.mulf %89, %88 : vector<256x128xf32>
    %91 = arith.addf %82, %90 : vector<256x128xf32>
    %92 = vector.shape_cast %91 : vector<256x128xf32> to vector<2x128x128xf32>
    %c0_50 = arith.constant 0 : index
    %c0_51 = arith.constant 0 : index
    %c0_52 = arith.constant 0 : index
    %93 = vector.load %arg13[%c0_50, %c0_51, %c0_52] : memref<2x128x128xf32, #tpu.memory_space<vmem>>, vector<2x128x128xf32>
    tpu.vector_store %arg13[%c0_50, %c0_51, %c0_52], %92 {strides = array<i32>} : memref<2x128x128xf32, #tpu.memory_space<vmem>>, vector<2x128x128xf32>,
    return
  }
  func.func @transform_0(%arg0: i32) -> (i32, i32, i32) {
    %c0_i32 = arith.constant 0 : i32
    %c0_i32_0 = arith.constant 0 : i32
    %c0_i32_1 = arith.constant 0 : i32
    return %arg0, %c0_i32, %c0_i32_0 : i32, i32, i32
  }
  func.func @transform_1(%arg0: i32) -> (i32, i32, i32) {
    %c0_i32 = arith.constant 0 : i32
    %c0_i32_0 = arith.constant 0 : i32
    %c0_i32_1 = arith.constant 0 : i32
    return %arg0, %c0_i32, %c0_i32_0 : i32, i32, i32
  }
  func.func @transform_2(%arg0: i32) -> (i32, i32, i32) {
    %c0_i32 = arith.constant 0 : i32
    %c0_i32_0 = arith.constant 0 : i32
    %c0_i32_1 = arith.constant 0 : i32
    return %arg0, %c0_i32, %c0_i32_0 : i32, i32, i32
  }
  func.func @transform_3(%arg0: i32) -> (i32, i32) {
    %c0_i32 = arith.constant 0 : i32
    %c0_i32_0 = arith.constant 0 : i32
    %c0_i32_1 = arith.constant 0 : i32
    return %c0_i32, %c0_i32_0 : i32, i32
  }
  func.func @transform_4(%arg0: i32) -> (i32, i32) {
    %c0_i32 = arith.constant 0 : i32
    %c0_i32_0 = arith.constant 0 : i32
    %c0_i32_1 = arith.constant 0 : i32
    return %c0_i32, %c0_i32_0 : i32, i32
  }
  func.func @transform_5(%arg0: i32) -> (i32, i32) {
    %c0_i32 = arith.constant 0 : i32
    %c0_i32_0 = arith.constant 0 : i32
    %c0_i32_1 = arith.constant 0 : i32
    return %c0_i32, %c0_i32_0 : i32, i32
  }
  func.func @transform_6(%arg0: i32) -> (i32, i32) {
    %c0_i32 = arith.constant 0 : i32
    %c0_i32_0 = arith.constant 0 : i32
    %c0_i32_1 = arith.constant 0 : i32
    return %c0_i32, %c0_i32_0 : i32, i32
  }
  func.func @transform_7(%arg0: i32) -> (i32, i32) {
    %c0_i32 = arith.constant 0 : i32
    %c0_i32_0 = arith.constant 0 : i32
    %c0_i32_1 = arith.constant 0 : i32
    return %c0_i32, %c0_i32_0 : i32, i32
  }
  func.func @transform_8(%arg0: i32) -> (i32, i32) {
    %c0_i32 = arith.constant 0 : i32
    %c0_i32_0 = arith.constant 0 : i32
    %c0_i32_1 = arith.constant 0 : i32
    return %c0_i32, %c0_i32_0 : i32, i32
  }
  func.func @transform_9(%arg0: i32) -> (i32, i32) {
    %c0_i32 = arith.constant 0 : i32
    %c0_i32_0 = arith.constant 0 : i32
    %c0_i32_1 = arith.constant 0 : i32
    return %c0_i32, %c0_i32_0 : i32, i32
  }
  func.func @transform_10(%arg0: i32) -> (i32, i32) {
    %c0_i32 = arith.constant 0 : i32
    %c0_i32_0 = arith.constant 0 : i32
    %c0_i32_1 = arith.constant 0 : i32
    return %c0_i32, %c0_i32_0 : i32, i32
  }
  func.func @transform_11(%arg0: i32) -> (i32, i32) {
    %c0_i32 = arith.constant 0 : i32
    %c0_i32_0 = arith.constant 0 : i32
    %c0_i32_1 = arith.constant 0 : i32
    return %c0_i32, %c0_i32_0 : i32, i32
  }
  func.func @transform_12(%arg0: i32) -> (i32, i32, i32) {
    %c0_i32 = arith.constant 0 : i32
    %c0_i32_0 = arith.constant 0 : i32
    %c0_i32_1 = arith.constant 0 : i32
    return %arg0, %c0_i32, %c0_i32_0 : i32, i32, i32
  }
}

</mosaic_0001>

<bundles_post_ra>
// kernel: tpu_custom_call.1
= control target key start
LH: loop header
LB: loop body
LE: loop exit
PB: predicated region body
PF: predicated region fallthrough
CT: control target
= control target key end

     0   :  { %s8453_s0 = inlined_call_operand.hbm [shape: bf16[4,128,128], index: 0, kind: input, shape index: {}]   ;;  %s8454_s1 = inlined_call_operand.hbm [shape: s8[4,128,128], index: 1, kind: input, shape index: {}]   ;;  %s8455_s2 = inlined_call_operand.hbm [shape: bf16[4,128,128], index: 2, kind: input, shape index: {}]   ;;  %s8456_s3 = inlined_call_operand.hbm [shape: bf16[128,128], index: 3, kind: input, shape index: {}]   ;;  %s8457_s4 = inlined_call_operand.vmem [shape: f32[1,128], index: 4, kind: input, shape index: {}]   ;;  %s8458_s5 = inlined_call_operand.hbm [shape: bf16[128,128], index: 5, kind: input, shape index: {}]   ;;  %s8459_s6 = inlined_call_operand.vmem [shape: f32[1,128], index: 6, kind: input, shape index: {}]   ;;  %s8460_s7 = inlined_call_operand.hbm [shape: bf16[128,128], index: 7, kind: input, shape index: {}]   ;;  %s8461_s8 = inlined_call_operand.hbm [shape: bf16[128,128], index: 8, kind: input, shape index: {}]   ;;  %s8462_s9 = inlined_call_operand.vmem [shape: f32[1,128], index: 9, kind: input, shape index: {}]   ;;  %s8463_s10 = inlined_call_operand.hbm [shape: bf16[128,128], index: 10, kind: input, shape index: {}]   ;;  %s8464_s11 = inlined_call_operand.vmem [shape: f32[1,128], index: 11, kind: input, shape index: {}]   ;;  %s8465_s12 = inlined_call_operand.hbm [shape: f32[4,128,128], index: 12, kind: output, shape index: {}]  }
   0x1   :  { %8529 = sst [smem:[#allocation76_spill]] %s8454_s1 }
   0x2   :  { %8530 = sst [smem:[#allocation77_spill]] %s8456_s3 }
   0x3   :  { %8531 = sst [smem:[#allocation78_spill]] %s8458_s5 }
   0x4   :  { %8532 = sst [smem:[#allocation79_spill]] %s8460_s7 }
   0x5   :  { %8533 = sst [smem:[#allocation80_spill]] %s8461_s8 }
   0x6   :  { %8534 = sst [smem:[#allocation81_spill]] %s8463_s10 }
   0x7   :  { %8535 = sst [smem:[#allocation82_spill]] %s8464_s11 }
   0x8   :  { %8536 = sst [smem:[#allocation83_spill]] %s8465_s12 }
   0x9   :  { %17 = vsyncpa [#allocation3], 0 }
   0xa   :  { %19 = vsyncpa [#allocation3 + $0x1], 0 }
   0xb   :  { %20 = vsyncpa [#allocation6], 0 }
   0xc   :  { %22 = vsyncpa [#allocation6 + $0x1], 0 }
   0xd   :  { %23 = vsyncpa [#allocation9], 0 }
   0xe   :  { %24 = vsyncpa [#allocation12], 0 }
   0xf   :  { %25 = vsyncpa [#allocation15], 0 }
  0x10   :  { %26 = vsyncpa [#allocation4], 0 }
  0x11   :  { %28 = vsyncpa [#allocation4 + $0x1], 0  ;;  %s5642_s21 = smov 0   ;;  %s5644_s22 = smov 0  }
  0x12   :  { %s5646_s23 = smov 0   ;;  %s5648_s24 = smov 0  }
  0x13 LB: > { %8537 = sst [smem:[#allocation23_spill]] %s5551_s21  ;;  %s5666_s28 = sadd.s32 4294967295, %s5563_s24   ;;  %s5563_s24 = sphi %s5648_s24, %s8751_s24   ;;  %s5559_s23 = sphi %s5646_s23, %s8753_s23   ;;  %s5555_s22 = sphi %s5644_s22, %s8755_s22   ;;  %s5551_s21 = sphi %s5642_s21, %s8754_s21  }
  0x14   : > { %8538 = sst [smem:[#allocation24_spill]] %s5559_s23  ;;  %p4572_p0 = scmp.ge.s32.totalorder %s5563_s24, 1 }
  0x15   : > { %s8539_s3 = sld [smem:[#allocation77_spill]]  ;;  %p8477_p1 = scmp.eq.s32.totalorder %s5666_s28, 0 }
  0x16   : > { %p332_p2 = scmp.lt.s32.totalorder %s5563_s24, 3  ;;  %s5565_s30 = smov [#allocation8]  }
  0x17   : > { %s345_s13 = sshll.u32 %s5565_s30, 4  ;;  %s8541_s7 = sld [smem:[#allocation79_spill]]  ;;  %s346_s13 = int_to_ptr.vmem [resolvable:$true] %s345_s13 }
  0x18   : > { %p5671_p3 = pnand %p4572_p0, %p332_p2  ;;  %s5566_s18 = smov [#allocation11]  }
  0x19   : > { %s379_s19 = sshll.u32 %s5566_s18, 4  ;;  %s8466_s20 = smov 64   ;;  %s380_s19 = int_to_ptr.vmem [resolvable:$true] %s379_s19 }
  0x1a   : > { %p5019_p4 = pneg %p5671_p3  ;;  %s8468_s25 = smov 4  }
  0x1b   : > { %s343_s27 = sshll.u32 %s8539_s3, 4  ;;  %s4571_s26 = sadd.s32 4294967294, %s5563_s24   ;;  %s344_s27 = int_to_ptr.hbm [resolvable:$true] %s343_s27 }
  0x1c   : > { %p5683_p6 = pnand %p5019_p4, %p8477_p1  ;;  %s5699_s30 = sadd.s32 1, %s5563_s24  }
  0x1d   : > { %s377_s16 = sshll.u32 %s8541_s7, 4  ;;  %8543 = sst [smem:[#allocation25_spill]] %s5699_s30  ;;  %s378_s16 = int_to_ptr.hbm [resolvable:$true] %s377_s16 }
  0x1e   : > { %5022 = dma.hbm_to_vmem [thread:$0]  (!%p5683_p6), %s344_s27, 1024, %s346_s13, [#allocation9], %s8466_s20, %s8466_s20, %s8468_s25  }
  0x1f   : > { %5028 = dma.hbm_to_vmem [thread:$0]  (!%p5683_p6), %s378_s16, 1024, %s380_s19, [#allocation12], %s8466_s20, %s8466_s20, %s8468_s25  }
  0x20   : > { %s38_s14 = ssub.s32 %s5563_s24, %s5699_s30  ;;  %s41_s15 = sadd.s32 1, %s5559_s23 }
  0x21   : > { %p39_p7 = scmp.eq.s32.totalorder %s38_s14, 0  ;;  %p48_p8 = scmp.ne.s32.totalorder %s5559_s23, %s5555_s22 }
  0x22   : > { %p49_p9 = scmp.eq.s32.totalorder %s5563_s24, 0  ;;  %p54_p10 = scmp.ne.s32.totalorder %s5555_s22, %s5551_s21 }
  0x23   : > { %s5710_s27 = scalar_select %p39_p7, %s5559_s23, %s41_s15  }
  0x24   : > { %p50_p11 = por %p49_p9, %p48_p8  ;;  %p5714_p12 = por %p8477_p1, %p54_p10 }
  0x25   : > { %8544 = sst [smem:[#allocation26_spill]] %s5710_s27  ;;  %p319_p13 = scmp.eq.s32.totalorder %s5666_s28, 1 }
  0x26   : > { %p325_p0 = scmp.eq.s32.totalorder %s4571_s26, 1  ;;  %p5054_p2 = scmp.lt.s32.totalorder %s5563_s24, 2 }
  0x27   : > { %s5721_s16 = sand.u32 1, %s5559_s23   ;;  %p5723_p4 = por %p319_p13, %p48_p8 }
  0x28   : > { %p5727_p5 = por %p325_p0, %p54_p10  ;;  %p5731_p7 = pnand %p5054_p2, %p50_p11 }
  0x29   : > { %s8546_s18 = scalar_select %p5723_p4, 1, 0 }
  0x2a   : > { %s8548_s19 = scalar_select %p5727_p5, 1, 0 }
  0x2b   : > { %8547 = sst [smem:[#allocation27_spill]] %s8546_s18  ;;  %s450_s15 = sand.u32 1, %s5563_s24  }
  0x2c   : > { %8549 = sst [smem:[#allocation28_spill]] %s8548_s19  ;;  %s4583_s26 = sshll.u32 %s5721_s16, 6 }
  0x2d   : > { %s4898_s20 = sshll.u32 %s5563_s24, 6  ;;  %s454_s25 = scalar_lea.vmem [#allocation5], %s4583_s26 }
  0x2e   : > { %s463_s3 = sshll.u32 %s454_s25, 4  ;;  %s8551_s1 = sld [smem:[#allocation76_spill]]  ;;  %s464_s3 = int_to_ptr.vmem [resolvable:$true] %s463_s3 }
  0x2f   : > { %s5741_s21 = scalar_lea.sflag [#allocation6], %s450_s15  ;;  %p5305_p9 = pneg %p5731_p7 }
  0x34   : > { %s460_s23 = scalar_lea.hbm %s8551_s1, %s4898_s20  ;;  %s5308_s7 = scalar_lea.hbm %s8551_s1, 128 }
  0x35   : > { %s461_s30 = sshll.u32 %s460_s23, 4  ;;  %s462_s30 = int_to_ptr.hbm [resolvable:$true] %s461_s30 }
  0x36   : > { %s5301_s19 = sshra.s32 %s462_s30, 4  ;;  %s5302_s19 = int_to_ptr.hbm [resolvable:$true] %s5301_s19 }
  0x37   : > { %s5303_s18 = scalar_lea.hbm %s5302_s19, 64  ;;  %p5309_p13 = scmp.lt.s32.totalorder %s5302_s19, %s8551_s1 }
  0x38   : > { %p5304_p8 = scmp.ne.s32.totalorder %s5302_s19, %s5303_s18  ;;  %p5310_p0 = scmp.lt.s32.totalorder %s5308_s7, %s5303_s18 }
  0x3a   : > { %p5306_p10 = pnand %p5305_p9, %p5304_p8  ;;  %p5311_p2 = por %p5310_p0, %p5309_p13 }
  0x3c   : > { %p5307_p11 = pneg %p5306_p10 }
  0x3e   : > { %p5312_p1 = pnand %p5311_p2, %p5307_p11 }
  0x40   : > { %5315 = shalt.err (!%p5312_p1)
}
  0x41   : > { %s5569_s23 = smov 128   ;;  %s5570_s15 = smov 8  }
  0x42   : > { %5041 = dma.hbm_to_vmem [thread:$0]  (!%p5731_p7), %s462_s30, 1024, %s464_s3, %s5741_s21, %s5569_s23, %s5569_s23, %s5570_s15  }
  0x43   : > { %s8552_s5 = sld [smem:[#allocation78_spill]]  ;;  %s5571_s26 = smov [#allocation10]  }
  0x44   : > { %s362_s18 = sshll.u32 %s5571_s26, 4  ;;  %s8553_s8 = sld [smem:[#allocation80_spill]]  ;;  %s363_s18 = int_to_ptr.vmem [resolvable:$true] %s362_s18 }
  0x45   : > { %s8554_s27 = smov 4   ;;  %s8555_s1 = smov 64  }
  0x46   : > { %s5572_s3 = smov [#allocation13]   ;;  %s8556_s10 = sld [smem:[#allocation81_spill]] }
  0x47   : > { %s393_s11 = sshll.u32 %s5572_s3, 4  ;;  %s5573_s15 = smov [#allocation14]   ;;  %s394_s11 = int_to_ptr.vmem [resolvable:$true] %s393_s11 }
  0x48   : > { %s410_s26 = sshll.u32 %s5573_s15, 4  ;;  %s4579_s19 = sshll.u32 %s5721_s16, 7  ;;  %s411_s26 = int_to_ptr.vmem [resolvable:$true] %s410_s26 }
  0x49   : > { %s360_s25 = sshll.u32 %s8552_s5, 4  ;;  %s428_s17 = scalar_lea.sflag [#allocation3], %s5721_s16  ;;  %s361_s25 = int_to_ptr.hbm [resolvable:$true] %s360_s25 }
  0x4a   : > { %s391_s20 = sshll.u32 %s8553_s8, 4  ;;  %s392_s20 = int_to_ptr.hbm [resolvable:$true] %s391_s20 }
  0x4b   : > { %5025 = dma.hbm_to_vmem [thread:$0]  (!%p5683_p6), %s361_s25, 1024, %s363_s18, [#allocation9], %s8555_s1, %s8555_s1, %s8554_s27  }
  0x4c   : > { %s408_s23 = sshll.u32 %s8556_s10, 4  ;;  %s4896_s25 = sshll.u32 %s5563_s24, 7  ;;  %s409_s23 = int_to_ptr.hbm [resolvable:$true] %s408_s23 }
  0x4d   : > { %5031 = dma.hbm_to_vmem [thread:$0]  (!%p5683_p6), %s392_s20, 1024, %s394_s11, [#allocation12], %s8555_s1, %s8555_s1, %s8554_s27  }
  0x4e   : > { %5034 = dma.hbm_to_vmem [thread:$0]  (!%p5683_p6), %s409_s23, 1024, %s411_s26, [#allocation15], %s8555_s1, %s8555_s1, %s8554_s27  }
  0x4f   : > { %s431_s18 = scalar_lea.vmem [#allocation2], %s4579_s19  ;;  %s437_s30 = scalar_lea.hbm %s8453_s0, %s4896_s25 }
  0x50   : > { %s440_s7 = sshll.u32 %s431_s18, 4  ;;  %s438_s20 = sshll.u32 %s437_s30, 4  ;;  %s441_s7 = int_to_ptr.vmem [resolvable:$true] %s440_s7  ;;  %s439_s20 = int_to_ptr.hbm [resolvable:$true] %s438_s20 }
  0x51   : > { %s483_s5 = scalar_lea.hbm %s8455_s2, %s4896_s25  ;;  %s5421_s8 = sshra.s32 %s439_s20, 4  ;;  %s5422_s8 = int_to_ptr.hbm [resolvable:$true] %s5421_s8 }
  0x52   : > { %s5423_s10 = scalar_lea.hbm %s5422_s8, 128  ;;  %s5428_s18 = scalar_lea.hbm %s8453_s0, 256 }
  0x53   : > { %p5424_p1 = scmp.ne.s32.totalorder %s5422_s8, %s5423_s10  ;;  %p5429_p10 = scmp.lt.s32.totalorder %s5422_s8, %s8453_s0 }
  0x54   : > { %p5430_p11 = scmp.lt.s32.totalorder %s5428_s18, %s5423_s10 }
  0x55   : > { %p5426_p6 = pnand %p5424_p1, %p5305_p9 }
  0x56   : > { %p5431_p13 = por %p5430_p11, %p5429_p10 }
  0x57   : > { %p5427_p8 = pneg %p5426_p6 }
  0x59   : > { %p5432_p0 = pnand %p5431_p13, %p5427_p8 }
  0x5b   : > { %5435 = shalt.err (!%p5432_p0)
}
  0x5c   : > { %5038 = dma.hbm_to_vmem [thread:$0]  (!%p5731_p7), %s439_s20, 2048, %s441_s7, %s428_s17, %s8555_s1, %s8555_s1, %s8554_s27  }
  0x5d   : > { %s484_s25 = sshll.u32 %s483_s5, 4  ;;  %s477_s30 = scalar_lea.vmem [#allocation7], %s4579_s19  ;;  %s485_s25 = int_to_ptr.hbm [resolvable:$true] %s484_s25 }
  0x5e   : > { %s486_s11 = sshll.u32 %s477_s30, 4  ;;  %s5451_s15 = sshra.s32 %s485_s25, 4  ;;  %s487_s11 = int_to_ptr.vmem [resolvable:$true] %s486_s11  ;;  %s5452_s15 = int_to_ptr.hbm [resolvable:$true] %s5451_s15 }
  0x5f   : > { %s5453_s8 = scalar_lea.hbm %s5452_s15, 128  ;;  %s5458_s26 = scalar_lea.hbm %s8455_s2, 256 }
  0x60   : > { %p5454_p2 = scmp.ne.s32.totalorder %s5452_s15, %s5453_s8  ;;  %p5459_p8 = scmp.lt.s32.totalorder %s5452_s15, %s8455_s2 }
  0x61   : > { %p5460_p10 = scmp.lt.s32.totalorder %s5458_s26, %s5453_s8 }
  0x62   : > { %p5456_p1 = pnand %p5454_p2, %p5305_p9 }
  0x63   : > { %p5461_p11 = por %p5460_p10, %p5459_p8 }
  0x64   : > { %p5457_p6 = pneg %p5456_p1 }
  0x66   : > { %p5462_p13 = pnand %p5461_p11, %p5457_p6 }
  0x68   : > { %5465 = shalt.err (!%p5462_p13)
}
  0x69   : > { %5044 = dma.hbm_to_vmem [thread:$0]  (!%p5731_p7), %s485_s25, 2048, %s487_s11, %s5741_s21, %s8555_s1, %s8555_s1, %s8554_s27  }
  0x6a   : > { %498 = sbr.rel (%p5671_p3) target bundleno = 2176 (0x880), region = 68 }
  0x6f   : > { %s5826_s5 = sand.u32 1, %s5555_s22  }
  0x70   : > { %s4592_s16 = sshll.u32 %s5826_s5, 7  ;;  %s501_s19 = scalar_lea.sflag [#allocation3], %s5826_s5 }
  0x71   : > { %s5830_s20 = scalar_lea.vmem [#allocation2], %s4592_s16 }
  0x72   : > { %5526 = dma.done.wait (%p5714_p12), %s501_s19, 2048  }
  0x73   : > { %5528 = vsyncadd (%p5714_p12), %s501_s19, 4294965248  ;;  %s510_s1 = sand.u32 1, %s5666_s28   ;;  %s4593_s21 = sshll.u32 %s5826_s5, 6 }
  0x74   : > { %s511_s29 = scalar_lea.sflag [#allocation6], %s510_s1  ;;  %s5838_s14 = scalar_lea.vmem [#allocation5], %s4593_s21 }
  0x75   : > { %5530 = dma.done.wait (%p5714_p12), %s511_s29, 3072  }
  0x76   : > { %5532 = vsyncadd (%p5714_p12), %s511_s29, 4294964224  ;;  %s5844_s27 = scalar_lea.vmem [#allocation7], %s4592_s16  ;;  %p8557_p3 = scmp.eq.s32.totalorder %s5666_s28, 0 }
  0x78   : > { %5534 = dma.done.wait (%p8557_p3), [#allocation9], 2048   ;;  %p8558_p7 = pmov %p8557_p3 }
  0x79   : > { %p8559_p9 = pmov %p8557_p3 }
  0x7a   : > { %5536 = vsyncadd (%p8558_p7), [#allocation9], 4294965248 }
  0x7b   : > { %5538 = dma.done.wait (%p8559_p9), [#allocation12], 2048   ;;  %p8560_p0 = pmov %p8557_p3 }
  0x7d   : > { %5540 = vsyncadd (%p8560_p0), [#allocation12], 4294965248  ;;  %p8561_p2 = pmov %p8560_p0 }
  0x7e   : > { %p8562_p1 = pmov %p8560_p0 }
  0x7f   : > { %5542 = dma.done.wait (%p8561_p2), [#allocation15], 1024  }
  0x80   : > { %5544 = vsyncadd (%p8562_p1), [#allocation15], 4294966272  ;;  %v4924_v0 = vld [vmem:[#allocation8 + $0x38] sm:$0xff]  ;;  %v4923_v1 = vld [vmem:[#allocation8 + $0x30] sm:$0xff]  ;;  %s8745_s8 = sld [smem:[#allocation82_spill]]  ;;  %s4600_s10 = sshll.u32 %s5826_s5, 8 }
  0x81   : > { %803 = vmatpush.bf16.msra.mxu0 %v4924_v0  ;;  %4975 = vmatpush.bf16.msra.mxu2 %v4924_v0  ;;  %v4922_v2 = vld [vmem:[#allocation8 + $0x28] sm:$0xff]  ;;  %v4921_v3 = vld [vmem:[#allocation8 + $0x20] sm:$0xff]  ;;  %v4920_v4 = vld [vmem:[#allocation8 + $0x18] sm:$0xff]  ;;  %s8267_s23 = scalar_lea.vmem [#allocation16], %s4600_s10  ;;  %s4974_s26 = sshll.u32 %s5666_s28, 8 }
  0x82   : > { %v4919_v5 = vld [vmem:[#allocation8 + $0x10] sm:$0xff]  ;;  %v4918_v6 = vld [vmem:[#allocation8 + $0x8] sm:$0xff]  ;;  %v4917_v7 = vld [vmem:[#allocation8] sm:$0xff]  ;;  %s8746_s16 = sld [smem:[#allocation83_spill]]  ;;  %s4404_s1 = sshll.u32 %s8267_s23, 4  ;;  %s4405_s1 = int_to_ptr.vmem [resolvable:$true] %s4404_s1 }
  0x83   : > { %v4901_v8 = vld [vmem:[%s5830_s20] sm:$0xff]  ;;  %v4902_v9 = vld [vmem:[%s5830_s20 + $0x8] sm:$0xff]  ;;  %v4903_v10 = vld [vmem:[%s5830_s20 + $0x10] sm:$0xff]  ;;  %s4391_s28 = scalar_lea.sflag [#allocation4], %s5826_s5 }
  0x84   : > { %v4904_v11 = vld [vmem:[%s5830_s20 + $0x18] sm:$0xff]  ;;  %v4905_v12 = vld [vmem:[%s5830_s20 + $0x20] sm:$0xff]  ;;  %v4906_v14 = vld [vmem:[%s5830_s20 + $0x28] sm:$0xff] }
  0x85   : > { %804 = vmatpush.bf16.msra.mxu0 %v4923_v1  ;;  %4976 = vmatpush.bf16.msra.mxu2 %v4923_v1  ;;  %v4932_v13 = vld [vmem:[#allocation10 + $0x38] sm:$0xff]  ;;  %v4931_v15 = vld [vmem:[#allocation10 + $0x30] sm:$0xff]  ;;  %v4930_v16 = vld [vmem:[#allocation10 + $0x28] sm:$0xff] }
  0x86   : > { %1008 = vmatpush.bf16.msra.mxu1 %v4932_v13  ;;  %4983 = vmatpush.bf16.msra.mxu3 %v4932_v13  ;;  %v4929_v17 = vld [vmem:[#allocation10 + $0x20] sm:$0xff]  ;;  %v4928_v18 = vld [vmem:[#allocation10 + $0x18] sm:$0xff]  ;;  %v4907_v19 = vld [vmem:[%s5830_s20 + $0x30] sm:$0xff] }
  0x87   : > { %v4927_v20 = vld [vmem:[#allocation10 + $0x10] sm:$0xff]  ;;  %v4926_v21 = vld [vmem:[#allocation10 + $0x8] sm:$0xff]  ;;  %v4925_v22 = vld [vmem:[#allocation10] sm:$0xff] }
  0x88   : > { %v4908_v23 = vld [vmem:[%s5830_s20 + $0x38] sm:$0xff]  ;;  %v4909_v24 = vld [vmem:[%s5830_s20 + $0x40] sm:$0xff]  ;;  %v4910_v33 = vld [vmem:[%s5830_s20 + $0x48] sm:$0xff]  ;;  %s4403_s19 = scalar_lea.hbm %s8746_s16, %s4974_s26  ;;  %s5501_s17 = scalar_lea.hbm %s8746_s16, 512 }
  0x89   : > { %805 = vmatpush.bf16.msra.mxu0 %v4922_v2  ;;  %4977 = vmatpush.bf16.msra.mxu2 %v4922_v2  ;;  %v5870_v26 = vld [vmem:[%s8457_s4] ss:$0 sm:$0xff]  ;;  %v4911_v41 = vld [vmem:[%s5830_s20 + $0x50] sm:$0xff]  ;;  %v4914_v43 = vld [vmem:[%s5830_s20 + $0x68] sm:$0xff]  ;;  %s4406_s21 = sshll.u32 %s4403_s19, 4  ;;  %s4407_s21 = int_to_ptr.hbm [resolvable:$true] %s4406_s21 }
  0x8a   : > { %1009 = vmatpush.bf16.msra.mxu1 %v4931_v15  ;;  %4984 = vmatpush.bf16.msra.mxu3 %v4931_v15  ;;  %v4912_v50 = vld [vmem:[%s5830_s20 + $0x58] sm:$0xff]  ;;  %v4915_v52 = vld [vmem:[%s5830_s20 + $0x70] sm:$0xff]  ;;  %v4913_v59 = vld [vmem:[%s5830_s20 + $0x60] sm:$0xff]  ;;  %s5495_s29 = sshra.s32 %s4407_s21, 4  ;;  %s5496_s29 = int_to_ptr.hbm [resolvable:$true] %s5495_s29 }
  0x8b   : > { %v4916_v61 = vld [vmem:[%s5830_s20 + $0x78] sm:$0xff]  ;;  %p5502_p10 = scmp.lt.s32.totalorder %s5496_s29, %s8746_s16 }
  0x8d   : > { %806 = vmatpush.bf16.msra.mxu0 %v4921_v3  ;;  %4978 = vmatpush.bf16.msra.mxu2 %v4921_v3 }
  0x8e   : > { %1010 = vmatpush.bf16.msra.mxu1 %v4930_v16  ;;  %4985 = vmatpush.bf16.msra.mxu3 %v4930_v16 }
  0x91   : > { %807 = vmatpush.bf16.msra.mxu0 %v4920_v4  ;;  %4979 = vmatpush.bf16.msra.mxu2 %v4920_v4 }
  0x92   : > { %1011 = vmatpush.bf16.msra.mxu1 %v4929_v17  ;;  %4986 = vmatpush.bf16.msra.mxu3 %v4929_v17 }
  0x95   : > { %808 = vmatpush.bf16.msra.mxu0 %v4919_v5  ;;  %4980 = vmatpush.bf16.msra.mxu2 %v4919_v5 }
  0x96   : > { %1012 = vmatpush.bf16.msra.mxu1 %v4928_v18  ;;  %4987 = vmatpush.bf16.msra.mxu3 %v4928_v18 }
  0x99   : > { %809 = vmatpush.bf16.msra.mxu0 %v4918_v6  ;;  %4981 = vmatpush.bf16.msra.mxu2 %v4918_v6 }
  0x9a   : > { %1013 = vmatpush.bf16.msra.mxu1 %v4927_v20  ;;  %4988 = vmatpush.bf16.msra.mxu3 %v4927_v20 }
  0x9d   : > { %810 = vmatpush.bf16.msra.mxu0 %v4917_v7  ;;  %4982 = vmatpush.bf16.msra.mxu2 %v4917_v7 }
  0x9e   : > { %1014 = vmatpush.bf16.msra.mxu1 %v4926_v21  ;;  %4989 = vmatpush.bf16.msra.mxu3 %v4926_v21 }
  0xa0   : > { %811 = vmatmul.bf16.vlgmr.msra.gmra.mxu0 %v4901_v8  ;;  %876 = vmatmul.bf16.vlgmr.msra.gmra.mxu2 %v4914_v43 }
  0xa2   : > { %1015 = vmatpush.bf16.msra.mxu1 %v4925_v22  ;;  %4990 = vmatpush.bf16.msra.mxu3 %v4925_v22 }
  0xb0   : > { %816 = vmatmul.bf16.gmra.mxu0 %v4902_v9  ;;  %881 = vmatmul.bf16.gmra.mxu2 %v4915_v52 }
  0xc0   : > { %821 = vmatmul.bf16.gmra.mxu0 %v4903_v10  ;;  %886 = vmatmul.bf16.gmra.mxu2 %v4916_v61 }
  0xd0   : > { %826 = vmatmul.bf16.gmra.mxu0 %v4904_v11 }
  0xe0   : > { %831 = vmatmul.bf16.gmra.mxu0 %v4905_v12 }
  0xf0   : > { %836 = vmatmul.bf16.gmra.mxu0 %v4906_v14 }
 0x100   : > { %841 = vmatmul.bf16.gmra.mxu0 %v4907_v19 }
 0x110   : > { %846 = vmatmul.bf16.gmra.mxu0 %v4908_v23 }
 0x11d   : > { %v812_v25 = vpop.f32.mrf.mxu0 }
 0x11e   : > { %v813_v27 = vadd.f32 %v5870_v26, %v812_v25 }
 0x120   : > { %851 = vmatmul.bf16.gmra.mxu0 %v4909_v24  ;;  %v892_v30 = vmax.f32 %v813_v27, 0.0 }
 0x125   : > { %v814_v28 = vpop.f32.mrf.mxu0 }
 0x126   : > { %v815_v29 = vadd.f32 %v5870_v26, %v814_v28 }
 0x128   : > { %v893_v31 = vmax.f32 %v815_v29, 0.0 }
 0x12a   : > { %v924_v32 = vpack.c.bf16 %v893_v31, %v892_v30 }
 0x12c   : > { %1016 = vmatmul.bf16.vlgmr.msra.gmra.mxu1 %v924_v32 }
 0x12d   : > { %v817_v34 = vpop.f32.mrf.mxu0 }
 0x12e   : > { %v818_v35 = vadd.f32 %v5870_v26, %v817_v34 }
 0x130   : > { %856 = vmatmul.bf16.gmra.mxu0 %v4910_v33  ;;  %v894_v38 = vmax.f32 %v818_v35, 0.0 }
 0x135   : > { %v819_v36 = vpop.f32.mrf.mxu0 }
 0x136   : > { %v820_v37 = vadd.f32 %v5870_v26, %v819_v36 }
 0x138   : > { %v895_v39 = vmax.f32 %v820_v37, 0.0 }
 0x13a   : > { %v925_v40 = vpack.c.bf16 %v895_v39, %v894_v38 }
 0x13c   : > { %1021 = vmatmul.bf16.gmra.mxu1 %v925_v40 }
 0x13d   : > { %v822_v42 = vpop.f32.mrf.mxu0 }
 0x13e   : > { %v823_v44 = vadd.f32 %v5870_v26, %v822_v42 }
 0x140   : > { %861 = vmatmul.bf16.gmra.mxu0 %v4911_v41  ;;  %v896_v47 = vmax.f32 %v823_v44, 0.0 }
 0x145   : > { %v824_v45 = vpop.f32.mrf.mxu0 }
 0x146   : > { %v825_v46 = vadd.f32 %v5870_v26, %v824_v45 }
 0x148   : > { %v897_v48 = vmax.f32 %v825_v46, 0.0 }
 0x14a   : > { %v926_v49 = vpack.c.bf16 %v897_v48, %v896_v47 }
 0x14c   : > { %1026 = vmatmul.bf16.gmra.mxu1 %v926_v49 }
 0x14d   : > { %v827_v51 = vpop.f32.mrf.mxu0 }
 0x14e   : > { %v828_v53 = vadd.f32 %v5870_v26, %v827_v51 }
 0x150   : > { %866 = vmatmul.bf16.gmra.mxu0 %v4912_v50  ;;  %v898_v56 = vmax.f32 %v828_v53, 0.0 }
 0x155   : > { %v829_v54 = vpop.f32.mrf.mxu0 }
 0x156   : > { %v830_v55 = vadd.f32 %v5870_v26, %v829_v54 }
 0x158   : > { %v899_v57 = vmax.f32 %v830_v55, 0.0 }
 0x15a   : > { %v927_v58 = vpack.c.bf16 %v899_v57, %v898_v56 }
 0x15c   : > { %1031 = vmatmul.bf16.gmra.mxu1 %v927_v58 }
 0x15d   : > { %v832_v60 = vpop.f32.mrf.mxu0 }
 0x15e   : > { %v833_v62 = vadd.f32 %v5870_v26, %v832_v60 }
 0x160   : > { %871 = vmatmul.bf16.gmra.mxu0 %v4913_v59  ;;  %v900_v1 = vmax.f32 %v833_v62, 0.0  ;;  %v877_v62 = vpop.f32.mrf.mxu2 }
 0x165   : > { %v834_v63 = vpop.f32.mrf.mxu0 }
 0x166   : > { %v835_v0 = vadd.f32 %v5870_v26, %v834_v63 }
 0x168   : > { %v901_v2 = vmax.f32 %v835_v0, 0.0 }
 0x16a   : > { %v928_v3 = vpack.c.bf16 %v901_v2, %v900_v1 }
 0x16c   : > { %1036 = vmatmul.bf16.gmra.mxu1 %v928_v3  ;;  %v879_v3 = vpop.f32.mrf.mxu2 }
 0x16d   : > { %v837_v4 = vpop.f32.mrf.mxu0 }
 0x16e   : > { %v838_v5 = vadd.f32 %v5870_v26, %v837_v4 }
 0x170   : > { %v902_v8 = vmax.f32 %v838_v5, 0.0 }
 0x175   : > { %v839_v6 = vpop.f32.mrf.mxu0 }
 0x176   : > { %v840_v7 = vadd.f32 %v5870_v26, %v839_v6 }
 0x178   : > { %v903_v9 = vmax.f32 %v840_v7, 0.0 }
 0x17a   : > { %v929_v10 = vpack.c.bf16 %v903_v9, %v902_v8  ;;  %v882_v9 = vpop.f32.mrf.mxu2 }
 0x17c   : > { %1041 = vmatmul.bf16.gmra.mxu1 %v929_v10  ;;  %v878_v10 = vadd.f32 %v5870_v26, %v877_v62 }
 0x17d   : > { %v842_v11 = vpop.f32.mrf.mxu0 }
 0x17e   : > { %v843_v12 = vadd.f32 %v5870_v26, %v842_v11  ;;  %v880_v11 = vadd.f32 %v5870_v26, %v879_v3 }
 0x180   : > { %v904_v15 = vmax.f32 %v843_v12, 0.0  ;;  %v918_v12 = vmax.f32 %v878_v10, 0.0 }
 0x185   : > { %v844_v13 = vpop.f32.mrf.mxu0 }
 0x186   : > { %v845_v14 = vadd.f32 %v5870_v26, %v844_v13  ;;  %v919_v13 = vmax.f32 %v880_v11, 0.0 }
 0x188   : > { %v905_v16 = vmax.f32 %v845_v14, 0.0  ;;  %v5924_v14 = vld [vmem:[%s8459_s6] ss:$0 sm:$0xff] }
 0x18a   : > { %v930_v17 = vpack.c.bf16 %v905_v16, %v904_v15 }
 0x18c   : > { %1046 = vmatmul.bf16.gmra.mxu1 %v930_v17  ;;  %v937_v17 = vpack.c.bf16 %v919_v13, %v918_v12 }
 0x18d   : > { %v847_v18 = vpop.f32.mrf.mxu0 }
 0x18e   : > { %v848_v19 = vadd.f32 %v5870_v26, %v847_v18  ;;  %v884_v18 = vpop.f32.mrf.mxu2 }
 0x190   : > { %v906_v22 = vmax.f32 %v848_v19, 0.0 }
 0x195   : > { %v849_v20 = vpop.f32.mrf.mxu0 }
 0x196   : > { %v850_v21 = vadd.f32 %v5870_v26, %v849_v20 }
 0x198   : > { %v907_v23 = vmax.f32 %v850_v21, 0.0  ;;  %v883_v21 = vadd.f32 %v5870_v26, %v882_v9 }
 0x19a   : > { %v931_v24 = vpack.c.bf16 %v907_v23, %v906_v22  ;;  %v885_v22 = vadd.f32 %v5870_v26, %v884_v18 }
 0x19c   : > { %1051 = vmatmul.bf16.gmra.mxu1 %v931_v24 }
 0x19d   : > { %v852_v25 = vpop.f32.mrf.mxu0 }
 0x19e   : > { %v853_v27 = vadd.f32 %v5870_v26, %v852_v25  ;;  %v887_v25 = vpop.f32.mrf.mxu2 }
 0x1a0   : > { %v908_v30 = vmax.f32 %v853_v27, 0.0  ;;  %v920_v27 = vmax.f32 %v883_v21, 0.0 }
 0x1a5   : > { %v854_v28 = vpop.f32.mrf.mxu0 }
 0x1a6   : > { %v855_v29 = vadd.f32 %v5870_v26, %v854_v28  ;;  %v921_v28 = vmax.f32 %v885_v22, 0.0 }
 0x1a8   : > { %v909_v31 = vmax.f32 %v855_v29, 0.0 }
 0x1a9   : > { %v5897_v32 = vpop.f32.mrf.mxu1 }
 0x1aa   : > { %v932_v33 = vpack.c.bf16 %v909_v31, %v908_v30 }
 0x1ac   : > { %1056 = vmatmul.bf16.gmra.mxu1 %v932_v33  ;;  %v938_v33 = vpack.c.bf16 %v921_v28, %v920_v27 }
 0x1ad   : > { %v857_v34 = vpop.f32.mrf.mxu0 }
 0x1ae   : > { %v858_v36 = vadd.f32 %v5870_v26, %v857_v34 }
 0x1b0   : > { %v910_v39 = vmax.f32 %v858_v36, 0.0 }
 0x1b1   : > { %v5899_v35 = vpop.f32.mrf.mxu1 }
 0x1b5   : > { %v859_v37 = vpop.f32.mrf.mxu0 }
 0x1b6   : > { %v860_v38 = vadd.f32 %v5870_v26, %v859_v37  ;;  %v889_v37 = vpop.f32.mrf.mxu2 }
 0x1b8   : > { %v911_v40 = vmax.f32 %v860_v38, 0.0 }
 0x1b9   : > { %v5903_v41 = vpop.f32.mrf.mxu1 }
 0x1ba   : > { %v933_v42 = vpack.c.bf16 %v911_v40, %v910_v39  ;;  %v888_v40 = vadd.f32 %v5870_v26, %v887_v25 }
 0x1bc   : > { %1061 = vmatmul.bf16.gmra.mxu1 %v933_v42  ;;  %v890_v42 = vadd.f32 %v5870_v26, %v889_v37 }
 0x1bd   : > { %v862_v43 = vpop.f32.mrf.mxu0 }
 0x1be   : > { %v863_v45 = vadd.f32 %v5870_v26, %v862_v43 }
 0x1c0   : > { %v912_v48 = vmax.f32 %v863_v45, 0.0 }
 0x1c1   : > { %v5905_v44 = vpop.f32.mrf.mxu1 }
 0x1c5   : > { %v864_v46 = vpop.f32.mrf.mxu0 }
 0x1c6   : > { %v865_v47 = vadd.f32 %v5870_v26, %v864_v46 }
 0x1c8   : > { %v913_v49 = vmax.f32 %v865_v47, 0.0  ;;  %v922_v47 = vmax.f32 %v888_v40, 0.0 }
 0x1c9   : > { %v5909_v50 = vpop.f32.mrf.mxu1 }
 0x1ca   : > { %v934_v51 = vpack.c.bf16 %v913_v49, %v912_v48  ;;  %v923_v48 = vmax.f32 %v890_v42, 0.0 }
 0x1cc   : > { %1066 = vmatmul.bf16.gmra.mxu1 %v934_v51  ;;  %v5965_v51 = vadd.f32 %v5924_v14, %v5897_v32  ;;  %v5978_v32 = vadd.f32 %v5924_v14, %v5909_v50 }
 0x1cd   : > { %v867_v52 = vpop.f32.mrf.mxu0 }
 0x1ce   : > { %v868_v54 = vadd.f32 %v5870_v26, %v867_v52 }
 0x1d0   : > { %v914_v57 = vmax.f32 %v868_v54, 0.0 }
 0x1d1   : > { %v1029_v53 = vpop.f32.mrf.mxu1 }
 0x1d2   : > { %v5949_v38 = vadd.f32 %v5924_v14, %v1029_v53  ;;  %v939_v53 = vpack.c.bf16 %v923_v48, %v922_v47 }
 0x1d4   : > { %v1102_v46 = vmul.f32 %v5949_v38, %v5949_v38  ;;  %v2786_v28 = vpack.c.bf16 %v5949_v38, %v5949_v38 }
 0x1d5   : > { %v869_v55 = vpop.f32.mrf.mxu0 }
 0x1d6   : > { %v870_v56 = vadd.f32 %v5870_v26, %v869_v55 }
 0x1d8   : > { %v915_v58 = vmax.f32 %v870_v56, 0.0  ;;  %v1097_v56 = vmul.f32 %v5965_v51, %v5965_v51 }
 0x1d9   : > { %v1032_v59 = vpop.f32.mrf.mxu1 }
 0x1da   : > { %v935_v60 = vpack.c.bf16 %v915_v58, %v914_v57  ;;  %v5939_v29 = vadd.f32 %v5924_v14, %v1032_v59 }
 0x1dc   : > { %1071 = vmatmul.bf16.gmra.mxu1 %v935_v60  ;;  %8565 = vst [vmem:[#allocation31_spill] sm:$0xff] %v5939_v29  ;;  %v1103_v36 = vmul.f32 %v5939_v29, %v5939_v29  ;;  %v2787_v22 = vpack.c.bf16 %v5939_v29, %v5939_v29 }
 0x1dd   : > { %v872_v61 = vpop.f32.mrf.mxu0 }
 0x1de   : > { %v873_v0 = vadd.f32 %v5870_v26, %v872_v61  ;;  %v1101_v61 = vmul.f32 %v5978_v32, %v5978_v32 }
 0x1e0   : > { %v916_v4 = vmax.f32 %v873_v0, 0.0 }
 0x1e1   : > { %v5913_v63 = vpop.f32.mrf.mxu1 }
 0x1e2   : > { %v6009_v11 = vadd.f32 %v5924_v14, %v5913_v63 }
 0x1e4   : > { %8572 = vst [vmem:[#allocation38_spill] sm:$0xff] %v6009_v11  ;;  %v1104_v25 = vmul.f32 %v6009_v11, %v6009_v11 }
 0x1e5   : > { %v874_v1 = vpop.f32.mrf.mxu0 }
 0x1e6   : > { %v875_v2 = vadd.f32 %v5870_v26, %v874_v1 }
 0x1e8   : > { %v917_v5 = vmax.f32 %v875_v2, 0.0 }
 0x1e9   : > { %v5917_v6 = vpop.f32.mrf.mxu1 }
 0x1ea   : > { %v936_v7 = vpack.c.bf16 %v917_v5, %v916_v4  ;;  %v5997_v3 = vadd.f32 %v5924_v14, %v5917_v6 }
 0x1ec   : > { %1076 = vmatmul.bf16.vlgmr.msra.gmra.mxu3 %v936_v7  ;;  %8571 = vst [vmem:[#allocation37_spill] sm:$0xff] %v5997_v3  ;;  %v1105_v12 = vmul.f32 %v5997_v3, %v5997_v3  ;;  %v2789_v18 = vpack.c.bf16 %v5997_v3, %v5997_v3 }
 0x1ee   : > { %v2885_v21 = vunpack.c.l.b16 %v2789_v18 }
 0x1f1   : > { %v1039_v8 = vpop.f32.mrf.mxu1 }
 0x1f2   : > { %v5961_v49 = vadd.f32 %v5924_v14, %v1039_v8  ;;  %v6003_v8 = vadd.f32 %v5924_v14, %v5905_v44 }
 0x1f4   : > { %8568 = vst [vmem:[#allocation34_spill] sm:$0xff] %v5961_v49  ;;  %v1106_v55 = vmul.f32 %v5961_v49, %v5961_v49  ;;  %v1100_v44 = vmul.f32 %v6003_v8, %v6003_v8  ;;  %v2784_v40 = vpack.c.bf16 %v6003_v8, %v6003_v8 }
 0x1f6   : > { %v2880_v47 = vunpack.c.l.b16 %v2784_v40 }
 0x1f9   : > { %v1042_v15 = vpop.f32.mrf.mxu1 }
 0x1fa   : > { %v5927_v16 = vadd.f32 %v5924_v14, %v1042_v15  ;;  %v2790_v15 = vpack.c.bf16 %v5961_v49, %v5961_v49 }
 0x1fc   : > { %8563 = vst [vmem:[#allocation29_spill] sm:$0xff] %v5927_v16  ;;  %1081 = vmatmul.bf16.gmra.mxu3 %v937_v17  ;;  %v1107_v19 = vmul.f32 %v5927_v16, %v5927_v16  ;;  %v2791_v10 = vpack.c.bf16 %v5927_v16, %v5927_v16 }
 0x1fe   : > { %1149 = vadd.xlane.f32.xlu2 %v1107_v19  ;;  %v2887_v17 = vunpack.c.l.b16 %v2791_v10  ;;  %v2886_v19 = vunpack.c.l.b16 %v2790_v15 }
 0x201   : > { %v1044_v20 = vpop.f32.mrf.mxu1 }
 0x202   : > { %v5934_v23 = vadd.f32 %v5924_v14, %v1044_v20  ;;  %v2788_v20 = vpack.c.bf16 %v6009_v11, %v6009_v11 }
 0x204   : > { %8564 = vst [vmem:[#allocation30_spill] sm:$0xff] %v5934_v23  ;;  %v1108_v24 = vmul.f32 %v5934_v23, %v5934_v23  ;;  %v2792_v7 = vpack.c.bf16 %v5934_v23, %v5934_v23  ;;  %v2884_v27 = vunpack.c.l.b16 %v2788_v20 }
 0x206   : > { %1151 = vadd.xlane.f32.xlu2 %v1108_v24  ;;  %v2888_v13 = vunpack.c.l.b16 %v2792_v7  ;;  %v2897_v24 = vpack.c.b16 %v2886_v19, %v2885_v21 }
 0x208   : > { %v2898_v63 = vpack.c.b16 %v2888_v13, %v2887_v17 }
 0x209   : > { %v1047_v30 = vpop.f32.mrf.mxu1 }
 0x20a   : > { %v5942_v31 = vadd.f32 %v5924_v14, %v1047_v30  ;;  %v6029_v30 = vadd.f32 %v5924_v14, %v5903_v41 }
 0x20c   : > { %8566 = vst [vmem:[#allocation32_spill] sm:$0xff] %v5942_v31  ;;  %1086 = vmatmul.bf16.gmra.mxu3 %v938_v33  ;;  %v1109_v34 = vmul.f32 %v5942_v31, %v5942_v31  ;;  %v2793_v2 = vpack.c.bf16 %v5942_v31, %v5942_v31  ;;  %v2883_v33 = vunpack.c.l.b16 %v2787_v22  ;;  %v2783_v41 = vpack.c.bf16 %v6029_v30, %v6029_v30 }
 0x20e   : > { %1153 = vadd.xlane.f32.xlu1 %v1109_v34  ;;  %1141 = vadd.xlane.f32.xlu2 %v1103_v36  ;;  %v2889_v9 = vunpack.c.l.b16 %v2793_v2  ;;  %v2785_v34 = vpack.c.bf16 %v5978_v32, %v5978_v32  ;;  %v6035_v36 = vadd.f32 %v5924_v14, %v5899_v35  ;;  %v2896_v37 = vpack.c.b16 %v2884_v27, %v2883_v33 }
 0x20f   : > { %v2879_v35 = vunpack.c.l.b16 %v2783_v41 }
 0x210   : > { %v2881_v42 = vunpack.c.l.b16 %v2785_v34  ;;  %v2782_v48 = vpack.c.bf16 %v6035_v36, %v6035_v36 }
 0x211   : > { %v1049_v39 = vpop.f32.mrf.mxu1 }
 0x212   : > { %v5954_v43 = vadd.f32 %v5924_v14, %v1049_v39  ;;  %v2882_v39 = vunpack.c.l.b16 %v2786_v28 }
 0x214   : > { %8567 = vst [vmem:[#allocation33_spill] sm:$0xff] %v5954_v43  ;;  %v1110_v45 = vmul.f32 %v5954_v43, %v5954_v43  ;;  %v2794_v50 = vpack.c.bf16 %v5954_v43, %v5954_v43 }
 0x216   : > { %1155 = vadd.xlane.f32.xlu1 %v1110_v45  ;;  %1139 = vadd.xlane.f32.xlu2 %v1102_v46  ;;  %v2890_v5 = vunpack.c.l.b16 %v2794_v50  ;;  %v2895_v45 = vpack.c.b16 %v2882_v39, %v2881_v42  ;;  %v1099_v46 = vmul.f32 %v6029_v30, %v6029_v30 }
 0x218   : > { %v2899_v6 = vpack.c.b16 %v2890_v5, %v2889_v9 }
 0x219   : > { %v1052_v26 = vpop.f32.mrf.mxu1 }
 0x21a   : > { %v5968_v52 = vadd.f32 %v5924_v14, %v1052_v26  ;;  %v2781_v26 = vpack.c.bf16 %v5965_v51, %v5965_v51 }
 0x21c   : > { %8569 = vst [vmem:[#allocation35_spill] sm:$0xff] %v5968_v52  ;;  %1091 = vmatmul.bf16.gmra.mxu3 %v939_v53  ;;  %v1111_v54 = vmul.f32 %v5968_v52, %v5968_v52  ;;  %v2795_v59 = vpack.c.bf16 %v5968_v52, %v5968_v52  ;;  %v2894_v53 = vpack.c.b16 %v2880_v47, %v2879_v35 }
 0x21e   : > { %1157 = vadd.xlane.f32.xlu0 %v1111_v54  ;;  %1147 = vadd.xlane.f32.xlu1 %v1106_v55  ;;  %v2891_v0 = vunpack.c.l.b16 %v2795_v59  ;;  %v2878_v54 = vunpack.c.l.b16 %v2782_v48  ;;  %v2877_v55 = vunpack.c.l.b16 %v2781_v26 }
 0x21f   : > { %1129 = vadd.xlane.f32.xlu2 %v1097_v56  ;;  %v1098_v56 = vmul.f32 %v6035_v36, %v6035_v36 }
 0x221   : > { %v1054_v57 = vpop.f32.mrf.mxu1 }
 0x222   : > { %v5981_v58 = vadd.f32 %v5924_v14, %v1054_v57  ;;  %v2893_v57 = vpack.c.b16 %v2878_v54, %v2877_v55 }
 0x224   : > { %8570 = vst [vmem:[#allocation36_spill] sm:$0xff] %v5981_v58  ;;  %v1112_v60 = vmul.f32 %v5981_v58, %v5981_v58  ;;  %v2796_v62 = vpack.c.bf16 %v5981_v58, %v5981_v58 }
 0x226   : > { %1159 = vadd.xlane.f32.xlu0 %v1112_v60  ;;  %1137 = vadd.xlane.f32.xlu1 %v1101_v61  ;;  %v2892_v1 = vunpack.c.l.b16 %v2796_v62 }
 0x228   : > { %v2900_v4 = vpack.c.b16 %v2892_v1, %v2891_v0 }
 0x229   : > { %v1057_v59 = vpop.f32.mrf.mxu1 }
 0x22a   : > { %2909 = vmatpush.bf16.msrb.mxu2 %v2900_v4  ;;  %v6118_v55 = vadd.f32 %v5924_v14, %v1057_v59 }
 0x22c   : > { %8576 = vst [vmem:[#allocation42_spill] sm:$0xff] %v6118_v55 }
 0x22e   : > { %2910 = vmatpush.bf16.msrb.mxu2 %v2899_v6  ;;  %1145 = vadd.xlane.f32.xlu0 %v1105_v12 }
 0x22f   : > { %1135 = vadd.xlane.f32.xlu1 %v1100_v44 }
 0x231   : > { %v6049_v60 = vpop.f32.mrf.mxu1 }
 0x232   : > { %2911 = vmatpush.bf16.msrb.mxu2 %v2898_v63 }
 0x236   : > { %2912 = vmatpush.bf16.msrb.mxu2 %v2897_v24  ;;  %1143 = vadd.xlane.f32.xlu0 %v1104_v25 }
 0x239   : > { %v6051_v61 = vpop.f32.mrf.mxu1 }
 0x23a   : > { %2913 = vmatpush.bf16.msrb.mxu2 %v2896_v37 }
 0x23e   : > { %2914 = vmatpush.bf16.msrb.mxu2 %v2895_v45  ;;  %1133 = vadd.xlane.f32.xlu0 %v1099_v46 }
 0x241   : > { %v6057_v0 = vpop.f32.mrf.mxu1 }
 0x242   : > { %2915 = vmatpush.bf16.msrb.mxu2 %v2894_v53 }
 0x246   : > { %1131 = vadd.xlane.f32.xlu0 %v1098_v56  ;;  %2916 = vmatpush.bf16.msrb.mxu2 %v2893_v57 }
 0x24a   : > { %3601 = vmatpush.bf16.msra.mxu2 %v2900_v4  ;;  %v6061_v4 = vpop.f32.mrf.mxu1 }
 0x24e   : > { %3602 = vmatpush.bf16.msra.mxu2 %v2899_v6 }
 0x252   : > { %3603 = vmatpush.bf16.msra.mxu2 %v2898_v63  ;;  %v1069_v12 = vpop.f32.mrf.mxu1 }
 0x256   : > { %3604 = vmatpush.bf16.msra.mxu2 %v2897_v24 }
 0x25a   : > { %3605 = vmatpush.bf16.msra.mxu2 %v2896_v37  ;;  %v1072_v25 = vpop.f32.mrf.mxu1 }
 0x25b   : > { %v6107_v47 = vadd.f32 %v5924_v14, %v1072_v25 }
 0x25d   : > { %8575 = vst [vmem:[#allocation41_spill] sm:$0xff] %v6107_v47  ;;  %v1119_v59 = vmul.f32 %v6107_v47, %v6107_v47 }
 0x25e   : > { %3606 = vmatpush.bf16.msra.mxu2 %v2895_v45 }
 0x262   : > { %3607 = vmatpush.bf16.msra.mxu2 %v2894_v53 }
 0x266   : > { %3608 = vmatpush.bf16.msra.mxu2 %v2893_v57 }
 0x26f   : > { %v6053_v62 = vpop.f32.mrf.mxu3 }
 0x271   : > { %v1150_v5 = vpop.xlane.xlu2 %1149 }
 0x272   : > { %v6067_v13 = vmax.f32 %v1150_v5, 1e-24  ;;  %v6123_v5 = vadd.f32 %v5924_v14, %v1069_v12 }
 0x274   : > { %8577 = vst [vmem:[#allocation43_spill] sm:$0xff] %v6123_v5 }
 0x277   : > { %v6055_v50 = vpop.f32.mrf.mxu3 }
 0x279   : > { %v1152_v15 = vpop.xlane.xlu2 %1151 }
 0x27a   : > { %v6074_v63 = vmax.f32 %v1152_v15, 1e-24  ;;  %v1074_v15 = vpop.f32.mrf.mxu1 }
 0x27c   : > { %vm1341_vm13 = vweird.f32 %v6074_v63 }
 0x27f   : > { %v6059_v1 = vpop.f32.mrf.mxu3 }
 0x281   : > { %v1154_v2 = vpop.xlane.xlu1 %1153 }
 0x282   : > { %v6063_v10 = vmax.f32 %v1154_v2, 1e-24 }
 0x284   : > { %5109 = vrsqrt.f32 %v6063_v10  ;;  %vm1351_vm9 = vweird.f32 %v6063_v10 }
 0x287   : > { %v1084_v7 = vpop.f32.mrf.mxu3 }
 0x288   : > { %v6088_v24 = vadd.f32 %v5924_v14, %v1084_v7  ;;  %v1142_v7 = vpop.xlane.xlu2 %1141 }
 0x289   : > { %v1156_v9 = vpop.xlane.xlu1 %1155 }
 0x28a   : > { %v6065_v6 = vmax.f32 %v1156_v9, 1e-24  ;;  %v6082_v21 = vpop.eup %5109  ;;  %8574 = vst [vmem:[#allocation40_spill] sm:$0xff] %v6088_v24  ;;  %v1124_v42 = vmul.f32 %v6088_v24, %v6088_v24 }
 0x28b   : > { %v1346_v33 = vmul.f32 %v6082_v21, %v6063_v10  ;;  %vm1352_vm2 = vweird.f32 %v6082_v21 }
 0x28c   : > { %5111 = vrsqrt.f32 %v6065_v6  ;;  %vm1361_vm4 = vweird.f32 %v6065_v6  ;;  %vm6226_vm12 = vmor %vm1351_vm9, %vm1352_vm2 }
 0x28d   : > { %5113 = vrsqrt.f32 %v6067_v13  ;;  %v1347_v35 = vmul.f32 %v6082_v21, %v1346_v33 }
 0x28f   : > { %v1087_v44 = vpop.f32.mrf.mxu3 }
 0x290   : > { %v6072_v17 = vadd.f32 %v5924_v14, %v1087_v44 }
 0x291   : > { %v1158_v18 = vpop.xlane.xlu0 %1157  ;;  %v1148_v45 = vpop.xlane.xlu1 %1147 }
 0x292   : > { %8573 = vst [vmem:[#allocation39_spill] sm:$0xff] %v6072_v17  ;;  %v6076_v19 = vmax.f32 %v1158_v18, 1e-24  ;;  %v1125_v20 = vmul.f32 %v6072_v17, %v6072_v17  ;;  %v6084_v22 = vpop.eup %5111  ;;  %v6115_v54 = vmax.f32 %v1148_v45, 1e-24  ;;  %v1348_v18 = vmul.f32 0.5, %v1347_v35 }
 0x293   : > { %v6090_v28 = vpop.eup %5113  ;;  %v1356_v34 = vmul.f32 %v6084_v22, %v6065_v6  ;;  %v6148_v35 = vadd.f32 %v5924_v14, %v1074_v15  ;;  %vm1362_vm5 = vweird.f32 %v6084_v22 }
 0x294   : > { %5115 = vrsqrt.f32 %v6076_v19  ;;  %1185 = vadd.xlane.f32.xlu0 %v1125_v20  ;;  %v1326_v48 = vmul.f32 %v6090_v28, %v6067_v13  ;;  %vm1371_vm1 = vweird.f32 %v6076_v19  ;;  %vm6198_vm7 = vmor %vm1361_vm4, %vm1362_vm5  ;;  %vm1332_vm11 = vweird.f32 %v6090_v28 }
 0x295   : > { %5117 = vrsqrt.f32 %v6074_v63  ;;  %v1357_v26 = vmul.f32 %v6084_v22, %v1356_v34  ;;  %8579 = vst [vmem:[#allocation45_spill] sm:$0xff] %v6148_v35 }
 0x296   : > { %v1327_v44 = vmul.f32 %v6090_v28, %v1326_v48  ;;  %v6145_v48 = vmul.f32 %v6118_v55, %v6118_v55 }
 0x297   : > { %v1089_v27 = vpop.f32.mrf.mxu3  ;;  %v1358_v20 = vmul.f32 0.5, %v1357_v26  ;;  %v1118_v26 = vmul.f32 %v6123_v5, %v6123_v5 }
 0x298   : > { %v6163_v15 = vadd.f32 %v5924_v14, %v1089_v27 }
 0x299   : > { %v1160_v37 = vpop.xlane.xlu0 %1159 }
 0x29a   : > { %v6096_v39 = vpop.eup %5115  ;;  %v6098_v40 = vmax.f32 %v1160_v37, 1e-24  ;;  %8581 = vst [vmem:[#allocation47_spill] sm:$0xff] %v6163_v15 }
 0x29b   : > { %v1366_v41 = vmul.f32 %v6096_v39, %v6076_v19  ;;  %v6104_v46 = vpop.eup %5117  ;;  %vm1372_vm0 = vweird.f32 %v6096_v39 }
 0x29c   : > { %5119 = vrsqrt.f32 %v6098_v40  ;;  %1183 = vadd.xlane.f32.xlu0 %v1124_v42  ;;  %v1336_v56 = vmul.f32 %v6104_v46, %v6074_v63  ;;  %vm6170_vm3 = vmor %vm1371_vm1, %vm1372_vm0  ;;  %vm1381_vm8 = vweird.f32 %v6098_v40  ;;  %vm1342_vm14 = vweird.f32 %v6104_v46 }
 0x29d   : > { %v1367_v53 = vmul.f32 %v6096_v39, %v1366_v41  ;;  %5121 = vrsqrt.f32 %v6115_v54  ;;  %v6139_v41 = vmax.f32 %v1142_v7, 1e-24  ;;  %v6159_v7 = vmul.f32 0.5, %v1327_v44  ;;  %vm6266_vm15 = vmor %vm1341_vm13, %vm1342_vm14 }
 0x29e   : > { %v1337_v42 = vmul.f32 %v6104_v46, %v1336_v56  ;;  %v1349_v56 = vsub.f32 1.5, %v1348_v18  ;;  %vm1331_vm0 = vweird.f32 %v6067_v13 }
 0x29f   : > { %v1368_v57 = vmul.f32 0.5, %v1367_v53  ;;  %v1092_v2 = vpop.f32.mrf.mxu3  ;;  %v6156_v53 = vadd.f32 %v5924_v14, %v6053_v62  ;;  %vm6284_vm1 = vmor %vm1331_vm0, %vm1332_vm11 }
 0x2a0   : > { %v6126_v9 = vadd.f32 %v5924_v14, %v1092_v2 }
 0x2a1   : > { %v1146_v25 = vpop.xlane.xlu0 %1145  ;;  %v1369_v34 = vsub.f32 1.5, %v1368_v57  ;;  %8580 = vst [vmem:[#allocation46_spill] sm:$0xff] %v6156_v53  ;;  %v1359_v57 = vsub.f32 1.5, %v1358_v20 }
 0x2a2   : > { %8578 = vst [vmem:[#allocation44_spill] sm:$0xff] %v6126_v9  ;;  %v6131_v33 = vpop.eup %5119  ;;  %v6134_v12 = vmax.f32 %v1146_v25, 1e-24  ;;  %v1127_v37 = vmul.f32 %v6126_v9, %v6126_v9 }
 0x2a3   : > { %v1376_v45 = vmul.f32 %v6131_v33, %v6098_v40  ;;  %v1370_v25 = vmul.f32 %v6096_v39, %v1369_v34  ;;  %v6174_v20 = vpop.eup %5121  ;;  %vm1382_vm6 = vweird.f32 %v6131_v33 }
 0x2a4   : > { %5123 = vrsqrt.f32 %v6134_v12  ;;  %1189 = vadd.xlane.f32.xlu1 %v1127_v37  ;;  %1173 = vadd.xlane.f32.xlu0 %v1119_v59  ;;  %v1338_v59 = vmul.f32 0.5, %v1337_v42  ;;  %v1138_v37 = vpop.xlane.xlu1 %1137  ;;  %vm1383_vm10 = vmor %vm1381_vm8, %vm1382_vm6  ;;  %vm1311_vm4 = vweird.f32 %v6134_v12  ;;  %vm1321_vm6 = vweird.f32 %v6115_v54 }
 0x2a5   : > { %v1377_v2 = vmul.f32 %v6131_v33, %v1376_v45  ;;  %5125 = vrsqrt.f32 %v6139_v41  ;;  %v1374_v27 = vsel %vm6170_vm3, %v6096_v39, %v1370_v25  ;;  %v1350_v45 = vmul.f32 %v6082_v21, %v1349_v56  ;;  %v1140_v56 = vpop.xlane.xlu2 %1139 }
 0x2a6   : > { %v1559_v39 = vmul.f32 %v1374_v27, %v5968_v52  ;;  %v6211_v6 = vmax.f32 %v1138_v37, 1e-24  ;;  %v1121_v27 = vmul.f32 %v6156_v53, %v6156_v53  ;;  %v1339_v52 = vsub.f32 1.5, %v1338_v59 }
 0x2a7   : > { %v1378_v44 = vmul.f32 0.5, %v1377_v2  ;;  %v1094_v18 = vpop.f32.mrf.mxu3  ;;  %v1360_v2 = vmul.f32 %v6084_v22, %v1359_v57  ;;  %v1316_v57 = vmul.f32 %v6174_v20, %v6115_v54  ;;  %v6230_v37 = vmax.f32 %v1140_v56, 1e-24 }
 0x2a8   : > { %v6179_v19 = vadd.f32 %v5924_v14, %v1094_v18  ;;  %v1126_v18 = vmul.f32 %v6163_v15, %v6163_v15  ;;  %vm1322_vm3 = vweird.f32 %v6174_v20  ;;  %vm1271_vm0 = vweird.f32 %v6211_v6 }
 0x2a9   : > { %v1379_v34 = vsub.f32 1.5, %v1378_v44  ;;  %v1144_v42 = vpop.xlane.xlu0 %1143 }
 0x2aa   : > { %8584 = vst [vmem:[#allocation48_spill] sm:$0xff] %v6179_v19  ;;  %v6187_v55 = vpop.eup %5123  ;;  %v6189_v5 = vmax.f32 %v1144_v42, 1e-24  ;;  %v1128_v62 = vmul.f32 %v6179_v19, %v6179_v19 }
 0x2ab   : > { %v1306_v44 = vmul.f32 %v6187_v55, %v6134_v12  ;;  %v1380_v42 = vmul.f32 %v6131_v33, %v1379_v34  ;;  %v6216_v40 = vpop.eup %5125  ;;  %v1364_v34 = vsel %vm6198_vm7, %v6084_v22, %v1360_v2  ;;  %v1317_v22 = vmul.f32 %v6174_v20, %v1316_v57  ;;  %vm6339_vm7 = vmor %vm1321_vm6, %vm1322_vm3 }
 0x2ac   : > { %5127 = vrsqrt.f32 %v6189_v5  ;;  %1187 = vadd.xlane.f32.xlu1 %v1126_v18  ;;  %1171 = vadd.xlane.f32.xlu0 %v1118_v26  ;;  %v1591_v18 = vpack.c.bf16 %v1559_v39, %v1559_v39  ;;  %v1354_v2 = vsel %vm6226_vm12, %v6082_v21, %v1350_v45  ;;  %v1558_v56 = vmul.f32 %v1364_v34, %v5954_v43  ;;  %v1136_v26 = vpop.xlane.xlu1 %1135 }
 0x2ad   : > { %v1307_v47 = vmul.f32 %v6187_v55, %v1306_v44  ;;  %1191 = vadd.xlane.f32.xlu2 %v1128_v62  ;;  %v1384_v10 = vsel %vm1383_vm10, %v6131_v33, %v1380_v42  ;;  %v1329_v62 = vsub.f32 1.5, %v6159_v7  ;;  %v6236_v33 = vadd.f32 %v5924_v14, %v6059_v1 }
 0x2ae   : > { %v1560_v59 = vmul.f32 %v1384_v10, %v5981_v58  ;;  %5129 = vrsqrt.f32 %v6211_v6  ;;  %v1286_v7 = vmul.f32 %v6216_v40, %v6139_v41  ;;  %v1340_v57 = vmul.f32 %v6104_v46, %v1339_v52 }
 0x2af   : > { %8589 = vst [vmem:[#allocation49_spill] sm:$0xff] %v6236_v33  ;;  %v1308_v1 = vmul.f32 0.5, %v1307_v47  ;;  %5131 = vrsqrt.f32 %v6230_v37  ;;  %v1639_v21 = vunpack.c.l.b16 %v1591_v18  ;;  %v1557_v42 = vmul.f32 %v1354_v2, %v5942_v31 }
 0x2b0   : > { %v1592_v25 = vpack.c.bf16 %v1560_v59, %v1560_v59  ;;  %v1318_v10 = vmul.f32 0.5, %v1317_v22  ;;  %v1123_v59 = vmul.f32 %v6236_v33, %v6236_v33  ;;  %v1330_v47 = vmul.f32 %v6090_v28, %v1329_v62 }
 0x2b1   : > { %v1134_v39 = vpop.xlane.xlu0 %1133  ;;  %v6260_v52 = vadd.f32 %v5924_v14, %v6055_v50  ;;  %v1590_v62 = vpack.c.bf16 %v1558_v56, %v1558_v56  ;;  %v1309_v50 = vsub.f32 1.5, %v1308_v1  ;;  %v1344_v63 = vsel %vm6266_vm15, %v6104_v46, %v1340_v57 }
 0x2b2   : > { %v6249_v44 = vpop.eup %5127  ;;  %v1640_v45 = vunpack.c.l.b16 %v1592_v25  ;;  %v6270_v22 = vmax.f32 %v1134_v39, 1e-24  ;;  %v6289_v56 = vmax.f32 %v1136_v26, 1e-24  ;;  %v1589_v13 = vpack.c.bf16 %v1557_v42, %v1557_v42 }
 0x2b3   : > { %v1296_v34 = vmul.f32 %v6249_v44, %v6189_v5  ;;  %8590 = vst [vmem:[#allocation50_spill] sm:$0xff] %v6260_v52  ;;  %v6294_v1 = vadd.f32 %v5924_v14, %v6051_v61  ;;  %v1319_v46 = vsub.f32 1.5, %v1318_v10  ;;  %v1120_v39 = vmul.f32 %v6148_v35, %v6148_v35 }
 0x2b4   : > { %1177 = vadd.xlane.f32.xlu1 %v1121_v27  ;;  %1161 = vadd.xlane.f32.xlu0 %v6145_v48  ;;  %v6273_v2 = vpack.c.b16 %v1640_v45, %v1639_v21  ;;  %v6280_v58 = vpop.eup %5129  ;;  %v1287_v48 = vmul.f32 %v6216_v40, %v1286_v7  ;;  %v1334_v57 = vsel %vm6284_vm1, %v6090_v28, %v1330_v47  ;;  %5133 = vrsqrt.f32 %v6270_v22 }
 0x2b5   : > { %v1297_v25 = vmul.f32 %v6249_v44, %v1296_v34  ;;  %1181 = vadd.xlane.f32.xlu2 %v1123_v59  ;;  %8595 = vst [vmem:[#allocation51_spill] sm:$0xff] %v6294_v1  ;;  %v6301_v21 = vpop.eup %5131  ;;  %v1122_v7 = vmul.f32 %v6260_v52, %v6260_v52  ;;  %v1638_v45 = vunpack.c.l.b16 %v1590_v62  ;;  %v1556_v42 = vmul.f32 %v1344_v63, %v5934_v23  ;;  %v1130_v62 = vpop.xlane.xlu2 %1129 }
 0x2b6   : > { %1657 = vmatpush.bf16.xpose.msrb.mxu3 %v6273_v2  ;;  %v1266_v61 = vmul.f32 %v6280_v58, %v6211_v6  ;;  %vm1312_vm2 = vweird.f32 %v6187_v55  ;;  %v1310_v34 = vmul.f32 %v6187_v55, %v1309_v50  ;;  %v1288_v28 = vmul.f32 0.5, %v1287_v48 }
 0x2b7   : > { %v1298_v10 = vmul.f32 0.5, %v1297_v25  ;;  %5135 = vrsqrt.f32 %v6289_v56  ;;  %v1637_v59 = vunpack.c.l.b16 %v1589_v13  ;;  %v1555_v47 = vmul.f32 %v1334_v57, %v5927_v16  ;;  %vm6322_vm5 = vmor %vm1311_vm4, %vm1312_vm2 }
 0x2b8   : > { %v1276_v18 = vmul.f32 %v6301_v21, %v6230_v37  ;;  %v1320_v63 = vmul.f32 %v6174_v20, %v1319_v46  ;;  %v6320_v25 = vadd.f32 %v5924_v14, %v6061_v4  ;;  %v1588_v13 = vpack.c.bf16 %v1556_v42, %v1556_v42 }
 0x2b9   : > { %v1132_v26 = vpop.xlane.xlu0 %1131  ;;  %v6328_v48 = vpack.c.b16 %v1638_v45, %v1637_v59  ;;  %v1267_v12 = vmul.f32 %v6280_v58, %v1266_v61  ;;  %v1299_v57 = vsub.f32 1.5, %v1298_v10  ;;  %v1314_v4 = vsel %vm6322_vm5, %v6187_v55, %v1310_v34 }
 0x2ba   : > { %8596 = vst [vmem:[#allocation52_spill] sm:$0xff] %v6320_v25  ;;  %v6326_v27 = vmax.f32 %v1132_v26, 1e-24  ;;  %v6335_v46 = vpop.eup %5133  ;;  %v1587_v54 = vpack.c.bf16 %v1555_v47, %v1555_v47  ;;  %v1289_v45 = vsub.f32 1.5, %v1288_v28  ;;  %v1115_v42 = vmul.f32 %v6294_v1, %v6294_v1 }
 0x2bb   : > { %v1324_v55 = vsel %vm6339_vm7, %v6174_v20, %v1320_v63  ;;  %v1117_v10 = vmul.f32 %v6320_v25, %v6320_v25  ;;  %v1636_v34 = vunpack.c.l.b16 %v1588_v13  ;;  %v1553_v59 = vmul.f32 %v1314_v4, %v5997_v3 }
 0x2bc   : > { %1175 = vadd.xlane.f32.xlu1 %v1120_v39  ;;  %v6343_v39 = vmax.f32 %v1130_v62, 1e-24  ;;  %5137 = vrsqrt.f32 %v6326_v27  ;;  %v1268_v28 = vmul.f32 0.5, %v1267_v12  ;;  %vm1302_vm8 = vweird.f32 %v6249_v44 }
 0x2bd   : > { %1179 = vadd.xlane.f32.xlu2 %v1122_v7  ;;  %v1277_v7 = vmul.f32 %v6301_v21, %v1276_v18  ;;  %v6352_v61 = vpop.eup %5135  ;;  %v1246_v47 = vmul.f32 %v6335_v46, %v6270_v22  ;;  %v1300_v18 = vmul.f32 %v6249_v44, %v1299_v57  ;;  %vm1292_vm9 = vweird.f32 %v6216_v40 }
 0x2be   : > { %1658 = vmatpush.bf16.xpose.msrb.mxu3 %v6328_v48  ;;  %5139 = vrsqrt.f32 %v6343_v39  ;;  %v1635_v20 = vunpack.c.l.b16 %v1587_v54  ;;  %v1554_v62 = vmul.f32 %v1324_v55, %v5961_v49  ;;  %v1256_v50 = vmul.f32 %v6352_v61, %v6289_v56 }
 0x2bf   : > { %v1278_v63 = vmul.f32 0.5, %v1277_v7  ;;  %vm1301_vm10 = vweird.f32 %v6189_v5  ;;  %v1290_v13 = vmul.f32 %v6216_v40, %v1289_v45  ;;  %v6371_v12 = vadd.f32 %v5924_v14, %v6049_v60 }
 0x2c0   : > { %vm6373_vm11 = vmor %vm1301_vm10, %vm1302_vm8  ;;  %v6377_v4 = vpack.c.b16 %v1636_v34, %v1635_v20  ;;  %v1585_v26 = vpack.c.bf16 %v1553_v59, %v1553_v59  ;;  %vm1291_vm12 = vweird.f32 %v6139_v41  ;;  %v1269_v54 = vsub.f32 1.5, %v1268_v28 }
 0x2c1   : > { %8601 = vst [vmem:[#allocation53_spill] sm:$0xff] %v6371_v12  ;;  %v1247_v7 = vmul.f32 %v6335_v46, %v1246_v47  ;;  %v1304_v5 = vsel %vm6373_vm11, %v6249_v44, %v1300_v18  ;;  %v6388_v45 = vadd.f32 %v5924_v14, %v6057_v0  ;;  %vm6392_vm13 = vmor %vm1291_vm12, %vm1292_vm9  ;;  %v1586_v41 = vpack.c.bf16 %v1554_v62, %v1554_v62 }
 0x2c2   : > { %v6384_v60 = vpop.eup %5137  ;;  %v1279_v55 = vsub.f32 1.5, %v1278_v63  ;;  %v1294_v44 = vsel %vm6392_vm13, %v6216_v40, %v1290_v13  ;;  %v1114_v14 = vmul.f32 %v6371_v12, %v6371_v12  ;;  %v1633_v0 = vunpack.c.l.b16 %v1585_v26 }
 0x2c3   : > { %8604 = vst [vmem:[#allocation54_spill] sm:$0xff] %v6388_v45  ;;  %v1552_v59 = vmul.f32 %v1304_v5, %v6009_v11  ;;  %vm1272_vm14 = vweird.f32 %v6280_v58  ;;  %v1248_v28 = vmul.f32 0.5, %v1247_v7  ;;  %v1236_v47 = vmul.f32 %v6384_v60, %v6326_v27 }
 0x2c4   : > { %1165 = vadd.xlane.f32.xlu1 %v1115_v42  ;;  %v6401_v34 = vpop.eup %5139  ;;  %v1270_v18 = vmul.f32 %v6280_v58, %v1269_v54  ;;  %vm1282_vm15 = vweird.f32 %v6301_v21  ;;  %v1116_v40 = vmul.f32 %v6388_v45, %v6388_v45  ;;  %v1634_v20 = vunpack.c.l.b16 %v1586_v41  ;;  %vm6418_vm1 = vmor %vm1271_vm0, %vm1272_vm14 }
 0x2c5   : > { %1169 = vadd.xlane.f32.xlu2 %v1117_v10  ;;  %v1257_v10 = vmul.f32 %v6352_v61, %v1256_v50  ;;  %v1551_v62 = vmul.f32 %v1294_v44, %v5939_v29  ;;  %v1226_v63 = vmul.f32 %v6401_v34, %v6343_v39  ;;  %v1280_v13 = vmul.f32 %v6301_v21, %v1279_v55 }
 0x2c6   : > { %1659 = vmatpush.bf16.xpose.msrb.mxu3 %v6377_v4  ;;  %v6422_v26 = vpack.c.b16 %v1634_v20, %v1633_v0  ;;  %v1584_v54 = vpack.c.bf16 %v1552_v59, %v1552_v59  ;;  %vm1281_vm2 = vweird.f32 %v6230_v37  ;;  %v1249_v7 = vsub.f32 1.5, %v1248_v28 }
 0x2c7   : > { %v1258_v50 = vmul.f32 0.5, %v1257_v10  ;;  %v1237_v5 = vmul.f32 %v6384_v60, %v1236_v47  ;;  %v1274_v6 = vsel %vm6418_vm1, %v6280_v58, %v1270_v18  ;;  %vm1283_vm3 = vmor %vm1281_vm2, %vm1282_vm15  ;;  %v1583_v42 = vpack.c.bf16 %v1551_v62, %v1551_v62 }
 0x2c8   : > { %v1227_v41 = vmul.f32 %v6401_v34, %v1226_v63  ;;  %v1284_v10 = vsel %vm1283_vm3, %v6301_v21, %v1280_v13  ;;  %v1632_v37 = vunpack.c.l.b16 %v1584_v54  ;;  %v1549_v44 = vmul.f32 %v1274_v6, %v5978_v32 }
 0x2c9   : > { %v1259_v55 = vsub.f32 1.5, %v1258_v50  ;;  %vm1252_vm4 = vweird.f32 %v6335_v46  ;;  %v1250_v0 = vmul.f32 %v6335_v46, %v1249_v7  ;;  %v1631_v58 = vunpack.c.l.b16 %v1583_v42 }
 0x2ca   : > { %v1550_v59 = vmul.f32 %v1284_v10, %v5949_v38  ;;  %v1228_v28 = vmul.f32 0.5, %v1227_v41  ;;  %vm1262_vm5 = vweird.f32 %v6352_v61  ;;  %vm1251_vm6 = vweird.f32 %v6270_v22 }
 0x2cb   : > { %v1260_v47 = vmul.f32 %v6352_v61, %v1259_v55  ;;  %vm1253_vm7 = vmor %vm1251_vm6, %vm1252_vm4  ;;  %v6441_v21 = vpack.c.b16 %v1632_v37, %v1631_v58  ;;  %v1581_v18 = vpack.c.bf16 %v1549_v44, %v1549_v44  ;;  %vm1261_vm8 = vweird.f32 %v6289_v56 }
 0x2cc   : > { %1163 = vadd.xlane.f32.xlu1 %v1114_v14  ;;  %v1238_v14 = vmul.f32 0.5, %v1237_v5  ;;  %v1254_v20 = vsel %vm1253_vm7, %v6335_v46, %v1250_v0  ;;  %vm1263_vm9 = vmor %vm1261_vm8, %vm1262_vm5  ;;  %v1582_v62 = vpack.c.bf16 %v1550_v59, %v1550_v59  ;;  %v1229_v63 = vsub.f32 1.5, %v1228_v28 }
 0x2cd   : > { %1167 = vadd.xlane.f32.xlu2 %v1116_v40  ;;  %v1264_v50 = vsel %vm1263_vm9, %v6352_v61, %v1260_v47  ;;  %v1629_v13 = vunpack.c.l.b16 %v1581_v18  ;;  %v1547_v22 = vmul.f32 %v1254_v20, %v6029_v30  ;;  %vm1242_vm10 = vweird.f32 %v6384_v60 }
 0x2ce   : > { %1660 = vmatpush.bf16.xpose.msrb.mxu3 %v6422_v26  ;;  %v1239_v40 = vsub.f32 1.5, %v1238_v14  ;;  %v1630_v54 = vunpack.c.l.b16 %v1582_v62  ;;  %v1548_v56 = vmul.f32 %v1264_v50, %v6003_v8  ;;  %vm1232_vm11 = vweird.f32 %v6401_v34 }
 0x2cf   : > { %vm1241_vm12 = vweird.f32 %v6326_v27  ;;  %v1230_v46 = vmul.f32 %v6401_v34, %v1229_v63  ;;  %v1579_v5 = vpack.c.bf16 %v1547_v22, %v1547_v22  ;;  %vm1231_vm14 = vweird.f32 %v6343_v39 }
 0x2d0   : > { %v1240_v57 = vmul.f32 %v6384_v60, %v1239_v40  ;;  %vm1243_vm13 = vmor %vm1241_vm12, %vm1242_vm10  ;;  %v1643_v7 = vpack.c.b16 %v1630_v54, %v1629_v13  ;;  %v1580_v6 = vpack.c.bf16 %v1548_v56, %v1548_v56 }
 0x2d1   : > { %vm1233_vm15 = vmor %vm1231_vm14, %vm1232_vm11  ;;  %v1627_v41 = vunpack.c.l.b16 %v1579_v5 }
 0x2d2   : > { %v1244_v61 = vsel %vm1243_vm13, %v6384_v60, %v1240_v57  ;;  %v1234_v42 = vsel %vm1233_vm15, %v6401_v34, %v1230_v46  ;;  %v1628_v10 = vunpack.c.l.b16 %v1580_v6 }
 0x2d3   : > { %v1546_v55 = vmul.f32 %v1244_v61, %v6035_v36  ;;  %v1545_v27 = vmul.f32 %v1234_v42, %v5965_v51 }
 0x2d4   : > { %v1642_v37 = vpack.c.b16 %v1628_v10, %v1627_v41 }
 0x2d5   : > { %v1578_v44 = vpack.c.bf16 %v1546_v55, %v1546_v55  ;;  %v1577_v14 = vpack.c.bf16 %v1545_v27, %v1545_v27 }
 0x2d6   : > { %1661 = vmatpush.bf16.xpose.msrb.mxu3 %v6441_v21 }
 0x2d7   : > { %v1626_v0 = vunpack.c.l.b16 %v1578_v44  ;;  %v1625_v58 = vunpack.c.l.b16 %v1577_v14 }
 0x2d9   : > { %v1641_v39 = vpack.c.b16 %v1626_v0, %v1625_v58 }
 0x2de   : > { %1662 = vmatpush.bf16.xpose.msrb.mxu3 %v1643_v7 }
 0x2e6   : > { %1663 = vmatpush.bf16.xpose.msrb.mxu3 %v1642_v37 }
 0x2ee   : > { %1664 = vmatpush.bf16.xpose.msrb.mxu3 %v1641_v39 }
 0x2f5   : > { %1665 = vmatmul.bf16.vlgmr.msrb.gmra.mxu3 %v1641_v39 }
 0x305   : > { %1670 = vmatmul.bf16.gmra.mxu3 %v1642_v37 }
 0x307   : > { %v1186_v60 = vpop.xlane.xlu0 %1185 }
 0x308   : > { %v6459_v59 = vmax.f32 %v1186_v60, 1e-24 }
 0x30a   : > { %5141 = vrsqrt.f32 %v6459_v59  ;;  %vm1511_vm7 = vweird.f32 %v6459_v59 }
 0x30f   : > { %v1184_v47 = vpop.xlane.xlu0 %1183 }
 0x310   : > { %v6462_v18 = vpop.eup %5141  ;;  %v6464_v40 = vmax.f32 %v1184_v47, 1e-24 }
 0x311   : > { %v1506_v57 = vmul.f32 %v6462_v18, %v6459_v59  ;;  %vm1512_vm4 = vweird.f32 %v6462_v18 }
 0x312   : > { %vm6517_vm9 = vmor %vm1511_vm7, %vm1512_vm4 }
 0x313   : > { %v1507_v46 = vmul.f32 %v6462_v18, %v1506_v57 }
 0x315   : > { %1675 = vmatmul.bf16.gmra.mxu3 %v1643_v7  ;;  %v1508_v44 = vmul.f32 0.5, %v1507_v46 }
 0x317   : > { %v1190_v34 = vpop.xlane.xlu1 %1189  ;;  %v1174_v55 = vpop.xlane.xlu0 %1173  ;;  %v1509_v47 = vsub.f32 1.5, %v1508_v44 }
 0x318   : > { %v1223_v28 = vmax.f32 %v1190_v34, 1e-24  ;;  %v6487_v58 = vmax.f32 %v1174_v55, 1e-24 }
 0x31a   : > { %5143 = vrsqrt.f32 %v1223_v28  ;;  %vm1531_vm1 = vweird.f32 %v1223_v28 }
 0x31f   : > { %v1188_v20 = vpop.xlane.xlu1 %1187 }
 0x320   : > { %v5144_v62 = vpop.eup %5143  ;;  %v6466_v63 = vmax.f32 %v1188_v20, 1e-24  ;;  %v1192_v50 = vpop.xlane.xlu2 %1191 }
 0x321   : > { %v1526_v13 = vmul.f32 %v5144_v62, %v1223_v28  ;;  %v1224_v22 = vmax.f32 %v1192_v50, 1e-24  ;;  %vm1532_vm0 = vweird.f32 %v5144_v62 }
 0x322   : > { %5145 = vrsqrt.f32 %v6466_v63  ;;  %vm6492_vm2 = vmor %vm1531_vm1, %vm1532_vm0  ;;  %vm1521_vm10 = vweird.f32 %v6466_v63  ;;  %vm1501_vm0 = vweird.f32 %v6464_v40 }
 0x323   : > { %5147 = vrsqrt.f32 %v6464_v40  ;;  %v1527_v54 = vmul.f32 %v5144_v62, %v1526_v13  ;;  %vm1541_vm6 = vweird.f32 %v1224_v22 }
 0x324   : > { %5149 = vrsqrt.f32 %v1224_v22 }
 0x325   : > { %v1528_v56 = vmul.f32 0.5, %v1527_v54  ;;  %1680 = vmatmul.bf16.gmra.mxu3 %v6441_v21 }
 0x327   : > { %v1178_v7 = vpop.xlane.xlu1 %1177  ;;  %v1529_v41 = vsub.f32 1.5, %v1528_v56 }
 0x328   : > { %v6474_v5 = vpop.eup %5145  ;;  %v6476_v61 = vmax.f32 %v1178_v7, 1e-24  ;;  %v1182_v6 = vpop.xlane.xlu2 %1181 }
 0x329   : > { %v6478_v42 = vpop.eup %5147  ;;  %v1516_v10 = vmul.f32 %v6474_v5, %v6466_v63  ;;  %v6482_v27 = vmax.f32 %v1182_v6, 1e-24  ;;  %v1530_v39 = vmul.f32 %v5144_v62, %v1529_v41  ;;  %v1510_v41 = vmul.f32 %v6462_v18, %v1509_v47 }
 0x32a   : > { %v5150_v37 = vpop.eup %5149  ;;  %v1496_v0 = vmul.f32 %v6478_v42, %v6464_v40  ;;  %5151 = vrsqrt.f32 %v6476_v61  ;;  %vm1522_vm5 = vweird.f32 %v6474_v5  ;;  %vm1502_vm12 = vweird.f32 %v6478_v42 }
 0x32b   : > { %v1517_v21 = vmul.f32 %v6474_v5, %v1516_v10  ;;  %v1536_v14 = vmul.f32 %v5150_v37, %v1224_v22  ;;  %5153 = vrsqrt.f32 %v6482_v27  ;;  %v1534_v7 = vsel %vm6492_vm2, %v5144_v62, %v1530_v39  ;;  %vm6527_vm11 = vmor %vm1521_vm10, %vm1522_vm5 }
 0x32c   : > { %v1497_v57 = vmul.f32 %v6478_v42, %v1496_v0  ;;  %5155 = vrsqrt.f32 %v6487_v58  ;;  %vm1542_vm3 = vweird.f32 %v5150_v37  ;;  %v1514_v63 = vsel %vm6517_vm9, %v6462_v18, %v1510_v41  ;;  %vm6581_vm1 = vmor %vm1501_vm0, %vm1502_vm12 }
 0x32d   : > { %v1518_v60 = vmul.f32 0.5, %v1517_v21  ;;  %v1537_v34 = vmul.f32 %v5150_v37, %v1536_v14  ;;  %v1575_v21 = vmul.f32 %v1534_v7, %v6126_v9  ;;  %v1172_v14 = vpop.xlane.xlu0 %1171  ;;  %vm1543_vm8 = vmor %vm1541_vm6, %vm1542_vm3  ;;  %v1573_v41 = vmul.f32 %v1514_v63, %v6072_v17 }
 0x32e   : > { %vm1491_vm14 = vweird.f32 %v6482_v27  ;;  %vm1471_vm6 = vweird.f32 %v6476_v61  ;;  %vm1451_vm12 = vweird.f32 %v6487_v58 }
 0x32f   : > { %v1519_v20 = vsub.f32 1.5, %v1518_v60  ;;  %v1538_v50 = vmul.f32 0.5, %v1537_v34  ;;  %v1176_v13 = vpop.xlane.xlu1 %1175  ;;  %v1498_v60 = vmul.f32 0.5, %v1497_v57  ;;  %v1607_v57 = vpack.c.bf16 %v1575_v21, %v1575_v21 }
 0x330   : > { %v6496_v56 = vmax.f32 %v1176_v13, 1e-24  ;;  %v1180_v46 = vpop.xlane.xlu2 %1179  ;;  %v6501_v28 = vpop.eup %5151 }
 0x331   : > { %v1539_v6 = vsub.f32 1.5, %v1538_v50  ;;  %v6506_v55 = vmax.f32 %v1180_v46, 1e-24  ;;  %v6508_v10 = vpop.eup %5153  ;;  %v1520_v44 = vmul.f32 %v6474_v5, %v1519_v20  ;;  %v1466_v59 = vmul.f32 %v6501_v28, %v6476_v61 }
 0x332   : > { %5157 = vrsqrt.f32 %v6496_v56  ;;  %v1486_v0 = vmul.f32 %v6508_v10, %v6482_v27  ;;  %v6538_v50 = vmax.f32 %v1172_v14, 1e-24  ;;  %vm1492_vm13 = vweird.f32 %v6508_v10 }
 0x333   : > { %v1540_v62 = vmul.f32 %v5150_v37, %v1539_v6  ;;  %5159 = vrsqrt.f32 %v6506_v55  ;;  %v1499_v6 = vsub.f32 1.5, %v1498_v60  ;;  %vm6566_vm15 = vmor %vm1491_vm14, %vm1492_vm13  ;;  %vm1472_vm3 = vweird.f32 %v6501_v28 }
 0x334   : > { %v1487_v20 = vmul.f32 %v6508_v10, %v1486_v0  ;;  %5161 = vrsqrt.f32 %v6538_v50  ;;  %vm1481_vm4 = vweird.f32 %v6506_v55  ;;  %vm6625_vm7 = vmor %vm1471_vm6, %vm1472_vm3  ;;  %vm1461_vm10 = vweird.f32 %v6496_v56 }
 0x335   : > { %v1544_v34 = vsel %vm1543_vm8, %v5150_v37, %v1540_v62  ;;  %1685 = vmatmul.bf16.gmra.mxu3 %v6422_v26  ;;  %v6536_v37 = vpop.eup %5155  ;;  %v1524_v26 = vsel %vm6527_vm11, %v6474_v5, %v1520_v44  ;;  %v1467_v62 = vmul.f32 %v6501_v28, %v1466_v59  ;;  %v1736_v59 = vunpack.c.l.b16 %v1607_v57 }
 0x336   : > { %v1576_v47 = vmul.f32 %v1544_v34, %v6179_v19  ;;  %v1488_v46 = vmul.f32 0.5, %v1487_v20  ;;  %v1446_v0 = vmul.f32 %v6536_v37, %v6487_v58  ;;  %v1574_v21 = vmul.f32 %v1524_v26, %v6163_v15 }
 0x337   : > { %v1166_v18 = vpop.xlane.xlu1 %1165  ;;  %v1468_v20 = vmul.f32 0.5, %v1467_v62  ;;  %vm1452_vm9 = vweird.f32 %v6536_v37 }
 0x338   : > { %v6543_v13 = vpop.eup %5157  ;;  %v1608_v54 = vpack.c.bf16 %v1576_v47, %v1576_v47  ;;  %v1170_v7 = vpop.xlane.xlu2 %1169  ;;  %v1489_v5 = vsub.f32 1.5, %v1488_v46  ;;  %v1500_v47 = vmul.f32 %v6478_v42, %v1499_v6  ;;  %v6570_v46 = vmax.f32 %v1166_v18, 1e-24  ;;  %vm1453_vm13 = vmor %vm1451_vm12, %vm1452_vm9 }
 0x339   : > { %v6548_v14 = vpop.eup %5159  ;;  %v6552_v44 = vmax.f32 %v1170_v7, 1e-24  ;;  %v1456_v39 = vmul.f32 %v6543_v13, %v6496_v56  ;;  %v1447_v62 = vmul.f32 %v6536_v37, %v1446_v0  ;;  %vm1462_vm8 = vweird.f32 %v6543_v13 }
 0x33a   : > { %v1476_v60 = vmul.f32 %v6548_v14, %v6506_v55  ;;  %v1490_v34 = vmul.f32 %v6508_v10, %v1489_v5  ;;  %v1737_v22 = vunpack.c.l.b16 %v1608_v54  ;;  %v1606_v5 = vpack.c.bf16 %v1574_v21, %v1574_v21  ;;  %v6587_v40 = vpop.eup %5161  ;;  %vm6651_vm11 = vmor %vm1461_vm10, %vm1462_vm8 }
 0x33b   : > { %5163 = vrsqrt.f32 %v6552_v44  ;;  %v1457_v57 = vmul.f32 %v6543_v13, %v1456_v39  ;;  %v1605_v21 = vpack.c.bf16 %v1573_v41, %v1573_v41  ;;  %v1469_v39 = vsub.f32 1.5, %v1468_v20 }
 0x33c   : > { %v1477_v63 = vmul.f32 %v6548_v14, %v1476_v60  ;;  %v6572_v7 = vpack.c.b16 %v1737_v22, %v1736_v59  ;;  %v1494_v27 = vsel %vm6566_vm15, %v6508_v10, %v1490_v34  ;;  %v1504_v10 = vsel %vm6581_vm1, %v6478_v42, %v1500_v47 }
 0x33d   : > { %5165 = vrsqrt.f32 %v6570_v46  ;;  %v1735_v22 = vunpack.c.l.b16 %v1606_v5  ;;  %v1571_v0 = vmul.f32 %v1494_v27, %v6236_v33  ;;  %vm1482_vm2 = vweird.f32 %v6548_v14 }
 0x33e   : > { %v1478_v54 = vmul.f32 0.5, %v1477_v63  ;;  %1754 = vmatpush.bf16.xpose.msra.mxu3 %v6572_v7  ;;  %v1458_v63 = vmul.f32 0.5, %v1457_v57  ;;  %v1734_v42 = vunpack.c.l.b16 %v1605_v21  ;;  %v1572_v47 = vmul.f32 %v1504_v10, %v6088_v24  ;;  %v1162_v57 = vpop.xlane.xlu0 %1161  ;;  %vm6610_vm5 = vmor %vm1481_vm4, %vm1482_vm2 }
 0x33f   : > { %v1164_v26 = vpop.xlane.xlu1 %1163  ;;  %v1436_v5 = vmul.f32 %v6587_v40, %v6538_v50  ;;  %v1470_v27 = vmul.f32 %v6501_v28, %v1469_v39  ;;  %v1603_v21 = vpack.c.bf16 %v1571_v0, %v1571_v0  ;;  %vm1442_vm15 = vweird.f32 %v6587_v40 }
 0x340   : > { %v1168_v18 = vpop.xlane.xlu2 %1167  ;;  %v1479_v60 = vsub.f32 1.5, %v1478_v54  ;;  %v1448_v54 = vmul.f32 0.5, %v1447_v62  ;;  %v6614_v62 = vmax.f32 %v1164_v26, 1e-24  ;;  %v6629_v26 = vmax.f32 %v1162_v57, 1e-24 }
 0x341   : > { %v6592_v34 = vpop.eup %5163  ;;  %v6595_v59 = vmax.f32 %v1168_v18, 1e-24  ;;  %v6616_v18 = vpack.c.b16 %v1735_v22, %v1734_v42  ;;  %v1604_v22 = vpack.c.bf16 %v1572_v47, %v1572_v47  ;;  %v1437_v61 = vmul.f32 %v6587_v40, %v1436_v5 }
 0x342   : > { %v1480_v41 = vmul.f32 %v6548_v14, %v1479_v60  ;;  %v1426_v20 = vmul.f32 %v6592_v34, %v6552_v44  ;;  %v1459_v60 = vsub.f32 1.5, %v1458_v63  ;;  %v1449_v0 = vsub.f32 1.5, %v1448_v54 }
 0x343   : > { %5167 = vrsqrt.f32 %v6595_v59  ;;  %v6623_v10 = vpop.eup %5165  ;;  %v1474_v63 = vsel %vm6625_vm7, %v6501_v28, %v1470_v27  ;;  %v1733_v28 = vunpack.c.l.b16 %v1604_v22  ;;  %v1438_v27 = vmul.f32 0.5, %v1437_v61 }
 0x344   : > { %v1427_v39 = vmul.f32 %v6592_v34, %v1426_v20  ;;  %v1484_v55 = vsel %vm6610_vm5, %v6548_v14, %v1480_v41  ;;  %5169 = vrsqrt.f32 %v6614_v62  ;;  %v1732_v14 = vunpack.c.l.b16 %v1603_v21 }
 0x345   : > { %1690 = vmatmul.bf16.gmra.mxu3 %v6377_v4  ;;  %v1570_v41 = vmul.f32 %v1484_v55, %v6260_v52  ;;  %v1460_v42 = vmul.f32 %v6543_v13, %v1459_v60  ;;  %5171 = vrsqrt.f32 %v6629_v26  ;;  %v1569_v47 = vmul.f32 %v1474_v63, %v6156_v53 }
 0x346   : > { %1755 = vmatpush.bf16.xpose.msra.mxu3 %v6616_v18  ;;  %v1428_v57 = vmul.f32 0.5, %v1427_v39  ;;  %v1450_v5 = vmul.f32 %v6536_v37, %v1449_v0  ;;  %v1406_v6 = vmul.f32 %v6623_v10, %v6570_v46  ;;  %v6655_v60 = vpack.c.b16 %v1733_v28, %v1732_v14 }
 0x347   : > { %v1602_v39 = vpack.c.bf16 %v1570_v41, %v1570_v41  ;;  %v1464_v22 = vsel %vm6651_vm11, %v6543_v13, %v1460_v42  ;;  %v1601_v0 = vpack.c.bf16 %v1569_v47, %v1569_v47  ;;  %v1439_v61 = vsub.f32 1.5, %v1438_v27  ;;  %v8625_v47 = vld [vmem:[#allocation41_spill] sm:$0xff] }
 0x348   : > { %v1429_v55 = vsub.f32 1.5, %v1428_v57  ;;  %v1407_v63 = vmul.f32 %v6623_v10, %v1406_v6  ;;  %v1454_v58 = vsel %vm1453_vm13, %v6536_v37, %v1450_v5  ;;  %v1568_v57 = vmul.f32 %v1464_v22, %v6148_v35 }
 0x349   : > { %v6636_v20 = vpop.eup %5167  ;;  %v1731_v41 = vunpack.c.l.b16 %v1602_v39  ;;  %vm1432_vm14 = vweird.f32 %v6592_v34  ;;  %v1730_v28 = vunpack.c.l.b16 %v1601_v0  ;;  %v1567_v27 = vmul.f32 %v1454_v58, %v8625_v47 }
 0x34a   : > { %v1416_v54 = vmul.f32 %v6636_v20, %v6595_v59  ;;  %v6662_v56 = vpop.eup %5169  ;;  %v1430_v13 = vmul.f32 %v6592_v34, %v1429_v55  ;;  %v1440_v37 = vmul.f32 %v6587_v40, %v1439_v61  ;;  %v1408_v6 = vmul.f32 0.5, %v1407_v63 }
 0x34b   : > { %v6669_v14 = vpop.eup %5171  ;;  %v1396_v42 = vmul.f32 %v6662_v56, %v6614_v62  ;;  %vm1431_vm0 = vweird.f32 %v6552_v44  ;;  %v6683_v21 = vpack.c.b16 %v1731_v41, %v1730_v28  ;;  %v1600_v39 = vpack.c.bf16 %v1568_v57, %v1568_v57  ;;  %v8626_v57 = vld [vmem:[#allocation43_spill] sm:$0xff] }
 0x34c   : > { %v1417_v4 = vmul.f32 %v6636_v20, %v1416_v54  ;;  %v1386_v5 = vmul.f32 %v6669_v14, %v6629_v26  ;;  %vm1433_vm1 = vmor %vm1431_vm0, %vm1432_vm14  ;;  %vm1441_vm2 = vweird.f32 %v6538_v50  ;;  %v1599_v0 = vpack.c.bf16 %v1567_v27, %v1567_v27 }
 0x34d   : > { %v1397_v55 = vmul.f32 %v6662_v56, %v1396_v42  ;;  %v1434_v22 = vsel %vm1433_vm1, %v6592_v34, %v1430_v13  ;;  %vm1443_vm3 = vmor %vm1441_vm2, %vm1442_vm15  ;;  %v1729_v63 = vunpack.c.l.b16 %v1600_v39  ;;  %vm1422_vm4 = vweird.f32 %v6636_v20 }
 0x34e   : > { %1756 = vmatpush.bf16.xpose.msra.mxu3 %v6655_v60  ;;  %v1418_v54 = vmul.f32 0.5, %v1417_v4  ;;  %v1387_v44 = vmul.f32 %v6669_v14, %v1386_v5  ;;  %v1444_v61 = vsel %vm1443_vm3, %v6587_v40, %v1440_v37  ;;  %v1565_v58 = vmul.f32 %v1434_v22, %v6320_v25 }
 0x34f   : > { %v1398_v50 = vmul.f32 0.5, %v1397_v55  ;;  %v1728_v34 = vunpack.c.l.b16 %v1599_v0  ;;  %v1566_v13 = vmul.f32 %v1444_v61, %v8626_v57  ;;  %vm1412_vm5 = vweird.f32 %v6623_v10 }
 0x350   : > { %v1419_v4 = vsub.f32 1.5, %v1418_v54  ;;  %v1388_v42 = vmul.f32 0.5, %v1387_v44  ;;  %vm1421_vm6 = vweird.f32 %v6595_v59  ;;  %v1597_v28 = vpack.c.bf16 %v1565_v58, %v1565_v58 }
 0x351   : > { %vm1423_vm7 = vmor %vm1421_vm6, %vm1422_vm4  ;;  %v6700_v40 = vpack.c.b16 %v1729_v63, %v1728_v34  ;;  %vm1411_vm8 = vweird.f32 %v6570_v46  ;;  %v1399_v27 = vsub.f32 1.5, %v1398_v50  ;;  %v1598_v5 = vpack.c.bf16 %v1566_v13, %v1566_v13  ;;  %v8627_v50 = vld [vmem:[#allocation42_spill] sm:$0xff] }
 0x352   : > { %v1420_v41 = vmul.f32 %v6636_v20, %v1419_v4  ;;  %vm1413_vm9 = vmor %vm1411_vm8, %vm1412_vm5  ;;  %v1726_v55 = vunpack.c.l.b16 %v1597_v28  ;;  %vm1402_vm10 = vweird.f32 %v6662_v56  ;;  %vm1392_vm11 = vweird.f32 %v6669_v14 }
 0x353   : > { %v1400_v59 = vmul.f32 %v6662_v56, %v1399_v27  ;;  %v1727_v22 = vunpack.c.l.b16 %v1598_v5  ;;  %vm1401_vm12 = vweird.f32 %v6614_v62  ;;  %vm1391_vm14 = vweird.f32 %v6629_v26 }
 0x354   : > { %v1424_v37 = vsel %vm1423_vm7, %v6636_v20, %v1420_v41  ;;  %vm1403_vm13 = vmor %vm1401_vm12, %vm1402_vm10  ;;  %v2812_v13 = vpack.c.bf16 %v6179_v19, %v6179_v19 }
 0x355   : > { %1695 = vmatmul.bf16.gmra.mxu3 %v6328_v48  ;;  %v1409_v48 = vsub.f32 1.5, %v1408_v6  ;;  %v1389_v6 = vsub.f32 1.5, %v1388_v42  ;;  %v1564_v4 = vmul.f32 %v1424_v37, %v6388_v45  ;;  %v1404_v44 = vsel %vm1403_vm13, %v6662_v56, %v1400_v59  ;;  %vm1393_vm15 = vmor %vm1391_vm14, %vm1392_vm11 }
 0x356   : > { %1757 = vmatpush.bf16.xpose.msra.mxu3 %v6683_v21  ;;  %v1562_v58 = vmul.f32 %v1404_v44, %v6371_v12  ;;  %v2811_v56 = vpack.c.bf16 %v6126_v9, %v6126_v9  ;;  %v2809_v37 = vpack.c.bf16 %v6072_v17, %v6072_v17 }
 0x357   : > { %v1410_v54 = vmul.f32 %v6623_v10, %v1409_v48  ;;  %v1390_v0 = vmul.f32 %v6669_v14, %v1389_v6  ;;  %v1596_v20 = vpack.c.bf16 %v1564_v4, %v1564_v4 }
 0x358   : > { %v1594_v34 = vpack.c.bf16 %v1562_v58, %v1562_v58  ;;  %v3036_v27 = vunpack.c.l.b16 %v2811_v56  ;;  %v3034_v59 = vunpack.c.l.b16 %v2809_v37  ;;  %v2804_v58 = vpack.c.bf16 %v6148_v35, %v6148_v35 }
 0x359   : > { %v1414_v39 = vsel %vm1413_vm9, %v6623_v10, %v1410_v54  ;;  %v6714_v10 = vpack.c.b16 %v1727_v22, %v1726_v55  ;;  %v1394_v61 = vsel %vm1393_vm15, %v6669_v14, %v1390_v0  ;;  %v1725_v63 = vunpack.c.l.b16 %v1596_v20 }
 0x35a   : > { %v1563_v46 = vmul.f32 %v1414_v39, %v6294_v1  ;;  %v1723_v42 = vunpack.c.l.b16 %v1594_v34  ;;  %v3037_v54 = vunpack.c.l.b16 %v2812_v13  ;;  %v2810_v14 = vpack.c.bf16 %v6163_v15, %v6163_v15 }
 0x35b   : > { %v2808_v55 = vpack.c.bf16 %v6088_v24, %v6088_v24  ;;  %v2807_v22 = vpack.c.bf16 %v6236_v33, %v6236_v33  ;;  %v2806_v20 = vpack.c.bf16 %v6260_v52, %v6260_v52  ;;  %v2803_v34 = vpack.c.bf16 %v8625_v47, %v8625_v47 }
 0x35c   : > { %v1595_v48 = vpack.c.bf16 %v1563_v46, %v1563_v46  ;;  %v3045_v6 = vpack.c.b16 %v3037_v54, %v3036_v27  ;;  %v3035_v39 = vunpack.c.l.b16 %v2810_v14  ;;  %v2802_v56 = vpack.c.bf16 %v8626_v57, %v8626_v57 }
 0x35d   : > { %v3033_v0 = vunpack.c.l.b16 %v2808_v55  ;;  %v3032_v44 = vunpack.c.l.b16 %v2807_v22  ;;  %v2801_v54 = vpack.c.bf16 %v6320_v25, %v6320_v25  ;;  %v2800_v27 = vpack.c.bf16 %v6388_v45, %v6388_v45 }
 0x35e   : > { %1758 = vmatpush.bf16.xpose.msra.mxu3 %v6700_v40  ;;  %v1724_v62 = vunpack.c.l.b16 %v1595_v48  ;;  %v3044_v46 = vpack.c.b16 %v3035_v39, %v3034_v59  ;;  %v2805_v48 = vpack.c.bf16 %v6156_v53, %v6156_v53  ;;  %v2799_v39 = vpack.c.bf16 %v6294_v1, %v6294_v1 }
 0x35f   : > { %v3025_v59 = vunpack.c.l.b16 %v2800_v27  ;;  %v2798_v22 = vpack.c.bf16 %v6371_v12, %v6371_v12 }
 0x360   : > { %v1739_v41 = vpack.c.b16 %v1725_v63, %v1724_v62  ;;  %v3031_v63 = vunpack.c.l.b16 %v2806_v20  ;;  %v2797_v20 = vpack.c.bf16 %v8627_v50, %v8627_v50 }
 0x365   : > { %1700 = vmatmul.bf16.gmra.mxu3 %v6273_v2  ;;  %v1561_v2 = vmul.f32 %v1394_v61, %v8627_v50  ;;  %v6740_v61 = vpack.c.b16 %v3033_v0, %v3032_v44  ;;  %v3024_v0 = vunpack.c.l.b16 %v2799_v39 }
 0x366   : > { %1759 = vmatpush.bf16.xpose.msra.mxu3 %v6714_v10 }
 0x367   : > { %v1593_v26 = vpack.c.bf16 %v1561_v2, %v1561_v2  ;;  %v3030_v2 = vunpack.c.l.b16 %v2805_v48  ;;  %v6774_v44 = vpack.c.b16 %v3025_v59, %v3024_v0  ;;  %v3023_v48 = vunpack.c.l.b16 %v2798_v22 }
 0x369   : > { %v1722_v28 = vunpack.c.l.b16 %v1593_v26  ;;  %v6749_v13 = vpack.c.b16 %v3031_v63, %v3030_v2  ;;  %v3029_v26 = vunpack.c.l.b16 %v2804_v58  ;;  %v1803_v58 = vld [vmem:[%s5838_s14] sm:$0xff]  ;;  %v3022_v2 = vunpack.c.l.b16 %v2797_v20 }
 0x36a   : > { %vm1811_vm6 = vnez %v1803_v58 }
 0x36b   : > { %v1738_v5 = vpack.c.b16 %v1723_v42, %v1722_v28  ;;  %v3028_v42 = vunpack.c.l.b16 %v2803_v34  ;;  %v3027_v28 = vunpack.c.l.b16 %v2802_v56  ;;  %v8488_v34 = vmov 0  }
 0x36d   : > { %v6756_v14 = vpack.c.b16 %v3029_v26, %v3028_v42  ;;  %v3038_v42 = vpack.c.b16 %v3023_v48, %v3022_v2 }
 0x36e   : > { %1760 = vmatpush.bf16.xpose.msra.mxu3 %v1739_v41 }
 0x376   : > { %1761 = vmatpush.bf16.xpose.msra.mxu3 %v1738_v5 }
 0x378   : > { %v6732_v4 = vpop.f32.mrf.mxu3 }
 0x379   : > { %vm1819_vm1 = vcmp.gt.f32.partialorder %v6732_v4, 0.0 }
 0x37d   : > { %1762 = vmatmul.bf16.vlgmr.msra.gmra.mxu3 %v1738_v5  ;;  %v3026_v5 = vunpack.c.l.b16 %v2801_v54 }
 0x37e   : > { %3054 = vmatpush.bf16.msrb.mxu3 %v3045_v6 }
 0x37f   : > { %v6765_v55 = vpack.c.b16 %v3027_v28, %v3026_v5 }
 0x380   : > { %v6744_v62 = vpop.f32.mrf.mxu3 }
 0x381   : > { %vm1820_vm0 = vcmp.gt.f32.partialorder %v6744_v62, 0.0 }
 0x382   : > { %3055 = vmatpush.bf16.msrb.mxu3 %v3044_v46  ;;  %vm1851_vm2 = vmpackc.low %vm1820_vm0, %vm1819_vm1 }
 0x383   : > { %v1853_v26 = vsel %vm1851_vm2, 16711935, %v8488_v34 }
 0x386   : > { %3056 = vmatpush.bf16.msrb.mxu3 %v6740_v61 }
 0x388   : > { %v6760_v37 = vpop.f32.mrf.mxu3 }
 0x389   : > { %vm1821_vm3 = vcmp.gt.f32.partialorder %v6760_v37, 0.0 }
 0x38a   : > { %3057 = vmatpush.bf16.msrb.mxu3 %v6749_v13 }
 0x38d   : > { %1767 = vmatmul.bf16.gmra.mxu3 %v1739_v41 }
 0x38e   : > { %3058 = vmatpush.bf16.msrb.mxu3 %v6756_v14 }
 0x390   : > { %v1673_v63 = vpop.f32.mrf.mxu3 }
 0x391   : > { %vm1822_vm4 = vcmp.gt.f32.partialorder %v1673_v63, 0.0 }
 0x392   : > { %3059 = vmatpush.bf16.msrb.mxu3 %v6765_v55  ;;  %vm1852_vm5 = vmpackc.low %vm1822_vm4, %vm1821_vm3 }
 0x393   : > { %v1854_v56 = vsel %vm1852_vm5, 16711935, %v8488_v34 }
 0x394   : > { %v1855_v41 = vpack.c.b8 %v1854_v56, %v1853_v26 }
 0x396   : > { %3060 = vmatpush.bf16.msrb.mxu3 %v6774_v44  ;;  %vm1856_vm7 = vnez %v1855_v41 }
 0x397   : > { %vm1899_vm8 = vmand %vm1811_vm6, %vm1856_vm7 }
 0x398   : > { %v1907_v54 = vsel %vm1899_vm8, 16843009, %v8488_v34  ;;  %v6782_v28 = vpop.f32.mrf.mxu3 }
 0x399   : > { %v1916_v27 = vunpack.c.1.s8 %v1907_v54  ;;  %v1915_v5 = vunpack.c.0.s8 %v1907_v54  ;;  %v1917_v39 = vunpack.c.2.s8 %v1907_v54  ;;  %v1918_v59 = vunpack.c.3.s8 %v1907_v54 }
 0x39a   : > { %3061 = vmatpush.bf16.msrb.mxu3 %v3038_v42  ;;  %vm1823_vm13 = vcmp.gt.f32.partialorder %v6782_v28, 0.0 }
 0x39b   : > { %v1949_v22 = vpack.c.b16 %v1916_v27, %v1916_v27  ;;  %v1947_v0 = vpack.c.b16 %v1915_v5, %v1915_v5  ;;  %v1951_v20 = vpack.c.b16 %v1917_v39, %v1917_v39  ;;  %v1953_v50 = vpack.c.b16 %v1918_v59, %v1918_v59 }
 0x39d   : > { %v1950_v48 = vpack.c.b8 %v1949_v22, %v1949_v22  ;;  %v1948_v58 = vpack.c.b8 %v1947_v0, %v1947_v0  ;;  %v1952_v2 = vpack.c.b8 %v1951_v20, %v1951_v20  ;;  %1772 = vmatmul.bf16.gmra.mxu3 %v6714_v10  ;;  %v1804_v0 = vld [vmem:[%s5838_s14 + $0x8] sm:$0xff] }
 0x39e   : > { %3698 = vmatpush.bf16.msra.mxu3 %v3045_v6  ;;  %v1954_v6 = vpack.c.b8 %v1953_v50, %v1953_v50  ;;  %vm1812_vm7 = vnez %v1804_v0 }
 0x39f   : > { %vm2012_vm9 = vnez %v1950_v48  ;;  %vm2011_vm10 = vnez %v1948_v58  ;;  %vm2013_vm11 = vnez %v1952_v2 }
 0x3a0   : > { %v6786_v26 = vpop.f32.mrf.mxu3  ;;  %v2043_v56 = vsel %vm2011_vm10, 16843009, %v8488_v34  ;;  %vm2014_vm12 = vnez %v1954_v6  ;;  %v2045_v50 = vsel %vm2013_vm11, 16843009, %v8488_v34 }
 0x3a1   : > { %vm1824_vm14 = vcmp.gt.f32.partialorder %v6786_v26, 0.0  ;;  %v2075_v54 = vunpack.c.0.s8 %v2043_v56 }
 0x3a2   : > { %3699 = vmatpush.bf16.msra.mxu3 %v3044_v46  ;;  %v2044_v46 = vsel %vm2012_vm9, 16843009, %v8488_v34  ;;  %vm6793_vm15 = vmpackc.low %vm1824_vm14, %vm1823_vm13 }
 0x3a3   : > { %v2076_v41 = vunpack.c.0.s8 %v2044_v46  ;;  %vm2107_vm1 = vcmp.ne.s32.totalorder %v2075_v54, 0 }
 0x3a4   : > { %v6803_v5 = vsel %vm2107_vm1, %v6732_v4, 0.0 }
 0x3a5   : > { %vm2108_vm0 = vcmp.ne.s32.totalorder %v2076_v41, 0  ;;  %2171 = vadd.xlane.f32.xlu2 %v6803_v5 }
 0x3a6   : > { %3700 = vmatpush.bf16.msra.mxu3 %v6740_v61  ;;  %v2046_v61 = vsel %vm2014_vm12, 16843009, %v8488_v34  ;;  %v6800_v27 = vsel %vm2108_vm0, %v6744_v62, 0.0 }
 0x3a7   : > { %v2078_v39 = vunpack.c.0.s8 %v2046_v61  ;;  %2173 = vadd.xlane.f32.xlu0 %v6800_v27 }
 0x3a8   : > { %v1681_v22 = vpop.f32.mrf.mxu3 }
 0x3a9   : > { %vm2110_vm2 = vcmp.ne.s32.totalorder %v2078_v39, 0  ;;  %vm1825_vm4 = vcmp.gt.f32.partialorder %v1681_v22, 0.0 }
 0x3aa   : > { %3701 = vmatpush.bf16.msra.mxu3 %v6749_v13  ;;  %v2077_v13 = vunpack.c.0.s8 %v2045_v50  ;;  %v6808_v59 = vsel %vm2110_vm2, %v1673_v63, 0.0 }
 0x3ac   : > { %vm2109_vm3 = vcmp.ne.s32.totalorder %v2077_v13, 0 }
 0x3ad   : > { %v6812_v62 = vsel %vm2109_vm3, %v6760_v37, 0.0  ;;  %1777 = vmatmul.bf16.gmra.mxu3 %v6700_v40 }
 0x3ae   : > { %3702 = vmatpush.bf16.msra.mxu3 %v6756_v14  ;;  %v1859_v14 = vsel %vm6793_vm15, 16711935, %v8488_v34 }
 0x3af   : > { %2175 = vadd.xlane.f32.xlu0 %v6812_v62 }
 0x3b0   : > { %v1683_v4 = vpop.f32.mrf.mxu3 }
 0x3b1   : > { %vm1826_vm5 = vcmp.gt.f32.partialorder %v1683_v4, 0.0 }
 0x3b2   : > { %3703 = vmatpush.bf16.msra.mxu3 %v6765_v55  ;;  %vm1858_vm6 = vmpackc.low %vm1826_vm5, %vm1825_vm4 }
 0x3b3   : > { %v1860_v55 = vsel %vm1858_vm6, 16711935, %v8488_v34 }
 0x3b4   : > { %v1861_v37 = vpack.c.b8 %v1860_v55, %v1859_v14 }
 0x3b6   : > { %3704 = vmatpush.bf16.msra.mxu3 %v6774_v44  ;;  %vm1862_vm8 = vnez %v1861_v37 }
 0x3b7   : > { %vm1900_vm9 = vmand %vm1812_vm7, %vm1862_vm8 }
 0x3b8   : > { %v1908_v44 = vsel %vm1900_vm9, 16843009, %v8488_v34  ;;  %v6823_v63 = vpop.f32.mrf.mxu3 }
 0x3b9   : > { %v1920_v40 = vunpack.c.1.s8 %v1908_v44  ;;  %v1921_v20 = vunpack.c.2.s8 %v1908_v44  ;;  %v1922_v48 = vunpack.c.3.s8 %v1908_v44  ;;  %v1919_v58 = vunpack.c.0.s8 %v1908_v44 }
 0x3ba   : > { %3705 = vmatpush.bf16.msra.mxu3 %v3038_v42  ;;  %vm1827_vm3 = vcmp.gt.f32.partialorder %v6823_v63, 0.0 }
 0x3bb   : > { %v1957_v42 = vpack.c.b16 %v1920_v40, %v1920_v40  ;;  %v1959_v2 = vpack.c.b16 %v1921_v20, %v1921_v20  ;;  %v1961_v6 = vpack.c.b16 %v1922_v48, %v1922_v48  ;;  %v1955_v46 = vpack.c.b16 %v1919_v58, %v1919_v58 }
 0x3bd   : > { %v1960_v56 = vpack.c.b8 %v1959_v2, %v1959_v2  ;;  %v1962_v41 = vpack.c.b8 %v1961_v6, %v1961_v6  ;;  %v1958_v54 = vpack.c.b8 %v1957_v42, %v1957_v42  ;;  %v1956_v10 = vpack.c.b8 %v1955_v46, %v1955_v46  ;;  %1782 = vmatmul.bf16.gmra.mxu3 %v6683_v21 }
 0x3be   : > { %v2235_v46 = vadd.f32 %v6800_v27, %v6803_v5 }
 0x3bf   : > { %vm2017_vm10 = vnez %v1960_v56  ;;  %vm2018_vm11 = vnez %v1962_v41  ;;  %vm2016_vm12 = vnez %v1958_v54  ;;  %vm2015_vm13 = vnez %v1956_v10 }
 0x3c0   : > { %v2050_v50 = vsel %vm2018_vm11, 16843009, %v8488_v34  ;;  %v6827_v61 = vpop.f32.mrf.mxu3  ;;  %v2048_v39 = vsel %vm2016_vm12, 16843009, %v8488_v34  ;;  %v2049_v13 = vsel %vm2017_vm10, 16843009, %v8488_v34  ;;  %v2236_v10 = vadd.f32 %v2235_v46, %v6812_v62 }
 0x3c1   : > { %v2082_v0 = vunpack.c.0.s8 %v2050_v50  ;;  %v2047_v14 = vsel %vm2015_vm13, 16843009, %v8488_v34  ;;  %v2080_v55 = vunpack.c.0.s8 %v2048_v39  ;;  %v2081_v44 = vunpack.c.0.s8 %v2049_v13 }
 0x3c2   : > { %v2079_v37 = vunpack.c.0.s8 %v2047_v14  ;;  %vm1828_vm2 = vcmp.gt.f32.partialorder %v6827_v61, 0.0 }
 0x3c3   : > { %vm2114_vm14 = vcmp.ne.s32.totalorder %v2082_v0, 0  ;;  %vm2112_vm15 = vcmp.ne.s32.totalorder %v2080_v55, 0  ;;  %vm2113_vm1 = vcmp.ne.s32.totalorder %v2081_v44, 0  ;;  %vm1863_vm4 = vmpackc.low %vm1828_vm2, %vm1827_vm3  ;;  %v2237_v0 = vadd.f32 %v2236_v10, %v6808_v59 }
 0x3c4   : > { %v6832_v21 = vsel %vm2114_vm14, %v1683_v4, 0.0  ;;  %vm2111_vm0 = vcmp.ne.s32.totalorder %v2079_v37, 0  ;;  %v6835_v40 = vsel %vm2112_vm15, %v6786_v26, 0.0  ;;  %v6840_v48 = vsel %vm2113_vm1, %v1681_v22, 0.0  ;;  %v1805_v26 = vld [vmem:[%s5838_s14 + $0x10] sm:$0xff] }
 0x3c5   : > { %v6838_v20 = vsel %vm2111_vm0, %v6782_v28, 0.0  ;;  %v1865_v28 = vsel %vm1863_vm4, 16711935, %v8488_v34  ;;  %vm1813_vm8 = vnez %v1805_v26 }
 0x3c6   : > { %v2238_v37 = vadd.f32 %v2237_v0, %v6838_v20 }
 0x3c8   : > { %v6842_v58 = vpop.f32.mrf.mxu3 }
 0x3c9   : > { %vm1829_vm5 = vcmp.gt.f32.partialorder %v6842_v58, 0.0 }
 0x3cd   : > { %1787 = vmatmul.bf16.gmra.mxu3 %v6655_v60 }
 0x3d0   : > { %v6847_v4 = vpop.f32.mrf.mxu3 }
 0x3d1   : > { %vm1830_vm6 = vcmp.gt.f32.partialorder %v6847_v4, 0.0 }
 0x3d2   : > { %vm1864_vm7 = vmpackc.low %vm1830_vm6, %vm1829_vm5 }
 0x3d3   : > { %v1866_v22 = vsel %vm1864_vm7, 16711935, %v8488_v34 }
 0x3d4   : > { %v1867_v42 = vpack.c.b8 %v1866_v22, %v1865_v28  ;;  %v2239_v22 = vadd.f32 %v2238_v37, %v6835_v40 }
 0x3d6   : > { %vm1868_vm9 = vnez %v1867_v42 }
 0x3d7   : > { %vm1901_vm10 = vmand %vm1813_vm8, %vm1868_vm9 }
 0x3d8   : > { %v1909_v2 = vsel %vm1901_vm10, 16843009, %v8488_v34  ;;  %v6855_v60 = vpop.f32.mrf.mxu3 }
 0x3d9   : > { %v1923_v6 = vunpack.c.0.s8 %v1909_v2  ;;  %v1924_v41 = vunpack.c.1.s8 %v1909_v2  ;;  %v1925_v50 = vunpack.c.2.s8 %v1909_v2  ;;  %v1926_v44 = vunpack.c.3.s8 %v1909_v2 }
 0x3da   : > { %vm1831_vm15 = vcmp.gt.f32.partialorder %v6855_v60, 0.0  ;;  %v2240_v2 = vadd.f32 %v2239_v22, %v6840_v48 }
 0x3db   : > { %v1963_v56 = vpack.c.b16 %v1923_v6, %v1923_v6  ;;  %v1965_v13 = vpack.c.b16 %v1924_v41, %v1924_v41  ;;  %v1967_v14 = vpack.c.b16 %v1925_v50, %v1925_v50  ;;  %v1969_v42 = vpack.c.b16 %v1926_v44, %v1926_v44 }
 0x3dd   : > { %1792 = vmatmul.bf16.gmra.mxu3 %v6616_v18  ;;  %v1964_v39 = vpack.c.b8 %v1963_v56, %v1963_v56  ;;  %v1966_v55 = vpack.c.b8 %v1965_v13, %v1965_v13  ;;  %v1968_v18 = vpack.c.b8 %v1967_v14, %v1967_v14  ;;  %v1970_v56 = vpack.c.b8 %v1969_v42, %v1969_v42 }
 0x3de   : > { %v2241_v14 = vadd.f32 %v2240_v2, %v6832_v21 }
 0x3df   : > { %vm2019_vm11 = vnez %v1964_v39  ;;  %vm2020_vm12 = vnez %v1966_v55  ;;  %vm2021_vm14 = vnez %v1968_v18  ;;  %v1806_v39 = vld [vmem:[%s5838_s14 + $0x18] sm:$0xff]  ;;  %vm2022_vm5 = vnez %v1970_v56 }
 0x3e0   : > { %v6860_v54 = vpop.f32.mrf.mxu3  ;;  %v2051_v28 = vsel %vm2019_vm11, 16843009, %v8488_v34  ;;  %v2052_v46 = vsel %vm2020_vm12, 16843009, %v8488_v34  ;;  %v2053_v10 = vsel %vm2021_vm14, 16843009, %v8488_v34  ;;  %vm1814_vm6 = vnez %v1806_v39 }
 0x3e1   : > { %v2083_v6 = vunpack.c.0.s8 %v2051_v28  ;;  %vm1832_vm13 = vcmp.gt.f32.partialorder %v6860_v54, 0.0  ;;  %v2084_v50 = vunpack.c.0.s8 %v2052_v46  ;;  %v2085_v55 = vunpack.c.0.s8 %v2053_v10 }
 0x3e2   : > { %vm1869_vm1 = vmpackc.low %vm1832_vm13, %vm1831_vm15  ;;  %v2054_v28 = vsel %vm2022_vm5, 16843009, %v8488_v34 }
 0x3e3   : > { %vm2115_vm0 = vcmp.ne.s32.totalorder %v2083_v6, 0  ;;  %v1871_v13 = vsel %vm1869_vm1, 16711935, %v8488_v34  ;;  %vm2116_vm7 = vcmp.ne.s32.totalorder %v2084_v50, 0  ;;  %vm2117_vm10 = vcmp.ne.s32.totalorder %v2085_v55, 0 }
 0x3e4   : > { %v6883_v0 = vsel %vm2115_vm0, %v6823_v63, 0.0  ;;  %v6889_v18 = vsel %vm2116_vm7, %v6827_v61, 0.0  ;;  %v2086_v2 = vunpack.c.0.s8 %v2054_v28  ;;  %v8630_v28 = vmov 0  }
 0x3e5   : > { %v2242_v44 = vadd.f32 %v2241_v14, %v6883_v0 }
 0x3e6   : > { %vm2118_vm11 = vcmp.ne.s32.totalorder %v2086_v2, 0 }
 0x3e7   : > { %v2243_v56 = vadd.f32 %v2242_v44, %v6889_v18 }
 0x3e8   : > { %v6865_v26 = vpop.f32.mrf.mxu3 }
 0x3e9   : > { %vm1833_vm2 = vcmp.gt.f32.partialorder %v6865_v26, 0.0 }
 0x3ed   : > { %1797 = vmatmul.bf16.gmra.mxu3 %v6572_v7 }
 0x3f0   : > { %v6874_v41 = vpop.f32.mrf.mxu3 }
 0x3f1   : > { %vm1834_vm3 = vcmp.gt.f32.partialorder %v6874_v41, 0.0 }
 0x3f2   : > { %vm1870_vm4 = vmpackc.low %vm1834_vm3, %vm1833_vm2 }
 0x3f3   : > { %v1872_v7 = vsel %vm1870_vm4, 16711935, %v8488_v34 }
 0x3f4   : > { %v1873_v37 = vpack.c.b8 %v1872_v7, %v1871_v13  ;;  %v6894_v7 = vsel %vm2117_vm10, %v6842_v58, 0.0 }
 0x3f6   : > { %vm1874_vm8 = vnez %v1873_v37 }
 0x3f7   : > { %vm1902_vm9 = vmand %vm1814_vm6, %vm1874_vm8 }
 0x3f8   : > { %v1910_v63 = vsel %vm1902_vm9, 16843009, %v8488_v34  ;;  %v2244_v34 = vadd.f32 %v2243_v56, %v6894_v7 }
 0x3f9   : > { %v1927_v22 = vunpack.c.0.s8 %v1910_v63  ;;  %v1928_v42 = vunpack.c.1.s8 %v1910_v63  ;;  %v1929_v6 = vunpack.c.2.s8 %v1910_v63  ;;  %v1930_v46 = vunpack.c.3.s8 %v1910_v63 }
 0x3fb   : > { %v1971_v10 = vpack.c.b16 %v1927_v22, %v1927_v22  ;;  %v1973_v50 = vpack.c.b16 %v1928_v42, %v1928_v42  ;;  %v1975_v39 = vpack.c.b16 %v1929_v6, %v1929_v6  ;;  %v1977_v13 = vpack.c.b16 %v1930_v46, %v1930_v46 }
 0x3fd   : > { %v1972_v14 = vpack.c.b8 %v1971_v10, %v1971_v10  ;;  %v1974_v55 = vpack.c.b8 %v1973_v50, %v1973_v50  ;;  %v1976_v61 = vpack.c.b8 %v1975_v39, %v1975_v39  ;;  %v1978_v37 = vpack.c.b8 %v1977_v13, %v1977_v13 }
 0x3fe   : > { %v6902_v10 = vsel %vm2118_vm11, %v6847_v4, 0.0 }
 0x3ff   : > { %vm2023_vm12 = vnez %v1972_v14  ;;  %vm2024_vm13 = vnez %v1974_v55  ;;  %vm2025_vm14 = vnez %v1976_v61  ;;  %vm2026_vm15 = vnez %v1978_v37 }
 0x400   : > { %v2055_v44 = vsel %vm2023_vm12, 16843009, %v8630_v28  ;;  %v2056_v63 = vsel %vm2024_vm13, 16843009, %v8630_v28  ;;  %v2057_v22 = vsel %vm2025_vm14, 16843009, %v8630_v28  ;;  %v6904_v2 = vpop.f32.mrf.mxu3  ;;  %v2245_v50 = vadd.f32 %v2244_v34, %v6902_v10 }
 0x401   : > { %v2058_v58 = vsel %vm2026_vm15, 16843009, %v8630_v28  ;;  %v2087_v42 = vunpack.c.0.s8 %v2055_v44  ;;  %v2088_v6 = vunpack.c.0.s8 %v2056_v63  ;;  %v2089_v46 = vunpack.c.0.s8 %v2057_v22 }
 0x402   : > { %v2090_v56 = vunpack.c.0.s8 %v2058_v58  ;;  %vm1835_vm5 = vcmp.gt.f32.partialorder %v6904_v2, 0.0 }
 0x403   : > { %vm2119_vm0 = vcmp.ne.s32.totalorder %v2087_v42, 0  ;;  %vm2120_vm1 = vcmp.ne.s32.totalorder %v2088_v6, 0  ;;  %vm2121_vm2 = vcmp.ne.s32.totalorder %v2089_v46, 0 }
 0x404   : > { %v6908_v39 = vsel %vm2119_vm0, %v6855_v60, 0.0  ;;  %v6912_v14 = vsel %vm2120_vm1, %v6860_v54, 0.0  ;;  %vm2122_vm3 = vcmp.ne.s32.totalorder %v2090_v56, 0  ;;  %v6916_v55 = vsel %vm2121_vm2, %v6865_v26, 0.0  ;;  %v1807_v56 = vld [vmem:[%s5838_s14 + $0x20] sm:$0xff] }
 0x405   : > { %v2246_v13 = vadd.f32 %v2245_v50, %v6908_v39  ;;  %v6920_v37 = vsel %vm2122_vm3, %v6874_v41, 0.0  ;;  %vm1815_vm10 = vnez %v1807_v56 }
 0x407   : > { %v2247_v4 = vadd.f32 %v2246_v13, %v6912_v14 }
 0x408   : > { %v6922_v34 = vpop.f32.mrf.mxu3 }
 0x409   : > { %v2248_v61 = vadd.f32 %v2247_v4, %v6916_v55  ;;  %vm1836_vm4 = vcmp.gt.f32.partialorder %v6922_v34, 0.0 }
 0x40a   : > { %vm1875_vm6 = vmpackc.low %vm1836_vm4, %vm1835_vm5 }
 0x40b   : > { %v2249_v60 = vadd.f32 %v2248_v61, %v6920_v37  ;;  %v1877_v50 = vsel %vm1875_vm6, 16711935, %v8630_v28 }
 0x40d   : > { %v2250_v44 = vrot.slane %v2249_v60, 4 }
 0x40f   : > { %v2251_v63 = vadd.f32 %v2250_v44, %v2249_v60 }
 0x410   : > { %v6925_v22 = vpop.f32.mrf.mxu3 }
 0x411   : > { %v2252_v54 = vrot.slane %v2251_v63, 2  ;;  %vm1837_vm7 = vcmp.gt.f32.partialorder %v6925_v22, 0.0 }
 0x413   : > { %v2253_v58 = vadd.f32 %v2252_v54, %v2251_v63 }
 0x415   : > { %v2254_v42 = vrot.slane %v2253_v58, 1 }
 0x417   : > { %v6928_v26 = vadd.f32 %v2254_v42, %v2253_v58 }
 0x418   : > { %v6932_v41 = vpop.xlane.xlu2 %2171  ;;  %v6936_v46 = vpop.f32.mrf.mxu3 }
 0x419   : > { %vm1838_vm8 = vcmp.gt.f32.partialorder %v6936_v46, 0.0  ;;  %vm2315_vm0 = vweird.f32 %v6932_v41  ;;  %vm2277_vm6 = vcmp.gt.f32.partialorder %v6932_v41, 0.0 }
 0x41a   : > { %v6930_v6 = vpop.xlane.xlu0 %2173  ;;  %vm1876_vm9 = vmpackc.low %vm1838_vm8, %vm1837_vm7 }
 0x41b   : > { %5173 = vrsqrt.f32 %v6930_v6  ;;  %v1878_v13 = vsel %vm1876_vm9, 16711935, %v8630_v28  ;;  %vm2325_vm15 = vweird.f32 %v6930_v6  ;;  %vm2278_vm5 = vcmp.gt.f32.partialorder %v6930_v6, 0.0 }
 0x41c   : > { %5175 = vrsqrt.f32 %v6932_v41  ;;  %v1879_v4 = vpack.c.b8 %v1878_v13, %v1877_v50 }
 0x41d   : > { %5177 = vrsqrt.f32 %v6928_v26 }
 0x41e   : > { %vm1880_vm11 = vnez %v1879_v4 }
 0x41f   : > { %vm1903_vm12 = vmand %vm1815_vm10, %vm1880_vm11 }
 0x420   : > { %v1911_v58 = vsel %vm1903_vm12, 16843009, %v8630_v28  ;;  %v6950_v12 = vpop.f32.mrf.mxu3 }
 0x421   : > { %v5174_v61 = vpop.eup %5173  ;;  %v1934_v50 = vunpack.c.3.s8 %v1911_v58  ;;  %v1932_v13 = vunpack.c.1.s8 %v1911_v58  ;;  %v1931_v4 = vunpack.c.0.s8 %v1911_v58  ;;  %v1933_v15 = vunpack.c.2.s8 %v1911_v58 }
 0x422   : > { %v5176_v60 = vpop.eup %5175  ;;  %v2320_v44 = vmul.f32 %v5174_v61, %v6930_v6  ;;  %vm2326_vm13 = vweird.f32 %v5174_v61 }
 0x423   : > { %v6946_v63 = vpop.eup %5177  ;;  %v2310_v54 = vmul.f32 %v5176_v60, %v6932_v41  ;;  %v1985_v24 = vpack.c.b16 %v1934_v50, %v1934_v50  ;;  %v1981_v33 = vpack.c.b16 %v1932_v13, %v1932_v13  ;;  %vm2316_vm14 = vweird.f32 %v5176_v60  ;;  %vm6958_vm1 = vmor %vm2325_vm15, %vm2326_vm13 }
 0x424   : > { %v2321_v42 = vmul.f32 %v5174_v61, %v2320_v44  ;;  %v2664_v19 = vmul.f32 %v6946_v63, %v6928_v26  ;;  %v1979_v53 = vpack.c.b16 %v1931_v4, %v1931_v4  ;;  %v1983_v25 = vpack.c.b16 %v1933_v15, %v1933_v15  ;;  %vm2317_vm4 = vmor %vm2315_vm0, %vm2316_vm14 }
 0x425   : > { %v2311_v56 = vmul.f32 %v5176_v60, %v2310_v54  ;;  %v1986_v47 = vpack.c.b8 %v1985_v24, %v1985_v24  ;;  %v1982_v57 = vpack.c.b8 %v1981_v33, %v1981_v33  ;;  %vm2670_vm11 = vweird.f32 %v6946_v63 }
 0x426   : > { %v2322_v9 = vmul.f32 0.5, %v2321_v42  ;;  %v2665_v44 = vmul.f32 %v6946_v63, %v2664_v19  ;;  %v1984_v42 = vpack.c.b8 %v1983_v25, %v1983_v25  ;;  %vm2669_vm13 = vweird.f32 %v6928_v26 }
 0x427   : > { %v2312_v17 = vmul.f32 0.5, %v2311_v56  ;;  %vm2030_vm2 = vnez %v1986_v47  ;;  %vm2028_vm3 = vnez %v1982_v57  ;;  %vm2671_vm14 = vmor %vm2669_vm13, %vm2670_vm11  ;;  %vm2661_vm0 = vcmp.gt.f32.partialorder %v6928_v26, 0.0 }
 0x428   : > { %v2323_v52 = vsub.f32 1.5, %v2322_v9  ;;  %v1980_v9 = vpack.c.b8 %v1979_v53, %v1979_v53  ;;  %v6965_v24 = vpop.f32.mrf.mxu3  ;;  %v2062_v15 = vsel %vm2030_vm2, 16843009, %v8630_v28  ;;  %v2060_v19 = vsel %vm2028_vm3, 16843009, %v8630_v28 }
 0x429   : > { %v2313_v35 = vsub.f32 1.5, %v2312_v17  ;;  %v2666_v56 = vmul.f32 0.5, %v2665_v44  ;;  %vm2029_vm10 = vnez %v1984_v42  ;;  %vm1839_vm2 = vcmp.gt.f32.partialorder %v6950_v12, 0.0 }
 0x42a   : > { %v2324_v45 = vmul.f32 %v5174_v61, %v2323_v52  ;;  %v2094_v52 = vunpack.c.0.s8 %v2062_v15  ;;  %vm2027_vm8 = vnez %v1980_v9  ;;  %v2061_v41 = vsel %vm2029_vm10, 16843009, %v8630_v28  ;;  %v1808_v15 = vld [vmem:[%s5838_s14 + $0x28] sm:$0xff] }
 0x42b   : > { %v2314_v58 = vmul.f32 %v5176_v60, %v2313_v35  ;;  %v2092_v35 = vunpack.c.0.s8 %v2060_v19  ;;  %v2059_v57 = vsel %vm2027_vm8, 16843009, %v8630_v28  ;;  %v2667_v6 = vsub.f32 1.5, %v2666_v56 }
 0x42c   : > { %v2328_v17 = vsel %vm6958_vm1, %v5174_v61, %v2324_v45  ;;  %vm2126_vm7 = vcmp.ne.s32.totalorder %v2094_v52, 0  ;;  %v2091_v61 = vunpack.c.0.s8 %v2059_v57  ;;  %vm1840_vm1 = vcmp.gt.f32.partialorder %v6965_v24, 0.0 }
 0x42d   : > { %v2318_v33 = vsel %vm2317_vm4, %v5176_v60, %v2314_v58  ;;  %v2630_v47 = vsel %vm2278_vm5, %v2328_v17, 0.0  ;;  %v6972_v45 = vsel %vm2126_vm7, %v6936_v46, 0.0  ;;  %vm2124_vm9 = vcmp.ne.s32.totalorder %v2092_v35, 0  ;;  %vm1881_vm3 = vmpackc.low %vm1840_vm1, %vm1839_vm2 }
 0x42e   : > { %v2629_v53 = vsel %vm2277_vm6, %v2318_v33, 0.0  ;;  %2209 = vadd.xlane.f32.xlu0 %v6972_v45  ;;  %v6977_v25 = vsel %vm2124_vm9, %v6922_v34, 0.0  ;;  %vm2123_vm12 = vcmp.ne.s32.totalorder %v2091_v61, 0  ;;  %v2093_v46 = vunpack.c.0.s8 %v2061_v41 }
 0x42f   : > { %2205 = vadd.xlane.f32.xlu2 %v6977_v25  ;;  %v2668_v60 = vmul.f32 %v6946_v63, %v2667_v6  ;;  %v2686_v50 = vmul.f32 %v2630_v47, %v6800_v27  ;;  %v2685_v13 = vmul.f32 %v2629_v53, %v6803_v5  ;;  %v6986_v34 = vsel %vm2123_vm12, %v6904_v2, 0.0 }
 0x430   : > { %v6988_v4 = vpop.f32.mrf.mxu3  ;;  %2203 = vadd.xlane.f32.xlu1 %v6986_v34  ;;  %vm2125_vm15 = vcmp.ne.s32.totalorder %v2093_v46, 0  ;;  %vm1816_vm7 = vnez %v1808_v15 }
 0x431   : > { %v2672_v44 = vsel %vm2671_vm14, %v6946_v63, %v2668_v60  ;;  %v7000_v2 = vsel %vm2125_vm15, %v6925_v22, 0.0  ;;  %vm1841_vm4 = vcmp.gt.f32.partialorder %v6988_v4, 0.0  ;;  %v1883_v22 = vsel %vm1881_vm3, 16711935, %v8630_v28 }
 0x432   : > { %v6994_v54 = vsel %vm2661_vm0, %v2672_v44, 0.0 }
 0x433   : > { %v2717_v27 = vmul.f32 %v2685_v13, %v6994_v54  ;;  %v2718_v5 = vmul.f32 %v2686_v50, %v6994_v54 }
 0x435   : > { %v2749_v58 = vpack.c.bf16 %v2717_v27, %v2717_v27  ;;  %v2750_v9 = vpack.c.bf16 %v2718_v5, %v2718_v5 }
 0x437   : > { %2207 = vadd.xlane.f32.xlu2 %v7000_v2  ;;  %v2829_v63 = vunpack.c.l.b16 %v2749_v58  ;;  %v2830_v17 = vunpack.c.l.b16 %v2750_v9 }
 0x438   : > { %v1780_v26 = vpop.f32.mrf.mxu3  ;;  %2177 = vadd.xlane.f32.xlu1 %v6808_v59 }
 0x439   : > { %vm1842_vm5 = vcmp.gt.f32.partialorder %v1780_v26, 0.0  ;;  %v7007_v19 = vpack.c.b16 %v2830_v17, %v2829_v63 }
 0x43a   : > { %vm1882_vm6 = vmpackc.low %vm1842_vm5, %vm1841_vm4 }
 0x43b   : > { %8633 = vst [vmem:[#allocation55_spill] sm:$0xff] %v7007_v19  ;;  %v1884_v33 = vsel %vm1882_vm6, 16711935, %v8630_v28  ;;  %2917 = vmatmul.bf16.vlgmr.msrb.gmra.mxu2 %v7007_v19 }
 0x43c   : > { %v1885_v52 = vpack.c.b8 %v1884_v33, %v1883_v22 }
 0x43e   : > { %vm1886_vm8 = vnez %v1885_v52 }
 0x43f   : > { %2181 = vadd.xlane.f32.xlu2 %v6835_v40  ;;  %vm1904_vm9 = vmand %vm1816_vm7, %vm1886_vm8 }
 0x440   : > { %v1912_v42 = vsel %vm1904_vm9, 16843009, %v8630_v28  ;;  %v7014_v56 = vpop.f32.mrf.mxu3  ;;  %2179 = vadd.xlane.f32.xlu1 %v6838_v20 }
 0x441   : > { %v1938_v35 = vunpack.c.3.s8 %v1912_v42  ;;  %v1936_v47 = vunpack.c.1.s8 %v1912_v42  ;;  %v1935_v53 = vunpack.c.0.s8 %v1912_v42  ;;  %v1937_v57 = vunpack.c.2.s8 %v1912_v42 }
 0x442   : > { %vm1843_vm3 = vcmp.gt.f32.partialorder %v7014_v56, 0.0 }
 0x443   : > { %v1993_v61 = vpack.c.b16 %v1938_v35, %v1938_v35  ;;  %v1989_v6 = vpack.c.b16 %v1936_v47, %v1936_v47  ;;  %v1987_v41 = vpack.c.b16 %v1935_v53, %v1935_v53  ;;  %v1991_v46 = vpack.c.b16 %v1937_v57, %v1937_v57 }
 0x445   : > { %v1994_v60 = vpack.c.b8 %v1993_v61, %v1993_v61  ;;  %v1990_v50 = vpack.c.b8 %v1989_v6, %v1989_v6  ;;  %v1988_v13 = vpack.c.b8 %v1987_v41, %v1987_v41  ;;  %v1992_v44 = vpack.c.b8 %v1991_v46, %v1991_v46 }
 0x447   : > { %2183 = vadd.xlane.f32.xlu2 %v6840_v48  ;;  %vm2034_vm10 = vnez %v1994_v60  ;;  %vm2032_vm11 = vnez %v1990_v50  ;;  %vm2031_vm12 = vnez %v1988_v13  ;;  %vm2033_vm13 = vnez %v1992_v44 }
 0x448   : > { %v7018_v27 = vpop.f32.mrf.mxu3  ;;  %v2066_v5 = vsel %vm2034_vm10, 16843009, %v8630_v28  ;;  %v2064_v58 = vsel %vm2032_vm11, 16843009, %v8630_v28  ;;  %v2063_v9 = vsel %vm2031_vm12, 16843009, %v8630_v28 }
 0x449   : > { %v2098_v63 = vunpack.c.0.s8 %v2066_v5  ;;  %v2096_v17 = vunpack.c.0.s8 %v2064_v58  ;;  %v2095_v15 = vunpack.c.0.s8 %v2063_v9  ;;  %v2065_v22 = vsel %vm2033_vm13, 16843009, %v8630_v28 }
 0x44a   : > { %v2097_v35 = vunpack.c.0.s8 %v2065_v22  ;;  %vm1844_vm2 = vcmp.gt.f32.partialorder %v7018_v27, 0.0 }
 0x44b   : > { %vm2130_vm14 = vcmp.ne.s32.totalorder %v2098_v63, 0  ;;  %vm2128_vm15 = vcmp.ne.s32.totalorder %v2096_v17, 0  ;;  %vm2127_vm0 = vcmp.ne.s32.totalorder %v2095_v15, 0  ;;  %vm1887_vm4 = vmpackc.low %vm1844_vm2, %vm1843_vm3  ;;  %v2256_v15 = vadd.f32 %v6977_v25, %v6986_v34 }
 0x44c   : > { %v7024_v33 = vsel %vm2130_vm14, %v1780_v26, 0.0  ;;  %v7027_v52 = vsel %vm2128_vm15, %v6965_v24, 0.0  ;;  %v7030_v42 = vsel %vm2127_vm0, %v6950_v12, 0.0  ;;  %vm2129_vm1 = vcmp.ne.s32.totalorder %v2097_v35, 0  ;;  %v1809_v24 = vld [vmem:[%s5838_s14 + $0x30] sm:$0xff] }
 0x44d   : > { %2213 = vadd.xlane.f32.xlu1 %v7027_v52  ;;  %2211 = vadd.xlane.f32.xlu0 %v7030_v42  ;;  %v7038_v26 = vsel %vm2129_vm1, %v6988_v4, 0.0  ;;  %v1889_v53 = vsel %vm1887_vm4, 16711935, %v8630_v28  ;;  %vm1817_vm8 = vnez %v1809_v24 }
 0x44f   : > { %2217 = vadd.xlane.f32.xlu2 %v7024_v33 }
 0x450   : > { %v7035_v47 = vpop.f32.mrf.mxu3 }
 0x451   : > { %vm1845_vm5 = vcmp.gt.f32.partialorder %v7035_v47, 0.0 }
 0x455   : > { %2215 = vadd.xlane.f32.xlu1 %v7038_v26  ;;  %2185 = vadd.xlane.f32.xlu0 %v6832_v21 }
 0x458   : > { %v1790_v12 = vpop.f32.mrf.mxu3 }
 0x459   : > { %vm1846_vm6 = vcmp.gt.f32.partialorder %v1790_v12, 0.0 }
 0x45a   : > { %vm1888_vm7 = vmpackc.low %vm1846_vm6, %vm1845_vm5 }
 0x45b   : > { %v1890_v4 = vsel %vm1888_vm7, 16711935, %v8630_v28 }
 0x45c   : > { %v1891_v57 = vpack.c.b8 %v1890_v4, %v1889_v53 }
 0x45d   : > { %2189 = vadd.xlane.f32.xlu1 %v6889_v18  ;;  %2187 = vadd.xlane.f32.xlu0 %v6883_v0 }
 0x45e   : > { %vm1892_vm9 = vnez %v1891_v57 }
 0x45f   : > { %vm1905_vm10 = vmand %vm1817_vm8, %vm1892_vm9 }
 0x460   : > { %v1913_v61 = vsel %vm1905_vm10, 16843009, %v8630_v28  ;;  %v7051_v6 = vpop.f32.mrf.mxu3 }
 0x461   : > { %v1942_v41 = vunpack.c.3.s8 %v1913_v61  ;;  %v1940_v46 = vunpack.c.1.s8 %v1913_v61  ;;  %v1939_v60 = vunpack.c.0.s8 %v1913_v61  ;;  %v1941_v50 = vunpack.c.2.s8 %v1913_v61 }
 0x462   : > { %vm1847_vm4 = vcmp.gt.f32.partialorder %v7051_v6, 0.0 }
 0x463   : > { %v2001_v13 = vpack.c.b16 %v1942_v41, %v1942_v41  ;;  %v1997_v44 = vpack.c.b16 %v1940_v46, %v1940_v46  ;;  %v1995_v5 = vpack.c.b16 %v1939_v60, %v1939_v60  ;;  %v1999_v58 = vpack.c.b16 %v1941_v50, %v1941_v50 }
 0x464   : > { %v2257_v46 = vadd.f32 %v2256_v15, %v7000_v2  ;;  %v1810_v15 = vld [vmem:[%s5838_s14 + $0x38] sm:$0xff]  ;;  %s5497_s14 = scalar_lea.hbm %s5496_s29, 256 }
 0x465   : > { %2191 = vadd.xlane.f32.xlu1 %v6894_v7  ;;  %v2002_v9 = vpack.c.b8 %v2001_v13, %v2001_v13  ;;  %v1998_v63 = vpack.c.b8 %v1997_v44, %v1997_v44  ;;  %v1996_v17 = vpack.c.b8 %v1995_v5, %v1995_v5  ;;  %v2000_v22 = vpack.c.b8 %v1999_v58, %v1999_v58  ;;  %p5498_p12 = scmp.ne.s32.totalorder %s5496_s29, %s5497_s14  ;;  %p5503_p11 = scmp.lt.s32.totalorder %s5501_s17, %s5497_s14 }
 0x466   : > { %v2258_v58 = vadd.f32 %v2257_v46, %v6972_v45  ;;  %vm1818_vm9 = vnez %v1810_v15 }
 0x467   : > { %vm2038_vm11 = vnez %v2002_v9  ;;  %vm2036_vm12 = vnez %v1998_v63  ;;  %vm2035_vm13 = vnez %v1996_v17  ;;  %vm2037_vm14 = vnez %v2000_v22  ;;  %p5499_p6 = pnand %p5498_p12, %p5723_p4  ;;  %p5504_p13 = por %p5503_p11, %p5502_p10 }
 0x468   : > { %v7056_v35 = vpop.f32.mrf.mxu3  ;;  %v2070_v24 = vsel %vm2038_vm11, 16843009, %v8630_v28  ;;  %v2068_v53 = vsel %vm2036_vm12, 16843009, %v8630_v28  ;;  %v2067_v4 = vsel %vm2035_vm13, 16843009, %v8630_v28  ;;  %v2259_v9 = vadd.f32 %v2258_v58, %v7030_v42 }
 0x469   : > { %v2102_v57 = vunpack.c.0.s8 %v2070_v24  ;;  %v2100_v61 = vunpack.c.0.s8 %v2068_v53  ;;  %v2099_v41 = vunpack.c.0.s8 %v2067_v4  ;;  %v2069_v60 = vsel %vm2037_vm14, 16843009, %v8630_v28  ;;  %p5500_p8 = pneg %p5499_p6 }
 0x46a   : > { %v2101_v5 = vunpack.c.0.s8 %v2069_v60  ;;  %vm1848_vm3 = vcmp.gt.f32.partialorder %v7056_v35, 0.0 }
 0x46b   : > { %vm2134_vm15 = vcmp.ne.s32.totalorder %v2102_v57, 0  ;;  %vm2132_vm0 = vcmp.ne.s32.totalorder %v2100_v61, 0  ;;  %vm2131_vm1 = vcmp.ne.s32.totalorder %v2099_v41, 0  ;;  %vm1893_vm5 = vmpackc.low %vm1848_vm3, %vm1847_vm4  ;;  %p5505_p3 = pnand %p5504_p13, %p5500_p8 }
 0x46c   : > { %v7063_v50 = vsel %vm2134_vm15, %v1790_v12, 0.0  ;;  %v7066_v13 = vsel %vm2132_vm0, %v7018_v27, 0.0  ;;  %v7069_v44 = vsel %vm2131_vm1, %v7014_v56, 0.0  ;;  %vm2133_vm2 = vcmp.ne.s32.totalorder %v2101_v5, 0 }
 0x46d   : > { %2225 = vadd.xlane.f32.xlu1 %v7063_v50  ;;  %2221 = vadd.xlane.f32.xlu0 %v7066_v13  ;;  %v2260_v27 = vadd.f32 %v2259_v9, %v7027_v52  ;;  %v7080_v56 = vsel %vm2133_vm2, %v7035_v47, 0.0  ;;  %v1895_v47 = vsel %vm1893_vm5, 16711935, %v8630_v28 }
 0x46e   : > { %2219 = vadd.xlane.f32.xlu2 %v7069_v44 }
 0x46f   : > { %v2261_v63 = vadd.f32 %v2260_v27, %v7038_v26 }
 0x470   : > { %v7076_v12 = vpop.f32.mrf.mxu3 }
 0x471   : > { %vm1849_vm6 = vcmp.gt.f32.partialorder %v7076_v12, 0.0  ;;  %v2262_v24 = vadd.f32 %v2261_v63, %v7024_v33 }
 0x473   : > { %v2263_v4 = vadd.f32 %v2262_v24, %v7069_v44 }
 0x475   : > { %2223 = vadd.xlane.f32.xlu0 %v7080_v56  ;;  %v2264_v5 = vadd.f32 %v2263_v4, %v7066_v13 }
 0x476   : > { %2193 = vadd.xlane.f32.xlu2 %v6902_v10 }
 0x478   : > { %v1800_v17 = vpop.f32.mrf.mxu3 }
 0x479   : > { %vm1850_vm7 = vcmp.gt.f32.partialorder %v1800_v17, 0.0 }
 0x47a   : > { %vm1894_vm8 = vmpackc.low %vm1850_vm7, %vm1849_vm6 }
 0x47b   : > { %v1896_v22 = vsel %vm1894_vm8, 16711935, %v8630_v28 }
 0x47c   : > { %v1897_v53 = vpack.c.b8 %v1896_v22, %v1895_v47 }
 0x47d   : > { %2197 = vadd.xlane.f32.xlu0 %v6912_v14 }
 0x47e   : > { %vm1898_vm10 = vnez %v1897_v53  ;;  %2195 = vadd.xlane.f32.xlu2 %v6908_v39  ;;  %v2265_v53 = vadd.f32 %v2264_v5, %v7080_v56 }
 0x47f   : > { %vm1906_vm11 = vmand %vm1818_vm9, %vm1898_vm10 }
 0x480   : > { %v1914_v57 = vsel %vm1906_vm11, 16843009, %v8630_v28  ;;  %v2266_v5 = vadd.f32 %v2265_v53, %v7063_v50 }
 0x481   : > { %v1946_v61 = vunpack.c.3.s8 %v1914_v57  ;;  %v1944_v41 = vunpack.c.1.s8 %v1914_v57  ;;  %v1943_v46 = vunpack.c.0.s8 %v1914_v57  ;;  %v1945_v60 = vunpack.c.2.s8 %v1914_v57 }
 0x483   : > { %v2009_v58 = vpack.c.b16 %v1946_v61, %v1946_v61  ;;  %v2005_v9 = vpack.c.b16 %v1944_v41, %v1944_v41  ;;  %v2003_v27 = vpack.c.b16 %v1943_v46, %v1943_v46  ;;  %v2007_v63 = vpack.c.b16 %v1945_v60, %v1945_v60 }
 0x485   : > { %2199 = vadd.xlane.f32.xlu0 %v6916_v55  ;;  %v2010_v15 = vpack.c.b8 %v2009_v58, %v2009_v58  ;;  %v2006_v47 = vpack.c.b8 %v2005_v9, %v2005_v9  ;;  %v2004_v22 = vpack.c.b8 %v2003_v27, %v2003_v27  ;;  %v2008_v24 = vpack.c.b8 %v2007_v63, %v2007_v63 }
 0x487   : > { %vm2042_vm12 = vnez %v2010_v15  ;;  %vm2040_vm13 = vnez %v2006_v47  ;;  %vm2039_vm14 = vnez %v2004_v22  ;;  %vm2041_vm15 = vnez %v2008_v24  ;;  %v2176_v47 = vpop.xlane.xlu0 %2175 }
 0x488   : > { %v2074_v57 = vsel %vm2042_vm12, 16843009, %v8630_v28  ;;  %v2072_v4 = vsel %vm2040_vm13, 16843009, %v8630_v28  ;;  %v2071_v61 = vsel %vm2039_vm14, 16843009, %v8630_v28  ;;  %5179 = vrsqrt.f32 %v2176_v47 }
 0x489   : > { %v2106_v41 = vunpack.c.0.s8 %v2074_v57  ;;  %v2104_v46 = vunpack.c.0.s8 %v2072_v4  ;;  %v2103_v60 = vunpack.c.0.s8 %v2071_v61  ;;  %v2073_v58 = vsel %vm2041_vm15, 16843009, %v8630_v28 }
 0x48a   : > { %v2105_v9 = vunpack.c.0.s8 %v2073_v58  ;;  %vm2335_vm5 = vweird.f32 %v2176_v47  ;;  %vm2279_vm7 = vcmp.gt.f32.partialorder %v2176_v47, 0.0 }
 0x48b   : > { %vm2138_vm0 = vcmp.ne.s32.totalorder %v2106_v41, 0  ;;  %vm2136_vm1 = vcmp.ne.s32.totalorder %v2104_v46, 0  ;;  %vm2135_vm2 = vcmp.ne.s32.totalorder %v2103_v60, 0 }
 0x48c   : > { %v7104_v27 = vsel %vm2138_vm0, %v1800_v17, 0.0  ;;  %v7107_v63 = vsel %vm2136_vm1, %v7056_v35, 0.0  ;;  %v7110_v15 = vsel %vm2135_vm2, %v7051_v6, 0.0  ;;  %vm2137_vm3 = vcmp.ne.s32.totalorder %v2105_v9, 0 }
 0x48d   : > { %2233 = vadd.xlane.f32.xlu0 %v7104_v27  ;;  %2229 = vadd.xlane.f32.xlu2 %v7107_v63  ;;  %v2267_v28 = vadd.f32 %v2266_v5, %v7110_v15  ;;  %v7118_v17 = vsel %vm2137_vm3, %v7076_v12, 0.0 }
 0x48e   : > { %2227 = vadd.xlane.f32.xlu1 %v7110_v15  ;;  %v5180_v53 = vpop.eup %5179 }
 0x48f   : > { %v2268_v22 = vadd.f32 %v2267_v28, %v7107_v63  ;;  %v2330_v61 = vmul.f32 %v5180_v53, %v2176_v47  ;;  %vm2336_vm4 = vweird.f32 %v5180_v53 }
 0x490   : > { %vm2337_vm6 = vmor %vm2335_vm5, %vm2336_vm4 }
 0x491   : > { %v2269_v35 = vadd.f32 %v2268_v22, %v7118_v17  ;;  %v2331_v60 = vmul.f32 %v5180_v53, %v2330_v61 }
 0x493   : > { %v2270_v6 = vadd.f32 %v2269_v35, %v7104_v27  ;;  %v2332_v5 = vmul.f32 0.5, %v2331_v60 }
 0x495   : > { %2231 = vadd.xlane.f32.xlu2 %v7118_v17  ;;  %v2271_v24 = vrot.slane %v2270_v6, 4  ;;  %v2333_v22 = vsub.f32 1.5, %v2332_v5 }
 0x496   : > { %2201 = vadd.xlane.f32.xlu1 %v6920_v37 }
 0x497   : > { %v2272_v57 = vadd.f32 %v2271_v24, %v2270_v6 }
 0x499   : > { %v2273_v4 = vrot.slane %v2272_v57, 2 }
 0x49b   : > { %v2274_v41 = vadd.f32 %v2273_v4, %v2272_v57 }
 0x49d   : > { %v2275_v46 = vrot.slane %v2274_v41, 1 }
 0x49f   : > { %v7124_v58 = vadd.f32 %v2275_v46, %v2274_v41  ;;  %v2334_v41 = vmul.f32 %v5180_v53, %v2333_v22 }
 0x4a1   : > { %v7126_v12 = vpop.xlane.xlu0 %2209  ;;  %5181 = vrsqrt.f32 %v7124_v58  ;;  %v2338_v22 = vsel %vm2337_vm6, %v5180_v53, %v2334_v41  ;;  %vm2679_vm10 = vweird.f32 %v7124_v58  ;;  %vm2662_vm14 = vcmp.gt.f32.partialorder %v7124_v58, 0.0 }
 0x4a2   : > { %v7129_v9 = vpop.xlane.xlu2 %2205  ;;  %5183 = vrsqrt.f32 %v7126_v12  ;;  %vm2505_vm15 = vweird.f32 %v7126_v12 }
 0x4a3   : > { %5185 = vrsqrt.f32 %v7129_v9  ;;  %v7133_v28 = vpop.xlane.xlu1 %2203  ;;  %vm2485_vm11 = vweird.f32 %v7129_v9  ;;  %vm2294_vm1 = vcmp.gt.f32.partialorder %v7129_v9, 0.0 }
 0x4a4   : > { %5187 = vrsqrt.f32 %v7133_v28  ;;  %vm2475_vm0 = vweird.f32 %v7133_v28  ;;  %vm2293_vm5 = vcmp.gt.f32.partialorder %v7133_v28, 0.0 }
 0x4a7   : > { %v7136_v35 = vpop.eup %5181 }
 0x4a8   : > { %v7138_v6 = vpop.eup %5183  ;;  %v2674_v24 = vmul.f32 %v7136_v35, %v7124_v58  ;;  %vm2680_vm8 = vweird.f32 %v7136_v35 }
 0x4a9   : > { %v5186_v57 = vpop.eup %5185  ;;  %v2500_v4 = vmul.f32 %v7138_v6, %v7126_v12  ;;  %vm7162_vm12 = vmor %vm2679_vm10, %vm2680_vm8  ;;  %vm2506_vm3 = vweird.f32 %v7138_v6 }
 0x4aa   : > { %v7144_v61 = vpop.xlane.xlu2 %2207  ;;  %v2675_v46 = vmul.f32 %v7136_v35, %v2674_v24  ;;  %v2480_v60 = vmul.f32 %v5186_v57, %v7129_v9  ;;  %v5188_v5 = vpop.eup %5187  ;;  %vm2486_vm9 = vweird.f32 %v5186_v57  ;;  %vm7196_vm6 = vmor %vm2505_vm15, %vm2506_vm3 }
 0x4ab   : > { %v2501_v19 = vmul.f32 %v7138_v6, %v2500_v4  ;;  %5189 = vrsqrt.f32 %v7144_v61  ;;  %v2470_v43 = vmul.f32 %v5188_v5, %v7133_v28  ;;  %v7151_v23 = vpop.xlane.xlu1 %2177  ;;  %vm2476_vm13 = vweird.f32 %v5188_v5  ;;  %vm2487_vm2 = vmor %vm2485_vm11, %vm2486_vm9 }
 0x4ac   : > { %v2676_v1 = vmul.f32 0.5, %v2675_v46  ;;  %v2481_v31 = vmul.f32 %v5186_v57, %v2480_v60  ;;  %5191 = vrsqrt.f32 %v7151_v23  ;;  %v2631_v60 = vsel %vm2279_vm7, %v2338_v22, 0.0  ;;  %vm2477_vm4 = vmor %vm2475_vm0, %vm2476_vm13 }
 0x4ad   : > { %v2502_v16 = vmul.f32 0.5, %v2501_v19  ;;  %v2471_v49 = vmul.f32 %v5188_v5, %v2470_v43  ;;  %vm2296_vm7 = vcmp.gt.f32.partialorder %v7126_v12, 0.0  ;;  %vm2495_vm10 = vweird.f32 %v7144_v61 }
 0x4ae   : > { %v2677_v24 = vsub.f32 1.5, %v2676_v1  ;;  %v2482_v3 = vmul.f32 0.5, %v2481_v31  ;;  %vm2345_vm11 = vweird.f32 %v7151_v23  ;;  %vm2280_vm15 = vcmp.gt.f32.partialorder %v7151_v23, 0.0 }
 0x4af   : > { %v2472_v11 = vmul.f32 0.5, %v2471_v49  ;;  %v2503_v19 = vsub.f32 1.5, %v2502_v16 }
 0x4b0   : > { %v2678_v4 = vmul.f32 %v7136_v35, %v2677_v24  ;;  %v2483_v46 = vsub.f32 1.5, %v2482_v3 }
 0x4b1   : > { %v7156_v29 = vpop.eup %5189  ;;  %v2473_v43 = vsub.f32 1.5, %v2472_v11  ;;  %v2504_v24 = vmul.f32 %v7138_v6, %v2503_v19 }
 0x4b2   : > { %v7160_v53 = vpop.xlane.xlu2 %2181  ;;  %v2484_v1 = vmul.f32 %v5186_v57, %v2483_v46  ;;  %v2490_v49 = vmul.f32 %v7156_v29, %v7144_v61  ;;  %v7168_v3 = vpop.eup %5191  ;;  %v2682_v16 = vsel %vm7162_vm12, %v7136_v35, %v2678_v4  ;;  %vm2496_vm8 = vweird.f32 %v7156_v29 }
 0x4b3   : > { %v2474_v11 = vmul.f32 %v5188_v5, %v2473_v43  ;;  %v2340_v41 = vmul.f32 %v7168_v3, %v7151_v23  ;;  %v7180_v22 = vpop.xlane.xlu1 %2179  ;;  %v7191_v4 = vsel %vm2662_vm14, %v2682_v16, 0.0  ;;  %v2508_v58 = vsel %vm7196_vm6, %v7138_v6, %v2504_v24  ;;  %vm7220_vm12 = vmor %vm2495_vm10, %vm2496_vm8 }
 0x4b4   : > { %v2488_v47 = vsel %vm2487_vm2, %v5186_v57, %v2484_v1  ;;  %v2491_v46 = vmul.f32 %v7156_v29, %v2490_v49  ;;  %5193 = vrsqrt.f32 %v7180_v22  ;;  %vm2346_vm9 = vweird.f32 %v7168_v3 }
 0x4b5   : > { %v2646_v9 = vsel %vm2294_vm1, %v2488_v47, 0.0  ;;  %v2478_v31 = vsel %vm2477_vm4, %v5188_v5, %v2474_v11  ;;  %v2341_v57 = vmul.f32 %v7168_v3, %v2340_v41  ;;  %5195 = vrsqrt.f32 %v7160_v53  ;;  %vm7226_vm13 = vmor %vm2345_vm11, %vm2346_vm9 }
 0x4b6   : > { %v2702_v35 = vmul.f32 %v2646_v9, %v6977_v25  ;;  %v2645_v43 = vsel %vm2293_vm5, %v2478_v31, 0.0  ;;  %v2492_v19 = vmul.f32 0.5, %v2491_v46  ;;  %v2687_v11 = vmul.f32 %v2631_v60, %v6812_v62 }
 0x4b7   : > { %v2701_v28 = vmul.f32 %v2645_v43, %v6986_v34  ;;  %v2342_v5 = vmul.f32 0.5, %v2341_v57  ;;  %v2648_v12 = vsel %vm2296_vm7, %v2508_v58, 0.0  ;;  %vm2295_vm14 = vcmp.gt.f32.partialorder %v7144_v61, 0.0 }
 0x4b8   : > { %v2734_v25 = vmul.f32 %v2702_v35, %v7191_v4  ;;  %v2493_v49 = vsub.f32 1.5, %v2492_v19  ;;  %v2704_v1 = vmul.f32 %v2648_v12, %v6972_v45  ;;  %vm2355_vm1 = vweird.f32 %v7180_v22 }
 0x4b9   : > { %v2733_v47 = vmul.f32 %v2701_v28, %v7191_v4  ;;  %v2343_v34 = vsub.f32 1.5, %v2342_v5  ;;  %vm2282_vm3 = vcmp.gt.f32.partialorder %v7160_v53, 0.0  ;;  %vm2281_vm5 = vcmp.gt.f32.partialorder %v7180_v22, 0.0 }
 0x4ba   : > { %v7207_v16 = vpop.xlane.xlu2 %2183  ;;  %v2766_v41 = vpack.c.bf16 %v2734_v25, %v2734_v25  ;;  %v2494_v9 = vmul.f32 %v7156_v29, %v2493_v49  ;;  %v7217_v62 = vpop.eup %5193  ;;  %vm2365_vm6 = vweird.f32 %v7160_v53 }
 0x4bb   : > { %5197 = vrsqrt.f32 %v7207_v16  ;;  %v2765_v6 = vpack.c.bf16 %v2733_v47, %v2733_v47  ;;  %v2344_v46 = vmul.f32 %v7168_v3, %v2343_v34  ;;  %v7224_v31 = vpop.eup %5195  ;;  %v2350_v19 = vmul.f32 %v7217_v62, %v7180_v22 }
 0x4bc   : > { %v2975_v24 = vunpack.c.l.b16 %v2766_v41  ;;  %v2498_v43 = vsel %vm7220_vm12, %v7156_v29, %v2494_v9  ;;  %v2360_v25 = vmul.f32 %v7224_v31, %v7160_v53  ;;  %v2719_v47 = vmul.f32 %v2687_v11, %v6994_v54 }
 0x4bd   : > { %v2974_v35 = vunpack.c.l.b16 %v2765_v6  ;;  %v2348_v28 = vsel %vm7226_vm13, %v7168_v3, %v2344_v46  ;;  %v2351_v5 = vmul.f32 %v7217_v62, %v2350_v19  ;;  %v2647_v3 = vsel %vm2295_vm14, %v2498_v43, 0.0 }
 0x4be   : > { %v2361_v41 = vmul.f32 %v7224_v31, %v2360_v25  ;;  %v2632_v34 = vsel %vm2280_vm15, %v2348_v28, 0.0  ;;  %v2736_v11 = vmul.f32 %v2704_v1, %v7191_v4  ;;  %v2703_v23 = vmul.f32 %v2647_v3, %v7000_v2 }
 0x4bf   : > { %v7243_v58 = vpack.c.b16 %v2975_v24, %v2974_v35  ;;  %v2352_v9 = vmul.f32 0.5, %v2351_v5  ;;  %v2751_v46 = vpack.c.bf16 %v2719_v47, %v2719_v47  ;;  %v2688_v35 = vmul.f32 %v2632_v34, %v6808_v59 }
 0x4c0   : > { %v7245_v49 = vpop.xlane.xlu1 %2213  ;;  %v7247_v29 = vpop.xlane.xlu0 %2211  ;;  %v2362_v6 = vmul.f32 0.5, %v2361_v41  ;;  %vm2356_vm0 = vweird.f32 %v7217_v62  ;;  %v2768_v1 = vpack.c.bf16 %v2736_v11, %v2736_v11  ;;  %v2735_v59 = vmul.f32 %v2703_v23, %v7191_v4 }
 0x4c1   : > { %8642 = vst [vmem:[#allocation56_spill] sm:$0xff] %v7243_v58  ;;  %v7250_v45 = vpop.eup %5197  ;;  %5199 = vrsqrt.f32 %v7245_v49  ;;  %3062 = vmatmul.bf16.vlgmr.msrb.gmra.mxu3 %v7243_v58  ;;  %v2353_v24 = vsub.f32 1.5, %v2352_v9  ;;  %v2720_v28 = vmul.f32 %v2688_v35, %v6994_v54  ;;  %v2831_v25 = vunpack.c.l.b16 %v2751_v46  ;;  %vm7281_vm2 = vmor %vm2355_vm1, %vm2356_vm0 }
 0x4c2   : > { %v7255_v61 = vpop.xlane.xlu2 %2217  ;;  %v2370_v12 = vmul.f32 %v7250_v45, %v7207_v16  ;;  %5201 = vrsqrt.f32 %v7247_v29  ;;  %v2363_v43 = vsub.f32 1.5, %v2362_v6  ;;  %vm2366_vm4 = vweird.f32 %v7224_v31 }
 0x4c3   : > { %5203 = vrsqrt.f32 %v7255_v61  ;;  %v2354_v57 = vmul.f32 %v7217_v62, %v2353_v24  ;;  %v2752_v9 = vpack.c.bf16 %v2720_v28, %v2720_v28  ;;  %vm7303_vm7 = vmor %vm2365_vm6, %vm2366_vm4  ;;  %vm2376_vm9 = vweird.f32 %v7250_v45 }
 0x4c4   : > { %v2371_v60 = vmul.f32 %v7250_v45, %v2370_v12  ;;  %v2364_v11 = vmul.f32 %v7224_v31, %v2363_v43  ;;  %vm2525_vm10 = vweird.f32 %v7245_v49  ;;  %vm2515_vm13 = vweird.f32 %v7247_v29 }
 0x4c5   : > { %v2358_v6 = vsel %vm7281_vm2, %v7217_v62, %v2354_v57  ;;  %v2832_v41 = vunpack.c.l.b16 %v2752_v9  ;;  %v2767_v62 = vpack.c.bf16 %v2735_v59, %v2735_v59  ;;  %vm2375_vm14 = vweird.f32 %v7207_v16 }
 0x4c6   : > { %v2372_v34 = vmul.f32 0.5, %v2371_v60  ;;  %v2977_v60 = vunpack.c.l.b16 %v2768_v1  ;;  %v2633_v57 = vsel %vm2281_vm5, %v2358_v6, 0.0  ;;  %v2368_v22 = vsel %vm7303_vm7, %v7224_v31, %v2364_v11  ;;  %vm7361_vm4 = vmor %vm2375_vm14, %vm2376_vm9 }
 0x4c7   : > { %v7268_v19 = vpop.eup %5199  ;;  %v7312_v9 = vpack.c.b16 %v2832_v41, %v2831_v25  ;;  %v2976_v31 = vunpack.c.l.b16 %v2767_v62  ;;  %vm2298_vm15 = vcmp.gt.f32.partialorder %v7245_v49, 0.0  ;;  %vm2283_vm1 = vcmp.gt.f32.partialorder %v7207_v16, 0.0 }
 0x4c8   : > { %v2520_v2 = vmul.f32 %v7268_v19, %v7245_v49  ;;  %v7274_v5 = vpop.xlane.xlu1 %2215  ;;  %v7276_v47 = vpop.xlane.xlu0 %2185  ;;  %vm2526_vm8 = vweird.f32 %v7268_v19  ;;  %vm2297_vm2 = vcmp.gt.f32.partialorder %v7247_v29, 0.0  ;;  %vm2545_vm5 = vweird.f32 %v7255_v61 }
 0x4c9   : > { %v7279_v3 = vpop.eup %5201  ;;  %5205 = vrsqrt.f32 %v7274_v5  ;;  %8647 = vst [vmem:[#allocation57_spill] sm:$0xff] %v7312_v9  ;;  %2922 = vmatmul.bf16.gmra.mxu2 %v7312_v9  ;;  %vm7329_vm12 = vmor %vm2525_vm10, %vm2526_vm8  ;;  %v7341_v62 = vpack.c.b16 %v2977_v60, %v2976_v31  ;;  %vm2535_vm6 = vweird.f32 %v7274_v5  ;;  %vm2385_vm10 = vweird.f32 %v7276_v47  ;;  %v8714_v9 = vld [vmem:[#allocation40_spill] sm:$0xff] }
 0x4ca   : > { %v7287_v12 = vpop.eup %5203  ;;  %v2521_v23 = vmul.f32 %v7268_v19, %v2520_v2  ;;  %v2510_v24 = vmul.f32 %v7279_v3, %v7247_v29  ;;  %v2373_v2 = vsub.f32 1.5, %v2372_v34  ;;  %5207 = vrsqrt.f32 %v7276_v47 }
 0x4cb   : > { %v2540_v46 = vmul.f32 %v7287_v12, %v7255_v61  ;;  %vm2516_vm11 = vweird.f32 %v7279_v3  ;;  %8650 = vst [vmem:[#allocation58_spill] sm:$0xff] %v7341_v62  ;;  %vm2300_vm14 = vcmp.gt.f32.partialorder %v7255_v61, 0.0  ;;  %v3130_v58 = vmul.f32 0.5, %v8714_v9 }
 0x4cc   : > { %v2522_v35 = vmul.f32 0.5, %v2521_v23  ;;  %v2511_v28 = vmul.f32 %v7279_v3, %v2510_v24  ;;  %v2634_v24 = vsel %vm2282_vm3, %v2368_v22, 0.0  ;;  %vm2517_vm0 = vmor %vm2515_vm13, %vm2516_vm11  ;;  %vm2546_vm3 = vweird.f32 %v7287_v12 }
 0x4cd   : > { %v2541_v59 = vmul.f32 %v7287_v12, %v2540_v46  ;;  %v2690_v29 = vmul.f32 %v2634_v24, %v6835_v40  ;;  %vm7413_vm11 = vmor %vm2545_vm5, %vm2546_vm3 }
 0x4ce   : > { %v2523_v1 = vsub.f32 1.5, %v2522_v35  ;;  %v2512_v23 = vmul.f32 0.5, %v2511_v28  ;;  %v2689_v35 = vmul.f32 %v2633_v57, %v6838_v20  ;;  %v2374_v28 = vmul.f32 %v7250_v45, %v2373_v2 }
 0x4cf   : > { %v7343_v43 = vpop.eup %5205  ;;  %v2542_v20 = vmul.f32 0.5, %v2541_v59  ;;  %v2722_v40 = vmul.f32 %v2690_v29, %v6994_v54 }
 0x4d0   : > { %v2524_v34 = vmul.f32 %v7268_v19, %v2523_v1  ;;  %v2513_v6 = vsub.f32 1.5, %v2512_v23  ;;  %v7321_v11 = vpop.xlane.xlu1 %2189  ;;  %v7323_v25 = vpop.xlane.xlu0 %2187  ;;  %v2530_v60 = vmul.f32 %v7343_v43, %v7274_v5  ;;  %v2378_v1 = vsel %vm7361_vm4, %v7250_v45, %v2374_v28 }
 0x4d1   : > { %5209 = vrsqrt.f32 %v7321_v11  ;;  %3067 = vmatmul.bf16.gmra.mxu3 %v7341_v62  ;;  %v7357_v49 = vpop.eup %5207  ;;  %v2543_v31 = vsub.f32 1.5, %v2542_v20  ;;  %vm2536_vm7 = vweird.f32 %v7343_v43  ;;  %vm2286_vm3 = vcmp.gt.f32.partialorder %v7321_v11, 0.0  ;;  %v8713_v62 = vld [vmem:[#allocation49_spill] sm:$0xff] }
 0x4d2   : > { %v2528_v41 = vsel %vm7329_vm12, %v7268_v19, %v2524_v34  ;;  %v2514_v53 = vmul.f32 %v7279_v3, %v2513_v6  ;;  %5211 = vrsqrt.f32 %v7323_v25  ;;  %v2531_v23 = vmul.f32 %v7343_v43, %v2530_v60  ;;  %vm7403_vm9 = vmor %vm2535_vm6, %vm2536_vm7 }
 0x4d3   : > { %v2650_v2 = vsel %vm2298_vm15, %v2528_v41, 0.0  ;;  %v2380_v59 = vmul.f32 %v7357_v49, %v7276_v47  ;;  %vm2386_vm8 = vweird.f32 %v7357_v49  ;;  %vm2299_vm12 = vcmp.gt.f32.partialorder %v7274_v5, 0.0 }
 0x4d4   : > { %v2518_v19 = vsel %vm2517_vm0, %v7279_v3, %v2514_v53  ;;  %v2721_v3 = vmul.f32 %v2689_v35, %v6994_v54  ;;  %v2706_v46 = vmul.f32 %v2650_v2, %v7027_v52  ;;  %v2532_v35 = vmul.f32 0.5, %v2531_v23  ;;  %vm7431_vm13 = vmor %vm2385_vm10, %vm2386_vm8 }
 0x4d5   : > { %v2649_v22 = vsel %vm2297_vm2, %v2518_v19, 0.0  ;;  %v2381_v45 = vmul.f32 %v7357_v49, %v2380_v59  ;;  %v2754_v19 = vpack.c.bf16 %v2722_v40, %v2722_v40  ;;  %v2544_v2 = vmul.f32 %v7287_v12, %v2543_v31 }
 0x4d6   : > { %v2705_v6 = vmul.f32 %v2649_v22, %v7030_v42  ;;  %v2753_v24 = vpack.c.bf16 %v2721_v3, %v2721_v3  ;;  %v2533_v20 = vsub.f32 1.5, %v2532_v35  ;;  %vm2284_vm15 = vcmp.gt.f32.partialorder %v7276_v47, 0.0 }
 0x4d7   : > { %v7375_v34 = vpop.eup %5209  ;;  %v2382_v60 = vmul.f32 0.5, %v2381_v45  ;;  %v2834_v22 = vunpack.c.l.b16 %v2754_v19  ;;  %vm2395_vm5 = vweird.f32 %v7323_v25  ;;  %vm2285_vm6 = vcmp.gt.f32.partialorder %v7323_v25, 0.0 }
 0x4d8   : > { %v2400_v28 = vmul.f32 %v7375_v34, %v7321_v11  ;;  %v7383_v41 = vpop.xlane.xlu1 %2191  ;;  %v7385_v53 = vpop.eup %5211  ;;  %v2833_v42 = vunpack.c.l.b16 %v2753_v24  ;;  %v2737_v29 = vmul.f32 %v2705_v6, %v7191_v4  ;;  %v2534_v3 = vmul.f32 %v7343_v43, %v2533_v20 }
 0x4d9   : > { %5213 = vrsqrt.f32 %v7383_v41  ;;  %v2390_v57 = vmul.f32 %v7385_v53, %v7323_v25  ;;  %v2383_v23 = vsub.f32 1.5, %v2382_v60  ;;  %v2635_v24 = vsel %vm2283_vm1, %v2378_v1, 0.0 }
 0x4da   : > { %v2401_v52 = vmul.f32 %v7375_v34, %v2400_v28  ;;  %v2738_v6 = vmul.f32 %v2706_v46, %v7191_v4  ;;  %v2769_v35 = vpack.c.bf16 %v2737_v29, %v2737_v29  ;;  %v2538_v1 = vsel %vm7403_vm9, %v7343_v43, %v2534_v3 }
 0x4db   : > { %v2391_v40 = vmul.f32 %v7385_v53, %v2390_v57  ;;  %v2384_v45 = vmul.f32 %v7357_v49, %v2383_v23  ;;  %v7421_v19 = vpack.c.b16 %v2834_v22, %v2833_v42  ;;  %v2548_v46 = vsel %vm7413_vm11, %v7287_v12, %v2544_v2 }
 0x4dc   : > { %v2402_v59 = vmul.f32 0.5, %v2401_v52  ;;  %v2770_v43 = vpack.c.bf16 %v2738_v6, %v2738_v6  ;;  %v2978_v52 = vunpack.c.l.b16 %v2769_v35  ;;  %v2651_v57 = vsel %vm2299_vm12, %v2538_v1, 0.0 }
 0x4dd   : > { %v2392_v28 = vmul.f32 0.5, %v2391_v40  ;;  %8657 = vst [vmem:[#allocation59_spill] sm:$0xff] %v7421_v19  ;;  %v2388_v42 = vsel %vm7431_vm13, %v7357_v49, %v2384_v45  ;;  %2927 = vmatmul.bf16.gmra.mxu2 %v7421_v19  ;;  %v2691_v5 = vmul.f32 %v2635_v24, %v6840_v48  ;;  %v2652_v40 = vsel %vm2300_vm14, %v2548_v46, 0.0 }
 0x4de   : > { %v2403_v22 = vsub.f32 1.5, %v2402_v59  ;;  %v2979_v3 = vunpack.c.l.b16 %v2770_v43  ;;  %v2707_v59 = vmul.f32 %v2651_v57, %v7038_v26  ;;  %v2636_v31 = vsel %vm2284_vm15, %v2388_v42, 0.0 }
 0x4df   : > { %v7423_v20 = vpop.eup %5213  ;;  %v2393_v49 = vsub.f32 1.5, %v2392_v28  ;;  %vm2406_vm0 = vweird.f32 %v7375_v34  ;;  %v2723_v24 = vmul.f32 %v2691_v5, %v6994_v54  ;;  %vm2405_vm1 = vweird.f32 %v7321_v11 }
 0x4e0   : > { %v7439_v29 = vpop.xlane.xlu1 %2225  ;;  %v7441_v12 = vpop.xlane.xlu0 %2221  ;;  %v2410_v2 = vmul.f32 %v7423_v20, %v7383_v41  ;;  %v7453_v48 = vpack.c.b16 %v2979_v3, %v2978_v52  ;;  %v2404_v61 = vmul.f32 %v7375_v34, %v2403_v22  ;;  %v2708_v26 = vmul.f32 %v2652_v40, %v7024_v33  ;;  %vm7467_vm4 = vmor %vm2405_vm1, %vm2406_vm0 }
 0x4e1   : > { %v7447_v23 = vpop.xlane.xlu2 %2219  ;;  %5215 = vrsqrt.f32 %v7439_v29  ;;  %v2394_v47 = vmul.f32 %v7385_v53, %v2393_v49  ;;  %vm2396_vm2 = vweird.f32 %v7385_v53  ;;  %v2692_v35 = vmul.f32 %v2636_v31, %v6832_v21 }
 0x4e2   : > { %v2411_v6 = vmul.f32 %v7423_v20, %v2410_v2  ;;  %8660 = vst [vmem:[#allocation60_spill] sm:$0xff] %v7453_v48  ;;  %5217 = vrsqrt.f32 %v7441_v12  ;;  %3072 = vmatmul.bf16.gmra.mxu3 %v7453_v48  ;;  %v2739_v45 = vmul.f32 %v2707_v59, %v7191_v4  ;;  %v2408_v33 = vsel %vm7467_vm4, %v7375_v34, %v2404_v61  ;;  %vm7482_vm7 = vmor %vm2395_vm5, %vm2396_vm2  ;;  %v8711_v48 = vld [vmem:[#allocation46_spill] sm:$0xff] }
 0x4e3   : > { %5219 = vrsqrt.f32 %v7447_v23  ;;  %v2724_v46 = vmul.f32 %v2692_v35, %v6994_v54  ;;  %v2755_v21 = vpack.c.bf16 %v2723_v24, %v2723_v24  ;;  %vm2415_vm8 = vweird.f32 %v7383_v41 }
 0x4e4   : > { %v2412_v1 = vmul.f32 0.5, %v2411_v6  ;;  %vm2416_vm9 = vweird.f32 %v7423_v20  ;;  %v2398_v42 = vsel %vm7482_vm7, %v7385_v53, %v2394_v47  ;;  %v2740_v5 = vmul.f32 %v2708_v26, %v7191_v4 }
 0x4e5   : > { %v2756_v22 = vpack.c.bf16 %v2724_v46, %v2724_v46  ;;  %v2638_v3 = vsel %vm2286_vm3, %v2408_v33, 0.0  ;;  %v2771_v59 = vpack.c.bf16 %v2739_v45, %v2739_v45  ;;  %vm2565_vm10 = vweird.f32 %v7441_v12  ;;  %vm7535_vm0 = vmor %vm2415_vm8, %vm2416_vm9 }
 0x4e6   : > { %v2413_v40 = vsub.f32 1.5, %v2412_v1  ;;  %v2835_v31 = vunpack.c.l.b16 %v2755_v21  ;;  %v2637_v61 = vsel %vm2285_vm6, %v2398_v42, 0.0  ;;  %vm2302_vm11 = vcmp.gt.f32.partialorder %v7441_v12, 0.0 }
 0x4e7   : > { %v7472_v28 = vpop.eup %5215  ;;  %v2836_v6 = vunpack.c.l.b16 %v2756_v22  ;;  %vm2287_vm12 = vcmp.gt.f32.partialorder %v7383_v41, 0.0  ;;  %vm2301_vm13 = vcmp.gt.f32.partialorder %v7447_v23, 0.0  ;;  %v2772_v35 = vpack.c.bf16 %v2740_v5, %v2740_v5 }
 0x4e8   : > { %v7479_v60 = vpop.xlane.xlu0 %2223  ;;  %v2580_v34 = vmul.f32 %v7472_v28, %v7439_v29  ;;  %v7492_v57 = vpop.eup %5217  ;;  %v2414_v25 = vmul.f32 %v7423_v20, %v2413_v40  ;;  %vm2555_vm14 = vweird.f32 %v7447_v23  ;;  %v2980_v1 = vunpack.c.l.b16 %v2771_v59 }
 0x4e9   : > { %v7490_v52 = vpop.xlane.xlu2 %2193  ;;  %5221 = vrsqrt.f32 %v7479_v60  ;;  %v7499_v2 = vpop.eup %5219  ;;  %v2560_v49 = vmul.f32 %v7492_v57, %v7441_v12  ;;  %v7517_v47 = vpack.c.b16 %v2836_v6, %v2835_v31  ;;  %vm2566_vm15 = vweird.f32 %v7492_v57 }
 0x4ea   : > { %v2550_v53 = vmul.f32 %v7499_v2, %v7447_v23  ;;  %v2581_v24 = vmul.f32 %v7472_v28, %v2580_v34  ;;  %5223 = vrsqrt.f32 %v7490_v52  ;;  %v2693_v21 = vmul.f32 %v2637_v61, %v6883_v0  ;;  %vm2567_vm4 = vmor %vm2565_vm10, %vm2566_vm15 }
 0x4eb   : > { %v2561_v11 = vmul.f32 %v7492_v57, %v2560_v49  ;;  %8665 = vst [vmem:[#allocation61_spill] sm:$0xff] %v7517_v47  ;;  %v2694_v43 = vmul.f32 %v2638_v3, %v6889_v18  ;;  %v2981_v5 = vunpack.c.l.b16 %v2772_v35  ;;  %vm2585_vm1 = vweird.f32 %v7439_v29 }
 0x4ec   : > { %v2551_v26 = vmul.f32 %v7499_v2, %v2550_v53  ;;  %v2582_v34 = vmul.f32 0.5, %v2581_v24  ;;  %vm2586_vm2 = vweird.f32 %v7472_v28  ;;  %vm2556_vm3 = vweird.f32 %v7499_v2 }
 0x4ed   : > { %v2562_v16 = vmul.f32 0.5, %v2561_v11  ;;  %2932 = vmatmul.bf16.gmra.mxu2 %v7517_v47  ;;  %v2418_v3 = vsel %vm7535_vm0, %v7423_v20, %v2414_v25  ;;  %v7548_v53 = vpack.c.b16 %v2981_v5, %v2980_v1  ;;  %v2725_v24 = vmul.f32 %v2693_v21, %v6994_v54  ;;  %vm2557_vm5 = vmor %vm2555_vm14, %vm2556_vm3 }
 0x4ee   : > { %v2552_v33 = vmul.f32 0.5, %v2551_v26  ;;  %v2726_v20 = vmul.f32 %v2694_v43, %v6994_v54  ;;  %v2583_v11 = vsub.f32 1.5, %v2582_v34  ;;  %vm2575_vm6 = vweird.f32 %v7479_v60  ;;  %vm7590_vm9 = vmor %vm2585_vm1, %vm2586_vm2 }
 0x4ef   : > { %v7521_v45 = vpop.eup %5221  ;;  %v2563_v42 = vsub.f32 1.5, %v2562_v16  ;;  %8668 = vst [vmem:[#allocation62_spill] sm:$0xff] %v7548_v53  ;;  %vm2288_vm10 = vcmp.gt.f32.partialorder %v7490_v52, 0.0  ;;  %vm2303_vm14 = vcmp.gt.f32.partialorder %v7479_v60, 0.0  ;;  %vm2304_vm15 = vcmp.gt.f32.partialorder %v7439_v29, 0.0 }
 0x4f0   : > { %v7525_v46 = vpop.xlane.xlu0 %2197  ;;  %v2570_v22 = vmul.f32 %v7521_v45, %v7479_v60  ;;  %v2553_v0 = vsub.f32 1.5, %v2552_v33  ;;  %v5224_v18 = vpop.eup %5223  ;;  %v2758_v5 = vpack.c.bf16 %v2726_v20, %v2726_v20  ;;  %v2584_v40 = vmul.f32 %v7472_v28, %v2583_v11 }
 0x4f1   : > { %5225 = vrsqrt.f32 %v7525_v46  ;;  %v2564_v49 = vmul.f32 %v7492_v57, %v2563_v42  ;;  %v7550_v31 = vpop.xlane.xlu2 %2195  ;;  %v2420_v61 = vmul.f32 %v5224_v18, %v7490_v52  ;;  %vm2576_vm7 = vweird.f32 %v7521_v45 }
 0x4f2   : > { %v2571_v59 = vmul.f32 %v7521_v45, %v2570_v22  ;;  %v2554_v6 = vmul.f32 %v7499_v2, %v2553_v0  ;;  %3077 = vmatmul.bf16.gmra.mxu3 %v7548_v53  ;;  %5227 = vrsqrt.f32 %v7550_v31  ;;  %v2757_v22 = vpack.c.bf16 %v2725_v24, %v2725_v24 }
 0x4f3   : > { %v2568_v26 = vsel %vm2567_vm4, %v7492_v57, %v2564_v49  ;;  %v2421_v1 = vmul.f32 %v5224_v18, %v2420_v61  ;;  %v2639_v57 = vsel %vm2287_vm12, %v2418_v3, 0.0  ;;  %vm2426_vm8 = vweird.f32 %v5224_v18 }
 0x4f4   : > { %v2572_v35 = vmul.f32 0.5, %v2571_v59  ;;  %v2654_v25 = vsel %vm2302_vm11, %v2568_v26, 0.0  ;;  %v2558_v16 = vsel %vm2557_vm5, %v7499_v2, %v2554_v6  ;;  %v2837_v0 = vunpack.c.l.b16 %v2757_v22  ;;  %vm7602_vm11 = vmor %vm2575_vm6, %vm2576_vm7 }
 0x4f5   : > { %v2710_v33 = vmul.f32 %v2654_v25, %v7066_v13  ;;  %v2653_v21 = vsel %vm2301_vm13, %v2558_v16, 0.0  ;;  %v2422_v12 = vmul.f32 0.5, %v2421_v1  ;;  %v2838_v3 = vunpack.c.l.b16 %v2758_v5 }
 0x4f6   : > { %v2573_v43 = vsub.f32 1.5, %v2572_v35  ;;  %v2709_v42 = vmul.f32 %v2653_v21, %v7069_v44  ;;  %vm2425_vm12 = vweird.f32 %v7490_v52  ;;  %v2695_v11 = vmul.f32 %v2639_v57, %v6894_v7 }
 0x4f7   : > { %v7576_v34 = vpop.eup %5225  ;;  %v2423_v23 = vsub.f32 1.5, %v2422_v12  ;;  %v2742_v20 = vmul.f32 %v2710_v33, %v7191_v4  ;;  %v2588_v26 = vsel %vm7590_vm9, %v7472_v28, %v2584_v40  ;;  %vm2427_vm13 = vmor %vm2425_vm12, %vm2426_vm8  ;;  %v7618_v21 = vpack.c.b16 %v2838_v3, %v2837_v0 }
 0x4f8   : > { %v7579_v2 = vpop.xlane.xlu0 %2199  ;;  %v2574_v41 = vmul.f32 %v7521_v45, %v2573_v43  ;;  %v2440_v13 = vmul.f32 %v7576_v34, %v7525_v46  ;;  %v2741_v59 = vmul.f32 %v2709_v42, %v7191_v4  ;;  %v7598_v6 = vpop.eup %5227  ;;  %v2656_v60 = vsel %vm2304_vm15, %v2588_v26, 0.0 }
 0x4f9   : > { %5229 = vrsqrt.f32 %v7579_v2  ;;  %v2424_v24 = vmul.f32 %v5224_v18, %v2423_v23  ;;  %v2430_v16 = vmul.f32 %v7598_v6, %v7550_v31  ;;  %8673 = vst [vmem:[#allocation63_spill] sm:$0xff] %v7618_v21  ;;  %v2774_v43 = vpack.c.bf16 %v2742_v20, %v2742_v20 }
 0x4fa   : > { %v2441_v49 = vmul.f32 %v7576_v34, %v2440_v13  ;;  %v2578_v35 = vsel %vm7602_vm11, %v7521_v45, %v2574_v41  ;;  %v2773_v33 = vpack.c.bf16 %v2741_v59, %v2741_v59  ;;  %v2727_v13 = vmul.f32 %v2695_v11, %v6994_v54 }
 0x4fb   : > { %v2428_v1 = vsel %vm2427_vm13, %v5224_v18, %v2424_v24  ;;  %v2431_v57 = vmul.f32 %v7598_v6, %v2430_v16  ;;  %v2655_v45 = vsel %vm2303_vm14, %v2578_v35, 0.0  ;;  %v2983_v12 = vunpack.c.l.b16 %v2774_v43 }
 0x4fc   : > { %v2442_v25 = vmul.f32 0.5, %v2441_v49  ;;  %v2640_v7 = vsel %vm2288_vm10, %v2428_v1, 0.0  ;;  %v2982_v42 = vunpack.c.l.b16 %v2773_v33  ;;  %v2711_v23 = vmul.f32 %v2655_v45, %v7080_v56 }
 0x4fd   : > { %2937 = vmatmul.bf16.gmra.mxu2 %v7618_v21  ;;  %v2432_v40 = vmul.f32 0.5, %v2431_v57  ;;  %v2696_v29 = vmul.f32 %v2640_v7, %v6902_v10  ;;  %vm2446_vm0 = vweird.f32 %v7576_v34  ;;  %vm2436_vm1 = vweird.f32 %v7598_v6 }
 0x4fe   : > { %v2443_v28 = vsub.f32 1.5, %v2442_v25  ;;  %v7634_v41 = vpack.c.b16 %v2983_v12, %v2982_v42  ;;  %v2712_v49 = vmul.f32 %v2656_v60, %v7063_v50  ;;  %vm2445_vm2 = vweird.f32 %v7525_v46 }
 0x4ff   : > { %v7630_v5 = vpop.eup %5229  ;;  %v2433_v3 = vsub.f32 1.5, %v2432_v40  ;;  %vm7651_vm3 = vmor %vm2445_vm2, %vm2446_vm0  ;;  %vm2435_vm4 = vweird.f32 %v7550_v31  ;;  %v2728_v59 = vmul.f32 %v2696_v29, %v6994_v54  ;;  %v2759_v61 = vpack.c.bf16 %v2727_v13, %v2727_v13 }
 0x500   : > { %v7626_v18 = vpop.xlane.xlu0 %2233  ;;  %v7628_v22 = vpop.xlane.xlu2 %2229  ;;  %8674 = vst [vmem:[#allocation64_spill] sm:$0xff] %v7634_v41  ;;  %v2444_v0 = vmul.f32 %v7576_v34, %v2443_v28  ;;  %v2450_v44 = vmul.f32 %v7630_v5, %v7579_v2  ;;  %vm7660_vm5 = vmor %vm2435_vm4, %vm2436_vm1  ;;  %v2743_v20 = vmul.f32 %v2711_v23, %v7191_v4  ;;  %vm2290_vm6 = vcmp.gt.f32.partialorder %v7525_v46, 0.0 }
 0x501   : > { %v7632_v52 = vpop.xlane.xlu1 %2227  ;;  %5231 = vrsqrt.f32 %v7626_v18  ;;  %v2434_v10 = vmul.f32 %v7598_v6, %v2433_v3  ;;  %v2760_v25 = vpack.c.bf16 %v2728_v59, %v2728_v59  ;;  %vm2289_vm7 = vcmp.gt.f32.partialorder %v7550_v31, 0.0 }
 0x502   : > { %5233 = vrsqrt.f32 %v7632_v52  ;;  %3082 = vmatmul.bf16.gmra.mxu3 %v7634_v41  ;;  %v2448_v50 = vsel %vm7651_vm3, %v7576_v34, %v2444_v0  ;;  %v2451_v35 = vmul.f32 %v7630_v5, %v2450_v44  ;;  %v2744_v1 = vmul.f32 %v2712_v49, %v7191_v4  ;;  %v8704_v41 = vld [vmem:[#allocation54_spill] sm:$0xff] }
 0x503   : > { %5235 = vrsqrt.f32 %v7628_v22  ;;  %v2438_v26 = vsel %vm7660_vm5, %v7598_v6, %v2434_v10  ;;  %v2642_v43 = vsel %vm2290_vm6, %v2448_v50, 0.0  ;;  %v2839_v7 = vunpack.c.l.b16 %v2759_v61 }
 0x504   : > { %v2840_v28 = vunpack.c.l.b16 %v2760_v25  ;;  %v2641_v45 = vsel %vm2289_vm7, %v2438_v26, 0.0  ;;  %v2775_v31 = vpack.c.bf16 %v2743_v20, %v2743_v20  ;;  %v2452_v42 = vmul.f32 0.5, %v2451_v35 }
 0x505   : > { %v2776_v13 = vpack.c.bf16 %v2744_v1, %v2744_v1  ;;  %v2698_v23 = vmul.f32 %v2642_v43, %v6912_v14  ;;  %vm2455_vm8 = vweird.f32 %v7579_v2  ;;  %vm2456_vm9 = vweird.f32 %v7630_v5 }
 0x506   : > { %v7684_v40 = vpack.c.b16 %v2840_v28, %v2839_v7  ;;  %v2697_v3 = vmul.f32 %v2641_v45, %v6908_v39  ;;  %vm2305_vm10 = vcmp.gt.f32.partialorder %v7632_v52, 0.0  ;;  %vm2595_vm11 = vweird.f32 %v7632_v52  ;;  %vm7715_vm4 = vmor %vm2455_vm8, %vm2456_vm9 }
 0x507   : > { %v7665_v11 = vpop.eup %5231  ;;  %v2984_v49 = vunpack.c.l.b16 %v2775_v31  ;;  %v2453_v56 = vsub.f32 1.5, %v2452_v42  ;;  %v2985_v24 = vunpack.c.l.b16 %v2776_v13  ;;  %v2730_v20 = vmul.f32 %v2698_v23, %v6994_v54 }
 0x508   : > { %v2620_v34 = vmul.f32 %v7665_v11, %v7626_v18  ;;  %v5234_v33 = vpop.eup %5233  ;;  %v7679_v6 = vpop.xlane.xlu2 %2231  ;;  %8679 = vst [vmem:[#allocation65_spill] sm:$0xff] %v7684_v40  ;;  %vm2291_vm13 = vcmp.gt.f32.partialorder %v7579_v2, 0.0  ;;  %vm2306_vm14 = vcmp.gt.f32.partialorder %v7628_v22, 0.0  ;;  %v2729_v26 = vmul.f32 %v2697_v3, %v6994_v54 }
 0x509   : > { %v7675_v16 = vpop.xlane.xlu1 %2201  ;;  %v5236_v57 = vpop.eup %5235  ;;  %v2590_v46 = vmul.f32 %v5234_v33, %v7632_v52  ;;  %vm2596_vm12 = vweird.f32 %v5234_v33  ;;  %vm2605_vm0 = vweird.f32 %v7628_v22  ;;  %v7700_v1 = vpack.c.b16 %v2985_v24, %v2984_v49 }
 0x50a   : > { %5237 = vrsqrt.f32 %v7675_v16  ;;  %v2621_v12 = vmul.f32 %v7665_v11, %v2620_v34  ;;  %v2600_v60 = vmul.f32 %v5236_v57, %v7628_v22  ;;  %vm2606_vm15 = vweird.f32 %v5236_v57  ;;  %vm2597_vm2 = vmor %vm2595_vm11, %vm2596_vm12 }
 0x50b   : > { %v2591_v29 = vmul.f32 %v5234_v33, %v2590_v46  ;;  %5239 = vrsqrt.f32 %v7679_v6  ;;  %8680 = vst [vmem:[#allocation66_spill] sm:$0xff] %v7700_v1  ;;  %v2454_v43 = vmul.f32 %v7630_v5, %v2453_v56  ;;  %vm2626_vm1 = vweird.f32 %v7665_v11  ;;  %vm2607_vm3 = vmor %vm2605_vm0, %vm2606_vm15 }
 0x50c   : > { %v2601_v0 = vmul.f32 %v5236_v57, %v2600_v60  ;;  %v2622_v59 = vmul.f32 0.5, %v2621_v12  ;;  %v2762_v42 = vpack.c.bf16 %v2730_v20, %v2730_v20  ;;  %v2761_v13 = vpack.c.bf16 %v2729_v26, %v2729_v26 }
 0x50d   : > { %v2592_v44 = vmul.f32 0.5, %v2591_v29  ;;  %2942 = vmatmul.bf16.gmra.mxu2 %v7684_v40  ;;  %v2458_v52 = vsel %vm7715_vm4, %v7630_v5, %v2454_v43  ;;  %vm2292_vm6 = vcmp.gt.f32.partialorder %v7675_v16, 0.0  ;;  %vm2465_vm7 = vweird.f32 %v7675_v16  ;;  %v8703_v40 = vld [vmem:[#allocation36_spill] sm:$0xff] }
 0x50e   : > { %v2602_v61 = vmul.f32 0.5, %v2601_v0  ;;  %v2623_v45 = vsub.f32 1.5, %v2622_v59  ;;  %v2842_v56 = vunpack.c.l.b16 %v2762_v42  ;;  %v2841_v59 = vunpack.c.l.b16 %v2761_v13 }
 0x50f   : > { %v2593_v14 = vsub.f32 1.5, %v2592_v44  ;;  %v2643_v5 = vsel %vm2291_vm13, %v2458_v52, 0.0  ;;  %vm2625_vm11 = vweird.f32 %v7626_v18  ;;  %vm2307_vm13 = vcmp.gt.f32.partialorder %v7679_v6, 0.0 }
 0x510   : > { %v5238_v10 = vpop.eup %5237  ;;  %v2603_v39 = vsub.f32 1.5, %v2602_v61  ;;  %vm2308_vm15 = vcmp.gt.f32.partialorder %v7626_v18, 0.0  ;;  %v7838_v21 = vmul.f32 0.5, %v8704_v41 }
 0x511   : > { %v2460_v50 = vmul.f32 %v5238_v10, %v7675_v16  ;;  %v5240_v35 = vpop.eup %5239  ;;  %v2594_v25 = vmul.f32 %v5234_v33, %v2593_v14  ;;  %vm2466_vm5 = vweird.f32 %v5238_v10 }
 0x512   : > { %v2604_v7 = vmul.f32 %v5236_v57, %v2603_v39  ;;  %v2610_v28 = vmul.f32 %v5240_v35, %v7679_v6  ;;  %3087 = vmatmul.bf16.gmra.mxu3 %v7700_v1  ;;  %vm2467_vm8 = vmor %vm2465_vm7, %vm2466_vm5  ;;  %vm2616_vm9 = vweird.f32 %v5240_v35 }
 0x513   : > { %v2461_v34 = vmul.f32 %v5238_v10, %v2460_v50  ;;  %v2598_v46 = vsel %vm2597_vm2, %v5234_v33, %v2594_v25  ;;  %v7738_v25 = vpack.c.b16 %v2842_v56, %v2841_v59 }
 0x514   : > { %v2657_v12 = vsel %vm2305_vm10, %v2598_v46, 0.0  ;;  %v2608_v60 = vsel %vm2607_vm3, %v5236_v57, %v2604_v7  ;;  %v2611_v29 = vmul.f32 %v5240_v35, %v2610_v28  ;;  %vm2615_vm10 = vweird.f32 %v7679_v6 }
 0x515   : > { %v2462_v31 = vmul.f32 0.5, %v2461_v34  ;;  %v2713_v33 = vmul.f32 %v2657_v12, %v7110_v15  ;;  %v2658_v0 = vsel %vm2306_vm14, %v2608_v60, 0.0  ;;  %vm2617_vm12 = vmor %vm2615_vm10, %vm2616_vm9  ;;  %8683 = vst [vmem:[#allocation67_spill] sm:$0xff] %v7738_v25 }
 0x516   : > { %v2714_v57 = vmul.f32 %v2658_v0, %v7107_v63  ;;  %v2612_v44 = vmul.f32 0.5, %v2611_v29  ;;  %v2624_v63 = vmul.f32 %v7665_v11, %v2623_v45  ;;  %vm2627_vm14 = vmor %vm2625_vm11, %vm2626_vm1 }
 0x517   : > { %v2463_v3 = vsub.f32 1.5, %v2462_v31  ;;  %v2745_v15 = vmul.f32 %v2713_v33, %v7191_v4 }
 0x518   : > { %v2613_v22 = vsub.f32 1.5, %v2612_v44  ;;  %v2746_v61 = vmul.f32 %v2714_v57, %v7191_v4  ;;  %v2628_v43 = vsel %vm2627_vm14, %v7665_v11, %v2624_v63 }
 0x519   : > { %v2464_v49 = vmul.f32 %v5238_v10, %v2463_v3  ;;  %v2777_v50 = vpack.c.bf16 %v2745_v15, %v2745_v15  ;;  %v2660_v45 = vsel %vm2308_vm15, %v2628_v43, 0.0 }
 0x51a   : > { %v2614_v20 = vmul.f32 %v5240_v35, %v2613_v22  ;;  %v2778_v16 = vpack.c.bf16 %v2746_v61, %v2746_v61 }
 0x51b   : > { %v2468_v14 = vsel %vm2467_vm8, %v5238_v10, %v2464_v49  ;;  %v2986_v26 = vunpack.c.l.b16 %v2777_v50  ;;  %v2699_v10 = vmul.f32 %v2643_v5, %v6916_v55  ;;  %v2716_v55 = vmul.f32 %v2660_v45, %v7104_v27  ;;  %v7760_v27 = vpop.f32.mrf.mxu2 }
 0x51c   : > { %v2644_v24 = vsel %vm2292_vm6, %v2468_v14, 0.0  ;;  %v2618_v2 = vsel %vm2617_vm12, %v5240_v35, %v2614_v20  ;;  %v2987_v34 = vunpack.c.l.b16 %v2778_v16  ;;  %v7804_v45 = vmul.f32 0.5, %v6035_v36  ;;  %v8694_v36 = vld [vmem:[#allocation37_spill] sm:$0xff] }
 0x51d   : > { %v2700_v39 = vmul.f32 %v2644_v24, %v6920_v37  ;;  %v2659_v7 = vsel %vm2307_vm13, %v2618_v2, 0.0  ;;  %2947 = vmatmul.bf16.gmra.mxu2 %v7738_v25  ;;  %v2731_v35 = vmul.f32 %v2699_v10, %v6994_v54  ;;  %v2748_v12 = vmul.f32 %v2716_v55, %v7191_v4 }
 0x51e   : > { %v7746_v28 = vpack.c.b16 %v2987_v34, %v2986_v26  ;;  %v2715_v46 = vmul.f32 %v2659_v7, %v7118_v17  ;;  %v7816_v55 = vmul.f32 0.5, %v5949_v38  ;;  %v8699_v38 = vld [vmem:[#allocation33_spill] sm:$0xff] }
 0x51f   : > { %v2732_v37 = vmul.f32 %v2700_v39, %v6994_v54  ;;  %v2763_v11 = vpack.c.bf16 %v2731_v35, %v2731_v35  ;;  %v2780_v13 = vpack.c.bf16 %v2748_v12, %v2748_v12  ;;  %v7807_v35 = vmul.f32 0.5, %v6029_v30  ;;  %v8695_v30 = vld [vmem:[#allocation34_spill] sm:$0xff] }
 0x520   : > { %8684 = vst [vmem:[#allocation68_spill] sm:$0xff] %v7746_v28  ;;  %v2747_v6 = vmul.f32 %v2715_v46, %v7191_v4  ;;  %v7810_v46 = vmul.f32 0.5, %v6003_v8  ;;  %v8696_v8 = vld [vmem:[#allocation29_spill] sm:$0xff] }
 0x521   : > { %v2764_v31 = vpack.c.bf16 %v2732_v37, %v2732_v37  ;;  %v2843_v60 = vunpack.c.l.b16 %v2763_v11  ;;  %v2989_v54 = vunpack.c.l.b16 %v2780_v13  ;;  %v7801_v37 = vmul.f32 0.5, %v5965_v51  ;;  %8691 = vst [vmem:[#allocation75_spill] sm:$0xff] %v7807_v35  ;;  %v8693_v51 = vld [vmem:[#allocation38_spill] sm:$0xff] }
 0x522   : > { %3092 = vmatmul.bf16.gmra.mxu3 %v7746_v28  ;;  %v2779_v18 = vpack.c.bf16 %v2747_v6, %v2747_v6  ;;  %v8692_v6 = vld [vmem:[#allocation31_spill] sm:$0xff]  ;;  %v3110_v12 = vmul.f32 0.5, %v8693_v51  ;;  %v3113_v13 = vmul.f32 0.5, %v8696_v8  ;;  %8705 = vst [vmem:[#allocation38_spill] sm:$0xff] %v7838_v21 }
 0x523   : > { %v2844_v42 = vunpack.c.l.b16 %v2764_v31  ;;  %v2920_v0 = vpop.f32.mrf.mxu2  ;;  %8690 = vst [vmem:[#allocation74_spill] sm:$0xff] %v7801_v37  ;;  %v7813_v31 = vmul.f32 0.5, %v5978_v32  ;;  %v8700_v28 = vld [vmem:[#allocation51_spill] sm:$0xff] }
 0x524   : > { %v2988_v23 = vunpack.c.l.b16 %v2779_v18  ;;  %v7826_v18 = vmul.f32 0.5, %v8695_v30  ;;  %v7833_v25 = vmul.f32 0.5, %v8700_v28  ;;  %v8706_v30 = vld [vmem:[#allocation52_spill] sm:$0xff]  ;;  %v8708_v8 = vld [vmem:[#allocation43_spill] sm:$0xff] }
 0x525   : > { %v7754_v29 = vpack.c.b16 %v2844_v42, %v2843_v60  ;;  %v7819_v42 = vmul.f32 0.5, %v8692_v6  ;;  %v7823_v60 = vmul.f32 0.5, %v8694_v36  ;;  %v8702_v6 = vld [vmem:[#allocation35_spill] sm:$0xff]  ;;  %v3118_v36 = vmul.f32 0.5, %v8703_v40 }
 0x526   : > { %v7757_v17 = vpack.c.b16 %v2989_v54, %v2988_v23  ;;  %v8697_v23 = vld [vmem:[#allocation30_spill] sm:$0xff]  ;;  %v8698_v54 = vld [vmem:[#allocation32_spill] sm:$0xff]  ;;  %8701 = vst [vmem:[#allocation31_spill] sm:$0xff] %v7833_v25  ;;  %v3117_v1 = vmul.f32 0.5, %v8702_v6  ;;  %v7841_v53 = vmul.f32 0.5, %v8706_v30  ;;  %v7853_v6 = vmul.f32 0.5, %v8711_v48 }
 0x527   : > { %8685 = vst [vmem:[#allocation69_spill] sm:$0xff] %v7754_v29  ;;  %v3114_v32 = vmul.f32 0.5, %v8697_v23  ;;  %v7844_v23 = vmul.f32 0.5, %v8708_v8  ;;  %v3129_v30 = vmul.f32 0.5, %v8713_v62  ;;  %v8715_v8 = vld [vmem:[#allocation39_spill] sm:$0xff]  ;;  %v8718_v48 = vld [vmem:[#allocation48_spill] sm:$0xff] }
 0x528   : > { %8686 = vst [vmem:[#allocation70_spill] sm:$0xff] %v7757_v17  ;;  %v3131_v25 = vmul.f32 0.5, %v8715_v8 }
 0x529   : > { %8707 = vst [vmem:[#allocation37_spill] sm:$0xff] %v7841_v53  ;;  %v3134_v53 = vmul.f32 0.5, %v8718_v48 }
 0x52d   : > { %2952 = vmatmul.bf16.gmra.mxu2 %v7754_v29  ;;  %v3116_v29 = vmul.f32 0.5, %v8699_v38  ;;  %v8710_v38 = vld [vmem:[#allocation45_spill] sm:$0xff] }
 0x52e   : > { %v7850_v28 = vmul.f32 0.5, %v8710_v38  ;;  %v8717_v38 = vld [vmem:[#allocation44_spill] sm:$0xff] }
 0x532   : > { %3097 = vmatmul.bf16.gmra.mxu3 %v7757_v17  ;;  %v3115_v17 = vmul.f32 0.5, %v8698_v54  ;;  %v8709_v54 = vld [vmem:[#allocation41_spill] sm:$0xff] }
 0x533   : > { %v7847_v47 = vmul.f32 0.5, %v8709_v54 }
 0x544   : > { %v7762_v33 = vpop.f32.mrf.mxu3 }
 0x545   : > { %8687 = vst [vmem:[#allocation71_spill] sm:$0xff] %v7762_v33  ;;  %v8716_v33 = vld [vmem:[#allocation47_spill] sm:$0xff] }
 0x546   : > { %v3132_v54 = vmul.f32 0.5, %v8716_v33 }
 0x54c   : > { %v7764_v3 = vpop.f32.mrf.mxu3  ;;  %v7766_v4 = vpop.f32.mrf.mxu2 }
 0x54d   : > { %8688 = vst [vmem:[#allocation72_spill] sm:$0xff] %v7764_v3  ;;  %v3133_v3 = vmul.f32 0.5, %v8717_v38  ;;  %v7872_v9 = vmul.f32 0.5, %v7766_v4 }
 0x554   : > { %v7768_v52 = vpop.f32.mrf.mxu3  ;;  %v7770_v57 = vpop.f32.mrf.mxu2 }
 0x555   : > { %8689 = vst [vmem:[#allocation73_spill] sm:$0xff] %v7768_v52 }
 0x55c   : > { %v7772_v44 = vpop.f32.mrf.mxu3 }
 0x560   : > { %v7774_v49 = vpop.f32.mrf.mxu2 }
 0x565   : > { %v7776_v56 = vpop.f32.mrf.mxu3 }
 0x568   : > { %v7778_v15 = vpop.f32.mrf.mxu2 }
 0x56d   : > { %v7780_v22 = vpop.f32.mrf.mxu3 }
 0x570   : > { %v7782_v59 = vpop.f32.mrf.mxu2 }
 0x575   : > { %v7784_v61 = vpop.f32.mrf.mxu3 }
 0x578   : > { %v2935_v5 = vpop.f32.mrf.mxu2 }
 0x579   : > { %v3142_v52 = vmul.f32 0.5, %v2935_v5 }
 0x57d   : > { %v7786_v63 = vpop.f32.mrf.mxu3 }
 0x580   : > { %v7788_v14 = vpop.f32.mrf.mxu2 }
 0x585   : > { %v7790_v50 = vpop.f32.mrf.mxu3 }
 0x588   : > { %v7792_v24 = vpop.f32.mrf.mxu2 }
 0x58d   : > { %v7794_v20 = vpop.f32.mrf.mxu3 }
 0x590   : > { %v2943_v16 = vpop.f32.mrf.mxu2 }
 0x591   : > { %v3145_v38 = vmul.f32 0.5, %v2943_v16 }
 0x595   : > { %v7796_v39 = vpop.f32.mrf.mxu3 }
 0x598   : > { %v2945_v26 = vpop.f32.mrf.mxu2 }
 0x599   : > { %v3146_v8 = vmul.f32 0.5, %v2945_v26  ;;  %v7890_v26 = vadd.f32 %v3142_v52, %v3110_v12 }
 0x59d   : > { %v7798_v2 = vpop.f32.mrf.mxu3 }
 0x59e   : > { %v3162_v52 = vmul.f32 0.5, %v7798_v2 }
 0x5a0   : > { %v2948_v34 = vpop.f32.mrf.mxu2 }
 0x5a1   : > { %v3147_v37 = vmul.f32 0.5, %v2948_v34  ;;  %v7877_v34 = vmul.f32 0.5, %v7770_v57 }
 0x5a3   : > { %v7883_v5 = vadd.f32 %v3147_v37, %v3115_v17  ;;  %v3143_v37 = vmul.f32 0.5, %v7788_v14 }
 0x5a5   : > { %v3093_v10 = vpop.f32.mrf.mxu3  ;;  %v3211_v12 = vpack.c.bf16 %v7883_v5, %v7883_v5 }
 0x5a6   : > { %v3163_v57 = vmul.f32 0.5, %v3093_v10 }
 0x5a8   : > { %v2950_v43 = vpop.f32.mrf.mxu2  ;;  %v7911_v48 = vadd.f32 %v3163_v57, %v3131_v25 }
 0x5a9   : > { %v3148_v41 = vmul.f32 0.5, %v2950_v43  ;;  %v7869_v43 = vmul.f32 0.5, %v2920_v0 }
 0x5ab   : > { %v7874_v33 = vadd.f32 %v3148_v41, %v3116_v29  ;;  %v3141_v29 = vmul.f32 0.5, %v7782_v59 }
 0x5ad   : > { %v3095_v7 = vpop.f32.mrf.mxu3 }
 0x5ae   : > { %v3164_v0 = vmul.f32 0.5, %v3095_v7  ;;  %v3212_v7 = vpack.c.bf16 %v7874_v33, %v7874_v33 }
 0x5b0   : > { %v2953_v11 = vpop.f32.mrf.mxu2  ;;  %v7903_v59 = vadd.f32 %v3164_v0, %v3132_v54  ;;  %v3260_v54 = vunpack.c.l.b16 %v3212_v7  ;;  %v7923_v0 = vadd.f32 %v3162_v52, %v3130_v58 }
 0x5b1   : > { %v3149_v51 = vmul.f32 0.5, %v2953_v11  ;;  %v8712_v11 = vld [vmem:[#allocation50_spill] sm:$0xff] }
 0x5b2   : > { %v7856_v40 = vmul.f32 0.5, %v8712_v11  ;;  %v7867_v11 = vmul.f32 0.5, %v7760_v27  ;;  %v3140_v27 = vmul.f32 0.5, %v7778_v15  ;;  %v7895_v15 = vadd.f32 %v3146_v8, %v3114_v32  ;;  %v4933_v32 = vld [vmem:[%s5844_s27] sm:$0xff] }
 0x5b3   : > { %v7862_v21 = vadd.f32 %v3149_v51, %v3117_v1  ;;  %v7880_v51 = vmul.f32 0.5, %v7774_v49  ;;  %v3144_v49 = vmul.f32 0.5, %v7792_v24  ;;  %3609 = vmatmul.bf16.vlgmr.msra.gmra.mxu2 %v4933_v32  ;;  %v3228_v25 = vpack.c.bf16 %v7903_v59, %v7903_v59 }
 0x5b4   : > { %v3210_v8 = vpack.c.bf16 %v7895_v15, %v7895_v15 }
 0x5b5   : > { %v3098_v19 = vpop.f32.mrf.mxu3  ;;  %v3213_v4 = vpack.c.bf16 %v7862_v21, %v7862_v21  ;;  %v7918_v2 = vadd.f32 %v3144_v49, %v7826_v18  ;;  %v3159_v18 = vmul.f32 0.5, %v7790_v50  ;;  %v3227_v49 = vpack.c.bf16 %v7911_v48, %v7911_v48 }
 0x5b6   : > { %v3165_v35 = vmul.f32 0.5, %v3098_v19  ;;  %v3258_v7 = vunpack.c.l.b16 %v3210_v8  ;;  %v3357_v52 = vunpack.c.l.b16 %v3228_v25 }
 0x5b7   : > { %v3356_v32 = vunpack.c.l.b16 %v3227_v49  ;;  %v8719_v49 = vld [vmem:[#allocation75_spill] sm:$0xff] }
 0x5b8   : > { %v2955_v62 = vpop.f32.mrf.mxu2  ;;  %v7892_v41 = vadd.f32 %v3165_v35, %v3133_v3  ;;  %v7905_v3 = vadd.f32 %v3145_v38, %v3113_v13  ;;  %v3261_v35 = vunpack.c.l.b16 %v3213_v4  ;;  %v3259_v38 = vunpack.c.l.b16 %v3211_v12 }
 0x5b9   : > { %v3150_v1 = vmul.f32 0.5, %v2955_v62  ;;  %v3157_v12 = vmul.f32 0.5, %v7784_v61 }
 0x5ba   : > { %v3229_v14 = vpack.c.bf16 %v7892_v41, %v7892_v41  ;;  %v3209_v4 = vpack.c.bf16 %v7905_v3, %v7905_v3 }
 0x5bb   : > { %v7885_v19 = vadd.f32 %v3150_v1, %v3118_v36  ;;  %v3161_v36 = vmul.f32 0.5, %v7796_v39  ;;  %v3160_v1 = vmul.f32 0.5, %v7794_v20  ;;  %v7930_v39 = vadd.f32 %v3143_v37, %v7823_v60 }
 0x5bc   : > { %v3358_v58 = vunpack.c.l.b16 %v3229_v14  ;;  %v3208_v60 = vpack.c.bf16 %v7918_v2, %v7918_v2 }
 0x5bd   : > { %v3100_v16 = vpop.f32.mrf.mxu3  ;;  %v3214_v17 = vpack.c.bf16 %v7885_v19, %v7885_v19  ;;  %v7935_v57 = vadd.f32 %v3161_v36, %v3129_v30  ;;  %v7943_v50 = vadd.f32 %v3160_v1, %v7856_v40  ;;  %v3226_v30 = vpack.c.bf16 %v7923_v0, %v7923_v0 }
 0x5be   : > { %v3166_v10 = vmul.f32 0.5, %v3100_v16  ;;  %v3158_v16 = vmul.f32 0.5, %v7786_v63  ;;  %v3257_v63 = vunpack.c.l.b16 %v3209_v4  ;;  %v7957_v40 = vadd.f32 %v3159_v18, %v7853_v6 }
 0x5bf   : > { %v3262_v24 = vunpack.c.l.b16 %v3214_v17  ;;  %v3269_v17 = vpack.c.b16 %v3260_v54, %v3259_v38  ;;  %v3225_v36 = vpack.c.bf16 %v7935_v57, %v7935_v57  ;;  %v3355_v61 = vunpack.c.l.b16 %v3226_v30  ;;  %v4934_v38 = vld [vmem:[%s5844_s27 + $0x8] sm:$0xff] }
 0x5c0   : > { %v7913_v62 = vadd.f32 %v3166_v10, %v3134_v53  ;;  %v7948_v10 = vadd.f32 %v3140_v27, %v7816_v55  ;;  %v3156_v55 = vmul.f32 0.5, %v7780_v22  ;;  %v3268_v27 = vpack.c.b16 %v3258_v7, %v3257_v63 }
 0x5c1   : > { %v3270_v13 = vpack.c.b16 %v3262_v24, %v3261_v35  ;;  %v7951_v35 = vadd.f32 %v3141_v29, %v7819_v42  ;;  %v3207_v24 = vpack.c.bf16 %v7930_v39, %v7930_v39  ;;  %v3256_v42 = vunpack.c.l.b16 %v3208_v60  ;;  %v8721_v60 = vld [vmem:[#allocation37_spill] sm:$0xff] }
 0x5c2   : > { %v3230_v53 = vpack.c.bf16 %v7913_v62, %v7913_v62  ;;  %v3206_v29 = vpack.c.bf16 %v7890_v26, %v7890_v26  ;;  %v7965_v14 = vadd.f32 %v3158_v16, %v7850_v28  ;;  %v3224_v6 = vpack.c.bf16 %v7943_v50, %v7943_v50 }
 0x5c3   : > { %3279 = vmatpush.bf16.msrb.mxu0 %v3270_v13  ;;  %v3366_v13 = vpack.c.b16 %v3357_v52, %v3356_v32  ;;  %v7971_v54 = vadd.f32 %v7877_v34, %v7810_v46  ;;  %v7975_v22 = vadd.f32 %v7880_v51, %v7813_v31  ;;  %v3255_v8 = vunpack.c.l.b16 %v3207_v24  ;;  %3614 = vmatmul.bf16.gmra.mxu2 %v4934_v38 }
 0x5c4   : > { %v3359_v20 = vunpack.c.l.b16 %v3230_v53  ;;  %v3205_v28 = vpack.c.bf16 %v7951_v35, %v7951_v35  ;;  %v3155_v1 = vmul.f32 0.5, %v7776_v56  ;;  %v7981_v53 = vadd.f32 %v3157_v12, %v7847_v47  ;;  %v8723_v12 = vld [vmem:[#allocation38_spill] sm:$0xff] }
 0x5c5   : > { %v3354_v25 = vunpack.c.l.b16 %v3225_v36  ;;  %v3223_v46 = vpack.c.bf16 %v7957_v40, %v7957_v40  ;;  %v3154_v34 = vmul.f32 0.5, %v7772_v44  ;;  %v3267_v18 = vpack.c.b16 %v3256_v42, %v3255_v8  ;;  %v8724_v42 = vld [vmem:[#allocation74_spill] sm:$0xff] }
 0x5c6   : > { %v3367_v37 = vpack.c.b16 %v3359_v20, %v3358_v58  ;;  %v3254_v31 = vunpack.c.l.b16 %v3206_v29  ;;  %v3204_v51 = vpack.c.bf16 %v7948_v10, %v7948_v10  ;;  %v7990_v4 = vadd.f32 %v3156_v55, %v7844_v23  ;;  %v8720_v23 = vld [vmem:[#allocation73_spill] sm:$0xff] }
 0x5c7   : > { %3280 = vmatpush.bf16.msrb.mxu0 %v3269_v17  ;;  %v3365_v56 = vpack.c.b16 %v3355_v61, %v3354_v25  ;;  %v3353_v58 = vunpack.c.l.b16 %v3224_v6  ;;  %v3222_v47 = vpack.c.bf16 %v7965_v14, %v7965_v14  ;;  %v7996_v20 = vadd.f32 %v7869_v43, %v7804_v45  ;;  %v8722_v43 = vld [vmem:[#allocation72_spill] sm:$0xff]  ;;  %v8727_v25 = vld [vmem:[#allocation31_spill] sm:$0xff] }
 0x5c8   : > { %3376 = vmatpush.bf16.msrb.mxu1 %v3367_v37  ;;  %v8000_v44 = vadd.f32 %v7872_v9, %v8719_v49  ;;  %v3253_v16 = vunpack.c.l.b16 %v3205_v28  ;;  %v3203_v17 = vpack.c.bf16 %v7975_v22, %v7975_v22  ;;  %v3153_v7 = vmul.f32 0.5, %v8720_v23  ;;  %v8726_v28 = vld [vmem:[#allocation71_spill] sm:$0xff] }
 0x5c9   : > { %v8006_v37 = vadd.f32 %v3155_v1, %v8721_v60  ;;  %v3352_v52 = vunpack.c.l.b16 %v3223_v46  ;;  %v3221_v45 = vpack.c.bf16 %v7981_v53, %v7981_v53  ;;  %v3152_v30 = vmul.f32 0.5, %v8722_v43 }
 0x5ca   : > { %v3266_v63 = vpack.c.b16 %v3254_v31, %v3253_v16  ;;  %v3252_v9 = vunpack.c.l.b16 %v3204_v51  ;;  %v3202_v24 = vpack.c.bf16 %v7971_v54, %v7971_v54  ;;  %v8014_v32 = vadd.f32 %v3154_v34, %v8723_v12  ;;  %v8728_v31 = vld [vmem:[#allocation42_spill] sm:$0xff] }
 0x5cb   : > { %3281 = vmatpush.bf16.msrb.mxu0 %v3268_v27  ;;  %v3364_v36 = vpack.c.b16 %v3353_v58, %v3352_v52  ;;  %v3351_v55 = vunpack.c.l.b16 %v3222_v47  ;;  %v3220_v27 = vpack.c.bf16 %v7990_v4, %v7990_v4  ;;  %v8020_v29 = vadd.f32 %v7867_v11, %v8724_v42 }
 0x5cc   : > { %3377 = vmatpush.bf16.msrb.mxu1 %v3366_v13  ;;  %v8725_v13 = vld [vmem:[#allocation53_spill] sm:$0xff]  ;;  %v3251_v6 = vunpack.c.l.b16 %v3203_v17  ;;  %v3201_v8 = vpack.c.bf16 %v8000_v44, %v8000_v44  ;;  %v3151_v1 = vmul.f32 0.5, %v8726_v28  ;;  %v8027_v46 = vadd.f32 %v3153_v7, %v8727_v25  ;;  %v8730_v28 = vld [vmem:[#allocation56_spill] sm:$0xff] }
 0x5cd   : > { %v3120_v61 = vmul.f32 0.5, %v8725_v13  ;;  %v3350_v34 = vunpack.c.l.b16 %v3221_v45  ;;  %v3119_v11 = vmul.f32 0.5, %v8728_v31  ;;  %v3250_v38 = vunpack.c.l.b16 %v3202_v24  ;;  %v8731_v25 = vld [vmem:[#allocation57_spill] sm:$0xff]  ;;  %v8733_v31 = vld [vmem:[#allocation59_spill] sm:$0xff] }
 0x5ce   : > { %v3265_v51 = vpack.c.b16 %v3252_v9, %v3251_v6  ;;  %v3349_v49 = vunpack.c.l.b16 %v3220_v27  ;;  %v3218_v16 = vpack.c.bf16 %v8014_v32, %v8014_v32  ;;  %v3249_v17 = vunpack.c.l.b16 %v3201_v8  ;;  %v4935_v27 = vld [vmem:[%s5844_s27 + $0x10] sm:$0xff] }
 0x5cf   : > { %3282 = vmatpush.bf16.msrb.mxu0 %v3267_v18  ;;  %v3219_v18 = vpack.c.bf16 %v8006_v37, %v8006_v37  ;;  %v8034_v58 = vadd.f32 %v3152_v30, %v3120_v61  ;;  %v3363_v47 = vpack.c.b16 %v3351_v55, %v3350_v34  ;;  %v3199_v23 = vpack.c.bf16 %v8020_v29, %v8020_v29  ;;  %v8729_v6 = vld [vmem:[#allocation55_spill] sm:$0xff]  ;;  %v8732_v34 = vld [vmem:[#allocation58_spill] sm:$0xff] }
 0x5d0   : > { %3378 = vmatpush.bf16.msrb.mxu1 %v3365_v56  ;;  %v3200_v56 = vpack.c.bf16 %v7996_v20, %v7996_v20  ;;  %v8040_v7 = vadd.f32 %v3151_v1, %v3119_v11  ;;  %v3217_v52 = vpack.c.bf16 %v8027_v46, %v8027_v46  ;;  %v3264_v45 = vpack.c.b16 %v3250_v38, %v3249_v17  ;;  %v4936_v1 = vld [vmem:[%s5844_s27 + $0x18] sm:$0xff]  ;;  %v8735_v38 = vld [vmem:[#allocation61_spill] sm:$0xff] }
 0x5d1   : > { %v3348_v60 = vunpack.c.l.b16 %v3219_v18  ;;  %v3216_v9 = vpack.c.bf16 %v8034_v58, %v8034_v58  ;;  %v3247_v24 = vunpack.c.l.b16 %v3199_v23  ;;  %v4937_v18 = vld [vmem:[%s5844_s27 + $0x20] sm:$0xff]  ;;  %v8734_v11 = vld [vmem:[#allocation60_spill] sm:$0xff] }
 0x5d2   : > { %v3248_v43 = vunpack.c.l.b16 %v3200_v56  ;;  %v3346_v12 = vunpack.c.l.b16 %v3217_v52  ;;  %v8736_v56 = vld [vmem:[#allocation62_spill] sm:$0xff]  ;;  %v4964_v17 = vld [vmem:[#allocation13 + $0x38] sm:$0xff]  ;;  %v8739_v52 = vld [vmem:[#allocation65_spill] sm:$0xff] }
 0x5d3   : > { %3283 = vmatpush.bf16.msrb.mxu0 %v3266_v63  ;;  %v3362_v30 = vpack.c.b16 %v3349_v49, %v3348_v60  ;;  %v3347_v63 = vunpack.c.l.b16 %v3218_v16  ;;  %v3345_v13 = vunpack.c.l.b16 %v3216_v9  ;;  %3619 = vmatmul.bf16.gmra.mxu2 %v4935_v27  ;;  %v8737_v49 = vld [vmem:[#allocation63_spill] sm:$0xff]  ;;  %v8738_v16 = vld [vmem:[#allocation64_spill] sm:$0xff]  ;;  %v8740_v9 = vld [vmem:[#allocation66_spill] sm:$0xff] }
 0x5d4   : > { %3379 = vmatpush.bf16.msrb.mxu1 %v3364_v36  ;;  %v3215_v36 = vpack.c.bf16 %v8040_v7, %v8040_v7  ;;  %v3263_v55 = vpack.c.b16 %v3248_v43, %v3247_v24  ;;  %v4956_v23 = vld [vmem:[#allocation11 + $0x38] sm:$0xff]  ;;  %v4955_v43 = vld [vmem:[#allocation11 + $0x30] sm:$0xff]  ;;  %v4961_v24 = vld [vmem:[#allocation13 + $0x20] sm:$0xff] }
 0x5d5   : > { %v3361_v42 = vpack.c.b16 %v3347_v63, %v3346_v12  ;;  %v4940_v60 = vld [vmem:[%s5844_s27 + $0x38] sm:$0xff]  ;;  %v4954_v63 = vld [vmem:[#allocation11 + $0x28] sm:$0xff]  ;;  %v4953_v12 = vld [vmem:[#allocation11 + $0x20] sm:$0xff] }
 0x5d6   : > { %v3344_v61 = vunpack.c.l.b16 %v3215_v36  ;;  %v8741_v36 = vld [vmem:[#allocation67_spill] sm:$0xff]  ;;  %v4952_v27 = vld [vmem:[#allocation11 + $0x18] sm:$0xff] }
 0x5d7   : > { %3284 = vmatpush.bf16.msrb.mxu0 %v3265_v51  ;;  %v4938_v51 = vld [vmem:[%s5844_s27 + $0x28] sm:$0xff] }
 0x5d8   : > { %3380 = vmatpush.bf16.msrb.mxu1 %v3363_v47  ;;  %v3360_v8 = vpack.c.b16 %v3345_v13, %v3344_v61  ;;  %v4939_v47 = vld [vmem:[%s5844_s27 + $0x30] sm:$0xff] }
 0x5d9   : > { %v4959_v61 = vld [vmem:[#allocation13 + $0x10] sm:$0xff] }
 0x5db   : > { %3285 = vmatpush.bf16.msrb.mxu0 %v3264_v45  ;;  %v4963_v45 = vld [vmem:[#allocation13 + $0x30] sm:$0xff] }
 0x5dc   : > { %3381 = vmatpush.bf16.msrb.mxu1 %v3362_v30  ;;  %v4962_v30 = vld [vmem:[#allocation13 + $0x28] sm:$0xff] }
 0x5df   : > { %3286 = vmatpush.bf16.msrb.mxu0 %v3263_v55  ;;  %v4960_v55 = vld [vmem:[#allocation13 + $0x18] sm:$0xff] }
 0x5e0   : > { %3382 = vmatpush.bf16.msrb.mxu1 %v3361_v42  ;;  %v4941_v42 = vld [vmem:[%s5844_s27 + $0x40] sm:$0xff] }
 0x5e1   : > { %3706 = vmatmul.bf16.vlgmr.msra.gmra.mxu3 %v4941_v42 }
 0x5e2   : > { %3287 = vmatmul.bf16.vlgmr.msrb.gmra.mxu0 %v8729_v6  ;;  %v4951_v6 = vld [vmem:[#allocation11 + $0x10] sm:$0xff] }
 0x5e3   : > { %3624 = vmatmul.bf16.gmra.mxu2 %v4936_v1  ;;  %3859 = vmatpush.bf16.msra.mxu0 %v4964_v17  ;;  %v4950_v1 = vld [vmem:[#allocation11 + $0x8] sm:$0xff] }
 0x5e4   : > { %3383 = vmatpush.bf16.msrb.mxu1 %v3360_v8  ;;  %v8742_v8 = vld [vmem:[#allocation68_spill] sm:$0xff] }
 0x5e7   : > { %3384 = vmatmul.bf16.vlgmr.msrb.gmra.mxu1 %v8730_v28  ;;  %3860 = vmatpush.bf16.msra.mxu0 %v4963_v45  ;;  %v4958_v28 = vld [vmem:[#allocation13 + $0x8] sm:$0xff] }
 0x5e8   : > { %3996 = vmatpush.bf16.msra.mxu1 %v4956_v23  ;;  %v3441_v23 = vmul.f32 0.5, %v8040_v7  ;;  %v3442_v7 = vmul.f32 0.5, %v8034_v58  ;;  %v3427_v58 = vmul.f32 0.5, %v8000_v44  ;;  %v3445_v44 = vmul.f32 0.5, %v8006_v37 }
 0x5e9   : > { %v3446_v37 = vmul.f32 0.5, %v7990_v4  ;;  %v3431_v4 = vmul.f32 0.5, %v7951_v35 }
 0x5eb   : > { %3861 = vmatpush.bf16.msra.mxu0 %v4962_v30 }
 0x5ec   : > { %3997 = vmatpush.bf16.msra.mxu1 %v4955_v43 }
 0x5ef   : > { %3862 = vmatpush.bf16.msra.mxu0 %v4961_v24 }
 0x5f0   : > { %3998 = vmatpush.bf16.msra.mxu1 %v4954_v63  ;;  %v3425_v63 = vmul.f32 0.5, %v8020_v29 }
 0x5f2   : > { %3292 = vmatmul.bf16.gmra.mxu0 %v8731_v25 }
 0x5f3   : > { %3629 = vmatmul.bf16.gmra.mxu2 %v4937_v18  ;;  %3863 = vmatpush.bf16.msra.mxu0 %v4960_v55  ;;  %v4957_v18 = vld [vmem:[#allocation13] sm:$0xff] }
 0x5f4   : > { %3999 = vmatpush.bf16.msra.mxu1 %v4953_v12 }
 0x5f7   : > { %3389 = vmatmul.bf16.gmra.mxu1 %v8732_v34  ;;  %3864 = vmatpush.bf16.msra.mxu0 %v4959_v61  ;;  %v4949_v34 = vld [vmem:[#allocation11] sm:$0xff] }
 0x5f8   : > { %4000 = vmatpush.bf16.msra.mxu1 %v4952_v27 }
 0x5fb   : > { %3865 = vmatpush.bf16.msra.mxu0 %v4958_v28 }
 0x5fc   : > { %4001 = vmatpush.bf16.msra.mxu1 %v4951_v6 }
 0x5ff   : > { %3866 = vmatpush.bf16.msra.mxu0 %v4957_v18 }
 0x600   : > { %4002 = vmatpush.bf16.msra.mxu1 %v4950_v1  ;;  %v3443_v1 = vmul.f32 0.5, %v8027_v46  ;;  %v3444_v46 = vmul.f32 0.5, %v8014_v32  ;;  %v3429_v32 = vmul.f32 0.5, %v7975_v22 }
 0x602   : > { %3297 = vmatmul.bf16.gmra.mxu0 %v8733_v31  ;;  %v8743_v31 = vld [vmem:[#allocation69_spill] sm:$0xff] }
 0x603   : > { %3634 = vmatmul.bf16.gmra.mxu2 %v4938_v51 }
 0x604   : > { %4003 = vmatpush.bf16.msra.mxu1 %v4949_v34 }
 0x607   : > { %3394 = vmatmul.bf16.gmra.mxu1 %v8734_v11  ;;  %v4942_v11 = vld [vmem:[%s5844_s27 + $0x48] sm:$0xff] }
 0x608   : > { %3711 = vmatmul.bf16.gmra.mxu3 %v4942_v11 }
 0x612   : > { %3302 = vmatmul.bf16.gmra.mxu0 %v8735_v38  ;;  %v8744_v38 = vld [vmem:[#allocation70_spill] sm:$0xff] }
 0x613   : > { %3639 = vmatmul.bf16.gmra.mxu2 %v4939_v47 }
 0x617   : > { %3399 = vmatmul.bf16.gmra.mxu1 %v8736_v56 }
 0x622   : > { %3307 = vmatmul.bf16.gmra.mxu0 %v8737_v49  ;;  %v4943_v49 = vld [vmem:[%s5844_s27 + $0x50] sm:$0xff] }
 0x623   : > { %3644 = vmatmul.bf16.gmra.mxu2 %v4940_v60  ;;  %3716 = vmatmul.bf16.gmra.mxu3 %v4943_v49 }
 0x627   : > { %3404 = vmatmul.bf16.gmra.mxu1 %v8738_v16 }
 0x632   : > { %3312 = vmatmul.bf16.gmra.mxu0 %v8739_v52 }
 0x636   : > { %v3610_v13 = vpop.f32.mrf.mxu2 }
 0x637   : > { %3409 = vmatmul.bf16.gmra.mxu1 %v8740_v9  ;;  %v3426_v9 = vmul.f32 0.5, %v7996_v20 }
 0x63e   : > { %v3612_v25 = vpop.f32.mrf.mxu2 }
 0x63f   : > { %v3747_v52 = vpack.c.bf16 %v3612_v25, %v3610_v13 }
 0x642   : > { %3317 = vmatmul.bf16.gmra.mxu0 %v8741_v36 }
 0x646   : > { %v3615_v51 = vpop.f32.mrf.mxu2 }
 0x647   : > { %3414 = vmatmul.bf16.gmra.mxu1 %v8742_v8  ;;  %v4944_v8 = vld [vmem:[%s5844_s27 + $0x58] sm:$0xff] }
 0x648   : > { %3721 = vmatmul.bf16.gmra.mxu3 %v4944_v8 }
 0x64e   : > { %v3617_v56 = vpop.f32.mrf.mxu2 }
 0x64f   : > { %v3748_v25 = vpack.c.bf16 %v3617_v56, %v3615_v51 }
 0x652   : > { %3322 = vmatmul.bf16.gmra.mxu0 %v8743_v31  ;;  %v3428_v31 = vmul.f32 0.5, %v7971_v54 }
 0x656   : > { %v3620_v17 = vpop.f32.mrf.mxu2 }
 0x657   : > { %3419 = vmatmul.bf16.gmra.mxu1 %v8744_v38 }
 0x65e   : > { %v3622_v13 = vpop.f32.mrf.mxu2 }
 0x65f   : > { %v3288_v47 = vpop.f32.mrf.mxu0  ;;  %v3749_v54 = vpack.c.bf16 %v3622_v13, %v3620_v17 }
 0x660   : > { %v3457_v45 = vmul.f32 0.5, %v3288_v47 }
 0x662   : > { %v3489_v12 = vadd.f32 %v3457_v45, %v3425_v63  ;;  %v4945_v45 = vld [vmem:[%s5844_s27 + $0x60] sm:$0xff] }
 0x663   : > { %3726 = vmatmul.bf16.gmra.mxu3 %v4945_v45 }
 0x664   : > { %v3385_v16 = vpop.f32.mrf.mxu1 }
 0x665   : > { %v3473_v60 = vmul.f32 0.5, %v3385_v16 }
 0x666   : > { %v3625_v38 = vpop.f32.mrf.mxu2 }
 0x667   : > { %v3290_v43 = vpop.f32.mrf.mxu0  ;;  %v8074_v30 = vadd.f32 %v3473_v60, %v3441_v23  ;;  %4004 = vmatmul.bf16.vlgmr.msra.gmra.mxu1 %v3747_v52 }
 0x668   : > { %v3458_v24 = vmul.f32 0.5, %v3290_v43 }
 0x66a   : > { %v3490_v36 = vadd.f32 %v3458_v24, %v3426_v9 }
 0x66c   : > { %v3763_v55 = vpack.c.bf16 %v3490_v36, %v3489_v12  ;;  %v3387_v27 = vpop.f32.mrf.mxu1  ;;  %v3430_v36 = vmul.f32 0.5, %v7948_v10 }
 0x66d   : > { %v3474_v42 = vmul.f32 0.5, %v3387_v27 }
 0x66e   : > { %3867 = vmatmul.bf16.vlgmr.msra.gmra.mxu0 %v3763_v55  ;;  %v3627_v52 = vpop.f32.mrf.mxu2 }
 0x66f   : > { %v3293_v61 = vpop.f32.mrf.mxu0  ;;  %v8079_v6 = vadd.f32 %v3474_v42, %v3442_v7 }
 0x670   : > { %v3459_v20 = vmul.f32 0.5, %v3293_v61 }
 0x672   : > { %v3491_v47 = vadd.f32 %v3459_v20, %v3427_v58  ;;  %v3750_v20 = vpack.c.bf16 %v3627_v52, %v3625_v38 }
 0x674   : > { %v3390_v28 = vpop.f32.mrf.mxu1 }
 0x675   : > { %v3475_v29 = vmul.f32 0.5, %v3390_v28 }
 0x676   : > { %v3630_v8 = vpop.f32.mrf.mxu2 }
 0x677   : > { %v3295_v34 = vpop.f32.mrf.mxu0  ;;  %v8083_v18 = vadd.f32 %v3475_v29, %v3443_v1  ;;  %4009 = vmatmul.bf16.gmra.mxu1 %v3748_v25  ;;  %v4946_v1 = vld [vmem:[%s5844_s27 + $0x68] sm:$0xff]  ;;  %v3447_v25 = vmul.f32 0.5, %v7981_v53  ;;  %v3448_v53 = vmul.f32 0.5, %v7965_v14  ;;  %v3433_v14 = vmul.f32 0.5, %v7930_v39 }
 0x678   : > { %v3460_v11 = vmul.f32 0.5, %v3295_v34  ;;  %3731 = vmatmul.bf16.gmra.mxu3 %v4946_v1  ;;  %v4948_v1 = vld [vmem:[%s5844_s27 + $0x78] sm:$0xff] }
 0x67a   : > { %v3492_v49 = vadd.f32 %v3460_v11, %v3428_v31  ;;  %v3432_v11 = vmul.f32 0.5, %v7890_v26  ;;  %v3449_v26 = vmul.f32 0.5, %v7957_v40  ;;  %v3450_v40 = vmul.f32 0.5, %v7943_v50 }
 0x67b   : > { %v3435_v50 = vmul.f32 0.5, %v7905_v3  ;;  %v4971_v3 = vld [vmem:[#allocation14 + $0x30] sm:$0xff] }
 0x67c   : > { %v3764_v16 = vpack.c.bf16 %v3492_v49, %v3491_v47  ;;  %v3392_v23 = vpop.f32.mrf.mxu1 }
 0x67d   : > { %v3476_v51 = vmul.f32 0.5, %v3392_v23 }
 0x67e   : > { %3872 = vmatmul.bf16.gmra.mxu0 %v3764_v16  ;;  %v3632_v34 = vpop.f32.mrf.mxu2 }
 0x67f   : > { %v3298_v56 = vpop.f32.mrf.mxu0  ;;  %v8088_v60 = vadd.f32 %v3476_v51, %v3444_v46  ;;  %v3771_v51 = vpack.c.bf16 %v8079_v6, %v8074_v30 }
 0x680   : > { %v3461_v9 = vmul.f32 0.5, %v3298_v56 }
 0x682   : > { %v3493_v27 = vadd.f32 %v3461_v9, %v3429_v32  ;;  %v3434_v32 = vmul.f32 0.5, %v7918_v2  ;;  %v3451_v2 = vmul.f32 0.5, %v7935_v57  ;;  %v3452_v57 = vmul.f32 0.5, %v7923_v0 }
 0x684   : > { %v3395_v43 = vpop.f32.mrf.mxu1 }
 0x685   : > { %v3477_v63 = vmul.f32 0.5, %v3395_v43  ;;  %v4947_v43 = vld [vmem:[%s5844_s27 + $0x70] sm:$0xff] }
 0x686   : > { %v3635_v45 = vpop.f32.mrf.mxu2 }
 0x687   : > { %v3300_v24 = vpop.f32.mrf.mxu0  ;;  %v8092_v12 = vadd.f32 %v3477_v63, %v3445_v44  ;;  %4014 = vmatmul.bf16.gmra.mxu1 %v3749_v54  ;;  %v3751_v63 = vpack.c.bf16 %v3632_v34, %v3630_v8 }
 0x688   : > { %v3462_v55 = vmul.f32 0.5, %v3300_v24  ;;  %3736 = vmatmul.bf16.gmra.mxu3 %v4947_v43 }
 0x68a   : > { %v3494_v7 = vadd.f32 %v3462_v55, %v3430_v36 }
 0x68c   : > { %v3765_v42 = vpack.c.bf16 %v3494_v7, %v3493_v27  ;;  %v3397_v61 = vpop.f32.mrf.mxu1 }
 0x68d   : > { %v3478_v17 = vmul.f32 0.5, %v3397_v61 }
 0x68e   : > { %3877 = vmatmul.bf16.gmra.mxu0 %v3765_v42  ;;  %v3637_v7 = vpop.f32.mrf.mxu2 }
 0x68f   : > { %v3303_v13 = vpop.f32.mrf.mxu0  ;;  %v8097_v28 = vadd.f32 %v3478_v17, %v3446_v37  ;;  %v3772_v37 = vpack.c.bf16 %v8088_v60, %v8083_v18 }
 0x690   : > { %v3463_v10 = vmul.f32 0.5, %v3303_v13 }
 0x692   : > { %v3495_v49 = vadd.f32 %v3463_v10, %v3431_v4 }
 0x694   : > { %v3400_v29 = vpop.f32.mrf.mxu1 }
 0x695   : > { %v3479_v22 = vmul.f32 0.5, %v3400_v29 }
 0x696   : > { %v3640_v29 = vpop.f32.mrf.mxu2 }
 0x697   : > { %v3305_v58 = vpop.f32.mrf.mxu0  ;;  %v8101_v31 = vadd.f32 %v3479_v22, %v3447_v25  ;;  %4019 = vmatmul.bf16.gmra.mxu1 %v3750_v20  ;;  %v3752_v22 = vpack.c.bf16 %v3637_v7, %v3635_v45 }
 0x698   : > { %v3464_v47 = vmul.f32 0.5, %v3305_v58  ;;  %3741 = vmatmul.bf16.gmra.mxu3 %v4948_v1  ;;  %v3436_v58 = vmul.f32 0.5, %v7895_v15  ;;  %v4970_v15 = vld [vmem:[#allocation14 + $0x28] sm:$0xff]  ;;  %v4968_v1 = vld [vmem:[#allocation14 + $0x18] sm:$0xff] }
 0x69a   : > { %v3496_v16 = vadd.f32 %v3464_v47, %v3432_v11 }
 0x69c   : > { %v3766_v23 = vpack.c.bf16 %v3496_v16, %v3495_v49  ;;  %v3402_v46 = vpop.f32.mrf.mxu1  ;;  %v4972_v49 = vld [vmem:[#allocation14 + $0x38] sm:$0xff] }
 0x69d   : > { %v3480_v38 = vmul.f32 0.5, %v3402_v46  ;;  %4205 = vmatpush.bf16.msrb.mxu2 %v4972_v49 }
 0x69e   : > { %3882 = vmatmul.bf16.gmra.mxu0 %v3766_v23 }
 0x69f   : > { %v3308_v56 = vpop.f32.mrf.mxu0  ;;  %v8108_v52 = vadd.f32 %v3480_v38, %v3448_v53  ;;  %v3773_v53 = vpack.c.bf16 %v8097_v28, %v8092_v12  ;;  %v3642_v38 = vpop.f32.mrf.mxu2 }
 0x6a0   : > { %v3465_v54 = vmul.f32 0.5, %v3308_v56 }
 0x6a1   : > { %4206 = vmatpush.bf16.msrb.mxu2 %v4971_v3 }
 0x6a2   : > { %v3497_v55 = vadd.f32 %v3465_v54, %v3433_v14  ;;  %v3437_v14 = vmul.f32 0.5, %v7883_v5 }
 0x6a4   : > { %v3405_v35 = vpop.f32.mrf.mxu1 }
 0x6a5   : > { %v3481_v44 = vmul.f32 0.5, %v3405_v35  ;;  %v3453_v35 = vmul.f32 0.5, %v7911_v48  ;;  %4207 = vmatpush.bf16.msrb.mxu2 %v4970_v15 }
 0x6a7   : > { %v3310_v9 = vpop.f32.mrf.mxu0  ;;  %v8112_v24 = vadd.f32 %v3481_v44, %v3449_v26  ;;  %4024 = vmatmul.bf16.gmra.mxu1 %v3751_v63  ;;  %v3753_v44 = vpack.c.bf16 %v3642_v38, %v3640_v29  ;;  %v4969_v63 = vld [vmem:[#allocation14 + $0x20] sm:$0xff]  ;;  %v4967_v29 = vld [vmem:[#allocation14 + $0x10] sm:$0xff] }
 0x6a8   : > { %v3466_v36 = vmul.f32 0.5, %v3310_v9 }
 0x6a9   : > { %4208 = vmatpush.bf16.msrb.mxu2 %v4969_v63 }
 0x6aa   : > { %v3498_v27 = vadd.f32 %v3466_v36, %v3434_v32  ;;  %v3438_v32 = vmul.f32 0.5, %v7874_v33 }
 0x6ac   : > { %v3767_v42 = vpack.c.bf16 %v3498_v27, %v3497_v55  ;;  %v3407_v61 = vpop.f32.mrf.mxu1  ;;  %v3645_v55 = vpop.f32.mrf.mxu2 }
 0x6ad   : > { %v3482_v8 = vmul.f32 0.5, %v3407_v61  ;;  %v3707_v27 = vpop.f32.mrf.mxu3  ;;  %4209 = vmatpush.bf16.msrb.mxu2 %v4968_v1 }
 0x6ae   : > { %3887 = vmatmul.bf16.gmra.mxu0 %v3767_v42 }
 0x6af   : > { %v3313_v17 = vpop.f32.mrf.mxu0  ;;  %v8119_v13 = vadd.f32 %v3482_v8, %v3450_v40  ;;  %v3454_v40 = vmul.f32 0.5, %v7903_v59 }
 0x6b0   : > { %v3467_v20 = vmul.f32 0.5, %v3313_v17  ;;  %v3774_v17 = vpack.c.bf16 %v8108_v52, %v8101_v31 }
 0x6b1   : > { %4210 = vmatpush.bf16.msrb.mxu2 %v4967_v29  ;;  %v3775_v15 = vpack.c.bf16 %v8119_v13, %v8112_v24 }
 0x6b2   : > { %v3499_v11 = vadd.f32 %v3467_v20, %v3435_v50 }
 0x6b4   : > { %v3410_v39 = vpop.f32.mrf.mxu1 }
 0x6b5   : > { %v3483_v25 = vmul.f32 0.5, %v3410_v39  ;;  %v3709_v33 = vpop.f32.mrf.mxu3 }
 0x6b7   : > { %v3315_v10 = vpop.f32.mrf.mxu0  ;;  %v8123_v34 = vadd.f32 %v3483_v25, %v3451_v2  ;;  %4029 = vmatmul.bf16.gmra.mxu1 %v3752_v22  ;;  %v3647_v2 = vpop.f32.mrf.mxu2  ;;  %v3455_v22 = vmul.f32 0.5, %v7892_v41 }
 0x6b8   : > { %v3468_v4 = vmul.f32 0.5, %v3315_v10  ;;  %v3754_v10 = vpack.c.bf16 %v3647_v2, %v3645_v55 }
 0x6ba   : > { %v3500_v47 = vadd.f32 %v3468_v4, %v3436_v58  ;;  %v3439_v4 = vmul.f32 0.5, %v7862_v21 }
 0x6bc   : > { %v3768_v16 = vpack.c.bf16 %v3500_v47, %v3499_v11  ;;  %v3412_v23 = vpop.f32.mrf.mxu1  ;;  %v3440_v11 = vmul.f32 0.5, %v7885_v19 }
 0x6bd   : > { %v3484_v46 = vmul.f32 0.5, %v3412_v23  ;;  %v3712_v49 = vpop.f32.mrf.mxu3 }
 0x6be   : > { %3892 = vmatmul.bf16.gmra.mxu0 %v3768_v16  ;;  %v4966_v16 = vld [vmem:[#allocation14 + $0x8] sm:$0xff] }
 0x6bf   : > { %v3318_v56 = vpop.f32.mrf.mxu0  ;;  %v8130_v45 = vadd.f32 %v3484_v46, %v3452_v57  ;;  %4211 = vmatpush.bf16.msrb.mxu2 %v4966_v16  ;;  %v4965_v46 = vld [vmem:[#allocation14] sm:$0xff] }
 0x6c0   : > { %v3469_v0 = vmul.f32 0.5, %v3318_v56  ;;  %v3456_v56 = vmul.f32 0.5, %v7913_v62 }
 0x6c2   : > { %v3501_v7 = vadd.f32 %v3469_v0, %v3437_v14  ;;  %v3776_v0 = vpack.c.bf16 %v8130_v45, %v8123_v34  ;;  %v8160_v14 = vld [vmem:[%s8462_s9] ss:$0 sm:$0xff] }
 0x6c3   : > { %4212 = vmatpush.bf16.msrb.mxu2 %v4965_v46 }
 0x6c4   : > { %v3415_v43 = vpop.f32.mrf.mxu1 }
 0x6c5   : > { %v3485_v26 = vmul.f32 0.5, %v3415_v43  ;;  %v3714_v19 = vpop.f32.mrf.mxu3 }
 0x6c7   : > { %v3320_v54 = vpop.f32.mrf.mxu0  ;;  %v8133_v9 = vadd.f32 %v3485_v26, %v3453_v35  ;;  %4034 = vmatmul.bf16.gmra.mxu1 %v3753_v44  ;;  %v3755_v35 = vpack.c.bf16 %v3709_v33, %v3707_v27  ;;  %v3756_v27 = vpack.c.bf16 %v3714_v19, %v3712_v49 }
 0x6c8   : > { %v3470_v36 = vmul.f32 0.5, %v3320_v54 }
 0x6ca   : > { %v3502_v42 = vadd.f32 %v3470_v36, %v3438_v32 }
 0x6cc   : > { %v3769_v48 = vpack.c.bf16 %v3502_v42, %v3501_v7  ;;  %v3417_v61 = vpop.f32.mrf.mxu1 }
 0x6cd   : > { %v3486_v8 = vmul.f32 0.5, %v3417_v61  ;;  %v3717_v26 = vpop.f32.mrf.mxu3 }
 0x6ce   : > { %3897 = vmatmul.bf16.gmra.mxu0 %v3769_v48 }
 0x6cf   : > { %v3323_v39 = vpop.f32.mrf.mxu0  ;;  %v8140_v5 = vadd.f32 %v3486_v8, %v3454_v40 }
 0x6d0   : > { %v3471_v59 = vmul.f32 0.5, %v3323_v39 }
 0x6d1   : > { %v3777_v61 = vpack.c.bf16 %v8140_v5, %v8133_v9 }
 0x6d2   : > { %v3503_v23 = vadd.f32 %v3471_v59, %v3439_v4 }
 0x6d4   : > { %v3420_v25 = vpop.f32.mrf.mxu1 }
 0x6d5   : > { %v3487_v20 = vmul.f32 0.5, %v3420_v25  ;;  %v3719_v62 = vpop.f32.mrf.mxu3 }
 0x6d6   : > { %v3757_v29 = vpack.c.bf16 %v3719_v62, %v3717_v26 }
 0x6d7   : > { %v3325_v50 = vpop.f32.mrf.mxu0  ;;  %v8143_v58 = vadd.f32 %v3487_v20, %v3455_v22  ;;  %4039 = vmatmul.bf16.gmra.mxu1 %v3754_v10 }
 0x6d8   : > { %v3472_v47 = vmul.f32 0.5, %v3325_v50 }
 0x6da   : > { %v3504_v57 = vadd.f32 %v3472_v47, %v3440_v11 }
 0x6dc   : > { %v3770_v38 = vpack.c.bf16 %v3504_v57, %v3503_v23  ;;  %v3422_v41 = vpop.f32.mrf.mxu1 }
 0x6dd   : > { %v3488_v3 = vmul.f32 0.5, %v3422_v41  ;;  %v3722_v6 = vpop.f32.mrf.mxu3 }
 0x6de   : > { %3902 = vmatmul.bf16.gmra.mxu0 %v3770_v38 }
 0x6df   : > { %v8150_v21 = vadd.f32 %v3488_v3, %v3456_v56 }
 0x6e4   : > { %v4005_v43 = vpop.f32.mrf.mxu1 }
 0x6e5   : > { %v3724_v8 = vpop.f32.mrf.mxu3 }
 0x6e6   : > { %v3758_v11 = vpack.c.bf16 %v3724_v8, %v3722_v6 }
 0x6e7   : > { %4044 = vmatmul.bf16.gmra.mxu1 %v3755_v35 }
 0x6eb   : > { %v3868_v44 = vpop.f32.mrf.mxu0 }
 0x6ec   : > { %v4007_v63 = vpop.f32.mrf.mxu1  ;;  %v4006_v54 = vadd.f32 %v4005_v43, %v3868_v44 }
 0x6ed   : > { %v3727_v60 = vpop.f32.mrf.mxu3 }
 0x6ee   : > { %3907 = vmatmul.bf16.gmra.mxu0 %v3771_v51  ;;  %v8163_v7 = vadd.f32 %v8160_v14, %v4006_v54 }
 0x6f3   : > { %v3870_v32 = vpop.f32.mrf.mxu0 }
 0x6f4   : > { %v4008_v36 = vadd.f32 %v4007_v63, %v3870_v32  ;;  %v4010_v55 = vpop.f32.mrf.mxu1 }
 0x6f5   : > { %v3729_v16 = vpop.f32.mrf.mxu3 }
 0x6f6   : > { %v8166_v42 = vadd.f32 %v8160_v14, %v4008_v36  ;;  %v3759_v56 = vpack.c.bf16 %v3729_v16, %v3727_v60 }
 0x6f7   : > { %4049 = vmatmul.bf16.gmra.mxu1 %v3756_v27 }
 0x6f8   : > { %v4121_v30 = vpack.c.bf16 %v8166_v42, %v8163_v7 }
 0x6fa   : > { %4213 = vmatmul.bf16.vlgmr.msrb.gmra.mxu2 %v4121_v30 }
 0x6fb   : > { %v3873_v51 = vpop.f32.mrf.mxu0 }
 0x6fc   : > { %v4012_v48 = vpop.f32.mrf.mxu1  ;;  %v4011_v40 = vadd.f32 %v4010_v55, %v3873_v51 }
 0x6fd   : > { %v3732_v28 = vpop.f32.mrf.mxu3 }
 0x6fe   : > { %3912 = vmatmul.bf16.gmra.mxu0 %v3772_v37  ;;  %v8176_v2 = vadd.f32 %v8160_v14, %v4011_v40  ;;  %v3778_v37 = vpack.c.bf16 %v8150_v21, %v8143_v58 }
 0x703   : > { %v3875_v1 = vpop.f32.mrf.mxu0 }
 0x704   : > { %v4013_v39 = vadd.f32 %v4012_v48, %v3875_v1  ;;  %v4015_v33 = vpop.f32.mrf.mxu1 }
 0x705   : > { %v3734_v35 = vpop.f32.mrf.mxu3 }
 0x706   : > { %v8179_v25 = vadd.f32 %v8160_v14, %v4013_v39  ;;  %v3760_v54 = vpack.c.bf16 %v3734_v35, %v3732_v28 }
 0x707   : > { %4054 = vmatmul.bf16.gmra.mxu1 %v3757_v29 }
 0x708   : > { %v4122_v22 = vpack.c.bf16 %v8179_v25, %v8176_v2 }
 0x70a   : > { %4218 = vmatmul.bf16.gmra.mxu2 %v4122_v22 }
 0x70b   : > { %v3878_v20 = vpop.f32.mrf.mxu0 }
 0x70c   : > { %v4017_v18 = vpop.f32.mrf.mxu1  ;;  %v4016_v10 = vadd.f32 %v4015_v33, %v3878_v20 }
 0x70d   : > { %v3737_v62 = vpop.f32.mrf.mxu3 }
 0x70e   : > { %3917 = vmatmul.bf16.gmra.mxu0 %v3773_v53  ;;  %v8189_v47 = vadd.f32 %v8160_v14, %v4016_v10 }
 0x713   : > { %v3880_v59 = vpop.f32.mrf.mxu0 }
 0x714   : > { %v4018_v50 = vadd.f32 %v4017_v18, %v3880_v59  ;;  %v4020_v4 = vpop.f32.mrf.mxu1 }
 0x715   : > { %v3739_v13 = vpop.f32.mrf.mxu3 }
 0x716   : > { %v8192_v49 = vadd.f32 %v8160_v14, %v4018_v50  ;;  %v3761_v48 = vpack.c.bf16 %v3739_v13, %v3737_v62 }
 0x717   : > { %4059 = vmatmul.bf16.gmra.mxu1 %v3758_v11 }
 0x718   : > { %v4123_v23 = vpack.c.bf16 %v8192_v49, %v8189_v47 }
 0x71a   : > { %4223 = vmatmul.bf16.gmra.mxu2 %v4123_v23 }
 0x71b   : > { %v3883_v57 = vpop.f32.mrf.mxu0 }
 0x71c   : > { %v4022_v12 = vpop.f32.mrf.mxu1  ;;  %v4021_v53 = vadd.f32 %v4020_v4, %v3883_v57 }
 0x71d   : > { %v3742_v39 = vpop.f32.mrf.mxu3 }
 0x71e   : > { %3922 = vmatmul.bf16.gmra.mxu0 %v3774_v17  ;;  %v8200_v3 = vadd.f32 %v8160_v14, %v4021_v53 }
 0x723   : > { %v3885_v46 = vpop.f32.mrf.mxu0 }
 0x724   : > { %v4023_v38 = vadd.f32 %v4022_v12, %v3885_v46  ;;  %v4025_v41 = vpop.f32.mrf.mxu1 }
 0x725   : > { %v3744_v33 = vpop.f32.mrf.mxu3 }
 0x726   : > { %v8203_v19 = vadd.f32 %v8160_v14, %v4023_v38  ;;  %v3762_v18 = vpack.c.bf16 %v3744_v33, %v3742_v39 }
 0x727   : > { %4064 = vmatmul.bf16.gmra.mxu1 %v3759_v56  ;;  %v8262_v56 = vld [vmem:[%s8745_s8] ss:$0 sm:$0xff] }
 0x728   : > { %v4124_v43 = vpack.c.bf16 %v8203_v19, %v8200_v3 }
 0x72a   : > { %4228 = vmatmul.bf16.gmra.mxu2 %v4124_v43 }
 0x72b   : > { %v3888_v31 = vpop.f32.mrf.mxu0 }
 0x72c   : > { %v4027_v52 = vpop.f32.mrf.mxu1  ;;  %v4026_v17 = vadd.f32 %v4025_v41, %v3888_v31 }
 0x72e   : > { %3927 = vmatmul.bf16.gmra.mxu0 %v3775_v15  ;;  %v8211_v32 = vadd.f32 %v8160_v14, %v4026_v17 }
 0x733   : > { %v3890_v26 = vpop.f32.mrf.mxu0 }
 0x734   : > { %v4028_v44 = vadd.f32 %v4027_v52, %v3890_v26  ;;  %v4030_v63 = vpop.f32.mrf.mxu1 }
 0x736   : > { %v8214_v36 = vadd.f32 %v8160_v14, %v4028_v44 }
 0x737   : > { %4069 = vmatmul.bf16.gmra.mxu1 %v3760_v54 }
 0x738   : > { %v4125_v55 = vpack.c.bf16 %v8214_v36, %v8211_v32 }
 0x73a   : > { %4233 = vmatmul.bf16.gmra.mxu2 %v4125_v55 }
 0x73b   : > { %v3893_v27 = vpop.f32.mrf.mxu0 }
 0x73c   : > { %v4032_v24 = vpop.f32.mrf.mxu1  ;;  %v4031_v15 = vadd.f32 %v4030_v63, %v3893_v27 }
 0x73e   : > { %3932 = vmatmul.bf16.gmra.mxu0 %v3776_v0  ;;  %v8222_v40 = vadd.f32 %v8160_v14, %v4031_v15 }
 0x743   : > { %v3895_v30 = vpop.f32.mrf.mxu0 }
 0x744   : > { %v4033_v6 = vadd.f32 %v4032_v24, %v3895_v30  ;;  %v4035_v51 = vpop.f32.mrf.mxu1 }
 0x746   : > { %v8225_v8 = vadd.f32 %v8160_v14, %v4033_v6 }
 0x747   : > { %4074 = vmatmul.bf16.gmra.mxu1 %v3761_v48 }
 0x748   : > { %v4126_v1 = vpack.c.bf16 %v8225_v8, %v8222_v40 }
 0x74a   : > { %4238 = vmatmul.bf16.gmra.mxu2 %v4126_v1 }
 0x74b   : > { %v3898_v34 = vpop.f32.mrf.mxu0 }
 0x74c   : > { %v4037_v45 = vpop.f32.mrf.mxu1  ;;  %v4036_v0 = vadd.f32 %v4035_v51, %v3898_v34 }
 0x74e   : > { %3937 = vmatmul.bf16.gmra.mxu0 %v3777_v61  ;;  %v8233_v60 = vadd.f32 %v8160_v14, %v4036_v0 }
 0x753   : > { %v3900_v29 = vpop.f32.mrf.mxu0 }
 0x754   : > { %v4038_v22 = vadd.f32 %v4037_v45, %v3900_v29  ;;  %v4040_v20 = vpop.f32.mrf.mxu1 }
 0x756   : > { %v8236_v10 = vadd.f32 %v8160_v14, %v4038_v22 }
 0x757   : > { %4079 = vmatmul.bf16.gmra.mxu1 %v3762_v18 }
 0x758   : > { %v4127_v59 = vpack.c.bf16 %v8236_v10, %v8233_v60 }
 0x75a   : > { %4243 = vmatmul.bf16.gmra.mxu2 %v4127_v59 }
 0x75b   : > { %v3903_v50 = vpop.f32.mrf.mxu0 }
 0x75c   : > { %v4042_v9 = vpop.f32.mrf.mxu1  ;;  %v4041_v5 = vadd.f32 %v4040_v20, %v3903_v50 }
 0x75e   : > { %3942 = vmatmul.bf16.gmra.mxu0 %v3778_v37  ;;  %v8244_v16 = vadd.f32 %v8160_v14, %v4041_v5 }
 0x763   : > { %v3905_v61 = vpop.f32.mrf.mxu0 }
 0x764   : > { %v4043_v4 = vadd.f32 %v4042_v9, %v3905_v61  ;;  %v4045_v11 = vpop.f32.mrf.mxu1 }
 0x766   : > { %v8247_v23 = vadd.f32 %v8160_v14, %v4043_v4 }
 0x768   : > { %v4128_v57 = vpack.c.bf16 %v8247_v23, %v8244_v16 }
 0x76a   : > { %4248 = vmatmul.bf16.gmra.mxu2 %v4128_v57 }
 0x76b   : > { %v3908_v12 = vpop.f32.mrf.mxu0 }
 0x76c   : > { %v4047_v28 = vpop.f32.mrf.mxu1  ;;  %v4046_v53 = vadd.f32 %v4045_v11, %v3908_v12 }
 0x76e   : > { %v8252_v46 = vadd.f32 %v8160_v14, %v4046_v53 }
 0x773   : > { %v3910_v58 = vpop.f32.mrf.mxu0 }
 0x774   : > { %v4048_v21 = vadd.f32 %v4047_v28, %v3910_v58  ;;  %v4050_v37 = vpop.f32.mrf.mxu1 }
 0x776   : > { %v8255_v38 = vadd.f32 %v8160_v14, %v4048_v21 }
 0x778   : > { %v4129_v41 = vpack.c.bf16 %v8255_v38, %v8252_v46 }
 0x77a   : > { %4253 = vmatmul.bf16.gmra.mxu2 %v4129_v41 }
 0x77b   : > { %v3913_v43 = vpop.f32.mrf.mxu0 }
 0x77c   : > { %v4052_v35 = vpop.f32.mrf.mxu1  ;;  %v4051_v26 = vadd.f32 %v4050_v37, %v3913_v43 }
 0x77d   : > { %v4214_v31 = vpop.f32.mrf.mxu2 }
 0x77e   : > { %v4215_v52 = vadd.f32 %v8262_v56, %v4214_v31  ;;  %v8271_v27 = vadd.f32 %v8160_v14, %v4051_v26 }
 0x780   : > { %v4294_v17 = vmul.f32 0.1, %v4215_v52 }
 0x782   : > { %v4326_v44 = vadd.f32 %v4294_v17, %v8163_v7 }
 0x783   : > { %v3915_v63 = vpop.f32.mrf.mxu0 }
 0x784   : > { %4358 = vst [vmem:[%s8267_s23] sm:$0xff] %v4326_v44  ;;  %v4053_v62 = vadd.f32 %v4052_v35, %v3915_v63  ;;  %v4055_v54 = vpop.f32.mrf.mxu1 }
 0x785   : > { %v4216_v55 = vpop.f32.mrf.mxu2 }
 0x786   : > { %v8274_v24 = vadd.f32 %v8160_v14, %v4053_v62  ;;  %v4217_v13 = vadd.f32 %v8262_v56, %v4216_v55 }
 0x788   : > { %v4295_v15 = vmul.f32 0.1, %v4217_v13  ;;  %v4130_v7 = vpack.c.bf16 %v8274_v24, %v8271_v27 }
 0x78a   : > { %v4327_v30 = vadd.f32 %v4295_v15, %v8166_v42  ;;  %4258 = vmatmul.bf16.gmra.mxu2 %v4130_v7 }
 0x78b   : > { %v3918_v6 = vpop.f32.mrf.mxu0 }
 0x78c   : > { %4359 = vst [vmem:[%s8267_s23 + $0x8] sm:$0xff] %v4327_v30  ;;  %v4057_v51 = vpop.f32.mrf.mxu1  ;;  %v4056_v34 = vadd.f32 %v4055_v54, %v3918_v6 }
 0x78d   : > { %v4219_v48 = vpop.f32.mrf.mxu2 }
 0x78e   : > { %v4220_v1 = vadd.f32 %v8262_v56, %v4219_v48  ;;  %v8285_v20 = vadd.f32 %v8160_v14, %v4056_v34 }
 0x790   : > { %v4296_v39 = vmul.f32 0.1, %v4220_v1 }
 0x792   : > { %v4328_v45 = vadd.f32 %v4296_v39, %v8176_v2 }
 0x793   : > { %v3920_v0 = vpop.f32.mrf.mxu0 }
 0x794   : > { %4360 = vst [vmem:[%s8267_s23 + $0x10] sm:$0xff] %v4328_v45  ;;  %v4058_v33 = vadd.f32 %v4057_v51, %v3920_v0  ;;  %v4060_v29 = vpop.f32.mrf.mxu1 }
 0x795   : > { %v4221_v22 = vpop.f32.mrf.mxu2 }
 0x796   : > { %v8288_v42 = vadd.f32 %v8160_v14, %v4058_v33  ;;  %v4222_v18 = vadd.f32 %v8262_v56, %v4221_v22 }
 0x798   : > { %v4297_v59 = vmul.f32 0.1, %v4222_v18  ;;  %v4131_v50 = vpack.c.bf16 %v8288_v42, %v8285_v20 }
 0x79a   : > { %v4329_v2 = vadd.f32 %v4297_v59, %v8179_v25  ;;  %4263 = vmatmul.bf16.gmra.mxu2 %v4131_v50 }
 0x79b   : > { %v3923_v9 = vpop.f32.mrf.mxu0 }
 0x79c   : > { %4361 = vst [vmem:[%s8267_s23 + $0x18] sm:$0xff] %v4329_v2  ;;  %v4062_v5 = vpop.f32.mrf.mxu1  ;;  %v4061_v57 = vadd.f32 %v4060_v29, %v3923_v9 }
 0x79d   : > { %v4224_v61 = vpop.f32.mrf.mxu2 }
 0x79e   : > { %v4225_v4 = vadd.f32 %v8262_v56, %v4224_v61  ;;  %v8299_v37 = vadd.f32 %v8160_v14, %v4061_v57 }
 0x7a0   : > { %v4298_v11 = vmul.f32 0.1, %v4225_v4 }
 0x7a2   : > { %v4330_v12 = vadd.f32 %v4298_v11, %v8189_v47 }
 0x7a3   : > { %v3925_v28 = vpop.f32.mrf.mxu0 }
 0x7a4   : > { %4362 = vst [vmem:[%s8267_s23 + $0x20] sm:$0xff] %v4330_v12  ;;  %v4063_v53 = vadd.f32 %v4062_v5, %v3925_v28  ;;  %v4065_v58 = vpop.f32.mrf.mxu1 }
 0x7a5   : > { %v4226_v21 = vpop.f32.mrf.mxu2 }
 0x7a6   : > { %v8302_v25 = vadd.f32 %v8160_v14, %v4063_v53  ;;  %v4227_v41 = vadd.f32 %v8262_v56, %v4226_v21 }
 0x7a8   : > { %v4299_v43 = vmul.f32 0.1, %v4227_v41  ;;  %v4132_v35 = vpack.c.bf16 %v8302_v25, %v8299_v37 }
 0x7aa   : > { %v4331_v47 = vadd.f32 %v4299_v43, %v8192_v49  ;;  %4268 = vmatmul.bf16.gmra.mxu2 %v4132_v35 }
 0x7ab   : > { %v3928_v31 = vpop.f32.mrf.mxu0 }
 0x7ac   : > { %4363 = vst [vmem:[%s8267_s23 + $0x28] sm:$0xff] %v4331_v47  ;;  %v4067_v52 = vpop.f32.mrf.mxu1  ;;  %v4066_v63 = vadd.f32 %v4065_v58, %v3928_v31 }
 0x7ad   : > { %v4229_v17 = vpop.f32.mrf.mxu2 }
 0x7ae   : > { %v4230_v26 = vadd.f32 %v8262_v56, %v4229_v17  ;;  %v8313_v7 = vadd.f32 %v8160_v14, %v4066_v63 }
 0x7b0   : > { %v4300_v44 = vmul.f32 0.1, %v4230_v26 }
 0x7b2   : > { %v4332_v62 = vadd.f32 %v4300_v44, %v8200_v3 }
 0x7b3   : > { %v3930_v54 = vpop.f32.mrf.mxu0 }
 0x7b4   : > { %4364 = vst [vmem:[%s8267_s23 + $0x30] sm:$0xff] %v4332_v62  ;;  %v4068_v55 = vadd.f32 %v4067_v52, %v3930_v54  ;;  %v4070_v13 = vpop.f32.mrf.mxu1 }
 0x7b5   : > { %v4231_v15 = vpop.f32.mrf.mxu2 }
 0x7b6   : > { %v8316_v49 = vadd.f32 %v8160_v14, %v4068_v55  ;;  %v4232_v30 = vadd.f32 %v8262_v56, %v4231_v15 }
 0x7b8   : > { %v4301_v6 = vmul.f32 0.1, %v4232_v30  ;;  %v4133_v51 = vpack.c.bf16 %v8316_v49, %v8313_v7 }
 0x7ba   : > { %v4333_v3 = vadd.f32 %v4301_v6, %v8203_v19  ;;  %4273 = vmatmul.bf16.gmra.mxu2 %v4133_v51 }
 0x7bb   : > { %v3933_v48 = vpop.f32.mrf.mxu0 }
 0x7bc   : > { %4365 = vst [vmem:[%s8267_s23 + $0x38] sm:$0xff] %v4333_v3  ;;  %v4072_v1 = vpop.f32.mrf.mxu1  ;;  %v4071_v0 = vadd.f32 %v4070_v13, %v3933_v48 }
 0x7bd   : > { %v4234_v39 = vpop.f32.mrf.mxu2 }
 0x7be   : > { %v4235_v34 = vadd.f32 %v8262_v56, %v4234_v39  ;;  %v8327_v50 = vadd.f32 %v8160_v14, %v4071_v0 }
 0x7c0   : > { %v4302_v45 = vmul.f32 0.1, %v4235_v34 }
 0x7c2   : > { %v4334_v33 = vadd.f32 %v4302_v45, %v8211_v32 }
 0x7c3   : > { %v3935_v29 = vpop.f32.mrf.mxu0 }
 0x7c4   : > { %4366 = vst [vmem:[%s8267_s23 + $0x40] sm:$0xff] %v4334_v33  ;;  %v4073_v22 = vadd.f32 %v4072_v1, %v3935_v29  ;;  %v4075_v59 = vpop.f32.mrf.mxu1 }
 0x7c5   : > { %v4236_v18 = vpop.f32.mrf.mxu2 }
 0x7c6   : > { %v8330_v19 = vadd.f32 %v8160_v14, %v4073_v22  ;;  %v4237_v2 = vadd.f32 %v8262_v56, %v4236_v18 }
 0x7c8   : > { %v4303_v9 = vmul.f32 0.1, %v4237_v2  ;;  %v4134_v5 = vpack.c.bf16 %v8330_v19, %v8327_v50 }
 0x7ca   : > { %v4335_v32 = vadd.f32 %v4303_v9, %v8214_v36  ;;  %4278 = vmatmul.bf16.gmra.mxu2 %v4134_v5 }
 0x7cb   : > { %v3938_v61 = vpop.f32.mrf.mxu0 }
 0x7cc   : > { %4367 = vst [vmem:[%s8267_s23 + $0x48] sm:$0xff] %v4335_v32  ;;  %v4077_v57 = vpop.f32.mrf.mxu1  ;;  %v4076_v28 = vadd.f32 %v4075_v59, %v3938_v61 }
 0x7cd   : > { %v4239_v4 = vpop.f32.mrf.mxu2 }
 0x7ce   : > { %v4240_v11 = vadd.f32 %v8262_v56, %v4239_v4  ;;  %v8341_v43 = vadd.f32 %v8160_v14, %v4076_v28 }
 0x7d0   : > { %v4304_v12 = vmul.f32 0.1, %v4240_v11 }
 0x7d2   : > { %v4336_v53 = vadd.f32 %v4304_v12, %v8222_v40 }
 0x7d3   : > { %v3940_v58 = vpop.f32.mrf.mxu0 }
 0x7d4   : > { %4368 = vst [vmem:[%s8267_s23 + $0x50] sm:$0xff] %v4336_v53  ;;  %v4078_v21 = vadd.f32 %v4077_v57, %v3940_v58  ;;  %v4080_v52 = vpop.f32.mrf.mxu1 }
 0x7d5   : > { %v4241_v41 = vpop.f32.mrf.mxu2 }
 0x7d6   : > { %v8344_v36 = vadd.f32 %v8160_v14, %v4078_v21  ;;  %v4242_v35 = vadd.f32 %v8262_v56, %v4241_v41 }
 0x7d8   : > { %v4305_v47 = vmul.f32 0.1, %v4242_v35  ;;  %v4135_v31 = vpack.c.bf16 %v8344_v36, %v8341_v43 }
 0x7da   : > { %v4337_v40 = vadd.f32 %v4305_v47, %v8225_v8  ;;  %4283 = vmatmul.bf16.gmra.mxu2 %v4135_v31 }
 0x7db   : > { %v3943_v17 = vpop.f32.mrf.mxu0 }
 0x7dc   : > { %4369 = vst [vmem:[%s8267_s23 + $0x58] sm:$0xff] %v4337_v40  ;;  %v4081_v62 = vadd.f32 %v4080_v52, %v3943_v17  ;;  %v4082_v13 = vpop.f32.mrf.mxu1 }
 0x7dd   : > { %v4244_v26 = vpop.f32.mrf.mxu2 }
 0x7de   : > { %v4245_v44 = vadd.f32 %v8262_v56, %v4244_v26  ;;  %v8355_v6 = vadd.f32 %v8160_v14, %v4081_v62 }
 0x7e0   : > { %v4306_v63 = vmul.f32 0.1, %v4245_v44 }
 0x7e2   : > { %v4338_v54 = vadd.f32 %v4306_v63, %v8233_v60 }
 0x7e3   : > { %v3945_v55 = vpop.f32.mrf.mxu0 }
 0x7e4   : > { %4370 = vst [vmem:[%s8267_s23 + $0x60] sm:$0xff] %v4338_v54  ;;  %v4083_v15 = vadd.f32 %v4082_v13, %v3945_v55 }
 0x7e5   : > { %v4246_v30 = vpop.f32.mrf.mxu2 }
 0x7e6   : > { %v8358_v8 = vadd.f32 %v8160_v14, %v4083_v15  ;;  %v4247_v51 = vadd.f32 %v8262_v56, %v4246_v30 }
 0x7e8   : > { %v4307_v3 = vmul.f32 0.1, %v4247_v51  ;;  %v4136_v48 = vpack.c.bf16 %v8358_v8, %v8355_v6 }
 0x7ea   : > { %v4339_v60 = vadd.f32 %v4307_v3, %v8236_v10  ;;  %4288 = vmatmul.bf16.gmra.mxu2 %v4136_v48 }
 0x7ec   : > { %4371 = vst [vmem:[%s8267_s23 + $0x68] sm:$0xff] %v4339_v60 }
 0x7ed   : > { %v4249_v1 = vpop.f32.mrf.mxu2 }
 0x7ee   : > { %v4250_v39 = vadd.f32 %v8262_v56, %v4249_v1 }
 0x7f0   : > { %v4308_v34 = vmul.f32 0.1, %v4250_v39 }
 0x7f2   : > { %v4340_v45 = vadd.f32 %v4308_v34, %v8244_v16 }
 0x7f4   : > { %4372 = vst [vmem:[%s8267_s23 + $0x70] sm:$0xff] %v4340_v45 }
 0x7f5   : > { %v4251_v14 = vpop.f32.mrf.mxu2 }
 0x7f6   : > { %v4252_v0 = vadd.f32 %v8262_v56, %v4251_v14 }
 0x7f8   : > { %v4309_v33 = vmul.f32 0.1, %v4252_v0 }
 0x7fa   : > { %v4341_v29 = vadd.f32 %v4309_v33, %v8247_v23 }
 0x7fc   : > { %4373 = vst [vmem:[%s8267_s23 + $0x78] sm:$0xff] %v4341_v29 }
 0x7fd   : > { %v4254_v10 = vpop.f32.mrf.mxu2 }
 0x7fe   : > { %v4255_v22 = vadd.f32 %v8262_v56, %v4254_v10 }
 0x800   : > { %v4310_v18 = vmul.f32 0.1, %v4255_v22 }
 0x802   : > { %v4342_v59 = vadd.f32 %v4310_v18, %v8252_v46 }
 0x804   : > { %4374 = vst [vmem:[%s8267_s23 + $0x80] sm:$0xff] %v4342_v59 }
 0x805   : > { %v4256_v2 = vpop.f32.mrf.mxu2 }
 0x806   : > { %v4257_v16 = vadd.f32 %v8262_v56, %v4256_v2 }
 0x808   : > { %v4311_v9 = vmul.f32 0.1, %v4257_v16 }
 0x80a   : > { %v4343_v5 = vadd.f32 %v4311_v9, %v8255_v38 }
 0x80c   : > { %4375 = vst [vmem:[%s8267_s23 + $0x88] sm:$0xff] %v4343_v5 }
 0x80d   : > { %v4259_v32 = vpop.f32.mrf.mxu2 }
 0x80e   : > { %v4260_v23 = vadd.f32 %v8262_v56, %v4259_v32 }
 0x810   : > { %v4312_v61 = vmul.f32 0.1, %v4260_v23 }
 0x812   : > { %v4344_v4 = vadd.f32 %v4312_v61, %v8271_v27 }
 0x814   : > { %4376 = vst [vmem:[%s8267_s23 + $0x90] sm:$0xff] %v4344_v4 }
 0x815   : > { %v4261_v11 = vpop.f32.mrf.mxu2 }
 0x816   : > { %v4262_v46 = vadd.f32 %v8262_v56, %v4261_v11 }
 0x818   : > { %v4313_v57 = vmul.f32 0.1, %v4262_v46 }
 0x81a   : > { %v4345_v12 = vadd.f32 %v4313_v57, %v8274_v24 }
 0x81c   : > { %4377 = vst [vmem:[%s8267_s23 + $0x98] sm:$0xff] %v4345_v12 }
 0x81d   : > { %v4264_v28 = vpop.f32.mrf.mxu2 }
 0x81e   : > { %v4265_v38 = vadd.f32 %v8262_v56, %v4264_v28 }
 0x820   : > { %v4314_v53 = vmul.f32 0.1, %v4265_v38 }
 0x822   : > { %v4346_v58 = vadd.f32 %v4314_v53, %v8285_v20 }
 0x824   : > { %4378 = vst [vmem:[%s8267_s23 + $0xa0] sm:$0xff] %v4346_v58 }
 0x825   : > { %v4266_v21 = vpop.f32.mrf.mxu2 }
 0x826   : > { %v4267_v27 = vadd.f32 %v8262_v56, %v4266_v21 }
 0x828   : > { %v4315_v41 = vmul.f32 0.1, %v4267_v27 }
 0x82a   : > { %v4347_v35 = vadd.f32 %v4315_v41, %v8288_v42 }
 0x82c   : > { %4379 = vst [vmem:[%s8267_s23 + $0xa8] sm:$0xff] %v4347_v35 }
 0x82d   : > { %v4269_v47 = vpop.f32.mrf.mxu2 }
 0x82e   : > { %v4270_v24 = vadd.f32 %v8262_v56, %v4269_v47 }
 0x830   : > { %v4316_v31 = vmul.f32 0.1, %v4270_v24 }
 0x832   : > { %v4348_v52 = vadd.f32 %v4316_v31, %v8299_v37 }
 0x834   : > { %4380 = vst [vmem:[%s8267_s23 + $0xb0] sm:$0xff] %v4348_v52 }
 0x835   : > { %v4271_v40 = vpop.f32.mrf.mxu2 }
 0x836   : > { %v4272_v20 = vadd.f32 %v8262_v56, %v4271_v40 }
 0x838   : > { %v4317_v17 = vmul.f32 0.1, %v4272_v20 }
 0x83a   : > { %v4349_v26 = vadd.f32 %v4317_v17, %v8302_v25 }
 0x83c   : > { %4381 = vst [vmem:[%s8267_s23 + $0xb8] sm:$0xff] %v4349_v26 }
 0x83d   : > { %v4274_v44 = vpop.f32.mrf.mxu2 }
 0x83e   : > { %v4275_v42 = vadd.f32 %v8262_v56, %v4274_v44 }
 0x840   : > { %v4318_v63 = vmul.f32 0.1, %v4275_v42 }
 0x842   : > { %v4350_v62 = vadd.f32 %v4318_v63, %v8313_v7 }
 0x844   : > { %4382 = vst [vmem:[%s8267_s23 + $0xc0] sm:$0xff] %v4350_v62 }
 0x845   : > { %v4276_v54 = vpop.f32.mrf.mxu2 }
 0x846   : > { %v4277_v37 = vadd.f32 %v8262_v56, %v4276_v54 }
 0x848   : > { %v4319_v55 = vmul.f32 0.1, %v4277_v37 }
 0x84a   : > { %v4351_v13 = vadd.f32 %v4319_v55, %v8316_v49 }
 0x84c   : > { %4383 = vst [vmem:[%s8267_s23 + $0xc8] sm:$0xff] %v4351_v13 }
 0x84d   : > { %v4279_v15 = vpop.f32.mrf.mxu2 }
 0x84e   : > { %v4280_v25 = vadd.f32 %v8262_v56, %v4279_v15 }
 0x850   : > { %v4320_v30 = vmul.f32 0.1, %v4280_v25 }
 0x852   : > { %v4352_v51 = vadd.f32 %v4320_v30, %v8327_v50 }
 0x854   : > { %4384 = vst [vmem:[%s8267_s23 + $0xd0] sm:$0xff] %v4352_v51 }
 0x855   : > { %v4281_v3 = vpop.f32.mrf.mxu2 }
 0x856   : > { %v4282_v7 = vadd.f32 %v8262_v56, %v4281_v3 }
 0x858   : > { %v4321_v48 = vmul.f32 0.1, %v4282_v7 }
 0x85a   : > { %v4353_v60 = vadd.f32 %v4321_v48, %v8330_v19 }
 0x85c   : > { %4385 = vst [vmem:[%s8267_s23 + $0xd8] sm:$0xff] %v4353_v60 }
 0x85d   : > { %v4284_v1 = vpop.f32.mrf.mxu2 }
 0x85e   : > { %v4285_v49 = vadd.f32 %v8262_v56, %v4284_v1 }
 0x860   : > { %v4322_v39 = vmul.f32 0.1, %v4285_v49 }
 0x862   : > { %v4354_v34 = vadd.f32 %v4322_v39, %v8341_v43 }
 0x864   : > { %4386 = vst [vmem:[%s8267_s23 + $0xe0] sm:$0xff] %v4354_v34 }
 0x865   : > { %v4286_v50 = vpop.f32.mrf.mxu2 }
 0x866   : > { %v4287_v45 = vadd.f32 %v8262_v56, %v4286_v50 }
 0x868   : > { %v4323_v14 = vmul.f32 0.1, %v4287_v45 }
 0x86a   : > { %v4355_v0 = vadd.f32 %v4323_v14, %v8344_v36 }
 0x86c   : > { %4387 = vst [vmem:[%s8267_s23 + $0xe8] sm:$0xff] %v4355_v0 }
 0x86d   : > { %v4289_v33 = vpop.f32.mrf.mxu2 }
 0x86e   : > { %v4290_v19 = vadd.f32 %v8262_v56, %v4289_v33 }
 0x870   : > { %v4324_v29 = vmul.f32 0.1, %v4290_v19 }
 0x872   : > { %v4356_v10 = vadd.f32 %v4324_v29, %v8355_v6 }
 0x874   : > { %4388 = vst [vmem:[%s8267_s23 + $0xf0] sm:$0xff] %v4356_v10 }
 0x875   : > { %v4291_v43 = vpop.f32.mrf.mxu2 }
 0x876   : > { %v4292_v22 = vadd.f32 %v8262_v56, %v4291_v43 }
 0x878   : > { %v4325_v36 = vmul.f32 0.1, %v4292_v22 }
 0x87a   : > { %v4357_v18 = vadd.f32 %v4325_v36, %v8358_v8 }
 0x87c   : > { %4389 = vst [vmem:[%s8267_s23 + $0xf8] sm:$0xff] %v4357_v18 }
 0x87d   : > { %5508 = shalt.err (!%p5505_p3)
}
 0x87e   : > { %s5575_s5 = smov 128   ;;  %s5576_s25 = smov 8  }
 0x87f   : > { %5017 = dma.vmem_to_hbm [thread:$0]  (%p5723_p4), %s4405_s1, 4096, %s4407_s21, %s4391_s28, %s5575_s5, %s5575_s5, %s5576_s25  }
 0x880 PF: > { %s8748_s30 = sld [smem:[#allocation23_spill]]  ;;  %p8750_p7 = scmp.ge.s32.totalorder %s5563_s24, 2 }
 0x882   : > { %p5046_p9 = pnand %p8750_p7, %p5727_p5 }
 0x884   : > { %p5047_p0 = pneg %p5046_p9 }
 0x886   : > { %s4421_s15 = sand.u32 1, %s8748_s30  }
 0x887   : > { %s4422_s8 = scalar_lea.sflag [#allocation4], %s4421_s15 }
 0x888   : > { %5546 = dma.done.wait (%p5047_p0), %s4422_s8, 4096  }
 0x889   : > { %5548 = vsyncadd (%p5047_p0), %s4422_s8, 4294963200  ;;  %s8751_s24 = sld [smem:[#allocation25_spill]]  ;;  %s8754_s21 = smov %s5555_s22 }
 0x88a   : > { %s8752_s10 = sld [smem:[#allocation24_spill]] }
 0x88b   : > { %s8753_s23 = sld [smem:[#allocation26_spill]] }
 0x88f   : > { %p31_p2 = scmp.ge.s32.totalorder %s8751_s24, 4  }
 0x890   : > { %s8755_s22 = smov %s8752_s10 }
 0x891   :  { %33 = sbr.rel (!%p31_p2) target bundleno = 19 (0x13), region = 157 }
 0x896   :  { %4428 = vsyncpa [#allocation3], 1 }
 0x897   :  { %4430 = vsyncpa [#allocation3 + $0x1], 1 }
 0x898   :  { %4431 = vsyncpa [#allocation6], 1 }
 0x899   :  { %4433 = vsyncpa [#allocation6 + $0x1], 1 }
 0x89a   :  { %4434 = vsyncpa [#allocation9], 1 }
 0x89b   :  { %4435 = vsyncpa [#allocation12], 1 }
 0x89c   :  { %4436 = vsyncpa [#allocation15], 1 }
 0x89d   :  { %4437 = vsyncpa [#allocation4], 1 }
 0x89e   :  { %4439 = vsyncpa [#allocation4 + $0x1], 1 }

</bundles_post_ra>
